<compile_context>
chip_gen: v6e
topology: v6e:2x2x1
jax: 0.10.0
libtpu: 0.0.40
codegen_flags: <defaults>
</compile_context>

<pallas_src>
import functools

import jax
import jax.numpy as jnp
from jax.experimental import pallas as pl
from jax.experimental.pallas import tpu as pltpu

LANE_W = 1024                     # preferred lane-dense width (multiple of 128)
_TINY_BYPASS_ELEMS = 256 * 1024   # below this, pallas_call overhead dominates


def _round_down(x, m):
    return (x // m) * m


def _round_up(x, m):
    return ((x + m - 1) // m) * m


def _sublane_multiple(dtype):
    # (8,128) vreg tiling; sub-32-bit dtypes pack along sublanes.
    return {4: 8, 2: 16, 1: 32}.get(jnp.dtype(dtype).itemsize, 8)


@functools.lru_cache(maxsize=None)
def _vmem_budget():
    """Generation-aware (tile_bytes, vmem_limit_bytes, small_vmem).

    v5e/v6e: 128 MiB VMEM -> 16 MiB tiles (64 MiB resident with in+out double
    buffering).  v7x: 64 MiB VMEM -> 8 MiB tiles (32 MiB resident).  Falls back
    to the conservative v7x numbers if the hardware query is unavailable.
    """
    try:
        vmem_cap = pltpu.get_tpu_info().vmem_capacity_bytes
    except Exception:  # noqa: BLE001 - any failure -> conservative defaults
        vmem_cap = 0
    if vmem_cap >= 100 * 1024 * 1024:
        return 16 * 1024 * 1024, 96 * 1024 * 1024, False
    return 8 * 1024 * 1024, 40 * 1024 * 1024, True


def star_relu_kernel(scale_ref, bias_ref, x_ref, o_ref):
    # scale/bias are shape-(1,) f32 scalars in SMEM.
    s = scale_ref[0]
    b = bias_ref[0]
    # f32 math: correct on v5e (no bf16 VPU) and free here (DMA-bound kernel).
    x = x_ref[...].astype(jnp.float32)
    r = jnp.maximum(x, 0.0)
    o_ref[...] = (s * r * r + b).astype(o_ref.dtype)


def _star_relu_2d(x2, scale, bias):
    """Run the kernel over a lane-dense (m, w) slab (w a multiple of 128)."""
    m, w = x2.shape
    dtype = x2.dtype
    itemsize = jnp.dtype(dtype).itemsize
    tile_bytes, vmem_limit, small_vmem = _vmem_budget()
    sub = _sublane_multiple(dtype)

    max_rows = max(sub, _round_down(tile_bytes // (w * itemsize), sub))
    if m <= max_rows:
        bm = m                                   # single full-extent tile
    else:
        bm = max_rows                            # biggest tile that fits budget
        if small_vmem:
            # v7x: keep ~8 grid steps so both TensorCores + the pipeline have
            # work, without dropping below ~1024 rows per tile.
            bm = min(max_rows, max(1024, _round_up(pl.cdiv(m, 8), sub)))
    num_tiles = pl.cdiv(m, bm)   # Pallas masks boundary-block writes -> no row pad

    cost = pl.CostEstimate(
        flops=3 * m * w,
        transcendentals=0,
        bytes_accessed=2 * m * w * itemsize,
    )

    return pl.pallas_call(
        star_relu_kernel,
        out_shape=jax.ShapeDtypeStruct((m, w), dtype),
        grid=(num_tiles,),
        in_specs=[
            pl.BlockSpec(memory_space=pltpu.SMEM),         # scale (1,)
            pl.BlockSpec(memory_space=pltpu.SMEM),         # bias  (1,)
            pl.BlockSpec((bm, w), lambda i: (i, 0)),       # x row tile
        ],
        out_specs=pl.BlockSpec((bm, w), lambda i: (i, 0)),
        compiler_params=pltpu.CompilerParams(
            dimension_semantics=("parallel",),             # megacore on v7x
            vmem_limit_bytes=vmem_limit,
        ),
        cost_estimate=cost,
    )(scale, bias, x2)


def _pick_width(total):
    """Largest lane-dense width (multiple of 128) that divides `total`, else 0."""
    for w in (1024, 896, 768, 640, 512, 384, 256, 128):
        if total % w == 0:
            return w
    return 0


def star_relu(x, scale, bias):
    """StarReLU: scale * relu(x)**2 + bias, elementwise on any-rank x."""
    orig_shape = x.shape
    orig_dtype = x.dtype
    total = x.size

    # Tiny-input bypass: pallas_call overhead would dominate.
    if total < _TINY_BYPASS_ELEMS:
        r = jnp.maximum(x.astype(jnp.float32), 0.0)
        return (scale[0] * r * r + bias[0]).astype(orig_dtype)

    w = _pick_width(total)
    if w:
        # Zero-copy fast path: reshape of a contiguous buffer is metadata-only.
        out2 = _star_relu_2d(x.reshape(total // w, w), scale, bias)
        return out2.reshape(orig_shape)

    # Ragged fallback (size not a multiple of 128): pad the flat tail up to one
    # LANE_W row and slice it off afterwards.  Rare for real activation shapes.
    m = pl.cdiv(total, LANE_W)
    flat = jnp.pad(x.reshape(-1), (0, m * LANE_W - total))
    out2 = _star_relu_2d(flat.reshape(m, LANE_W), scale, bias)
    return out2.reshape(-1)[:total].reshape(orig_shape)


if __name__ == "__main__":
    # Module defaults: scale=1.0, bias=0.0 (nn.Parameter(torch.ones(1)) style).
    scale = jnp.full((1,), 1.0, dtype=jnp.float32)
    bias = jnp.full((1,), 0.0, dtype=jnp.float32)

    def ref_fn(x, s, b):
        xf = x.astype(jnp.float32)
        r = jnp.maximum(xf, 0.0)
        return (s[0] * r * r + b[0]).astype(x.dtype)

    # Test 1: small NCHW input (tiny bypass path), module-typical shape.
    x1 = jax.random.normal(jax.random.PRNGKey(0), (2, 4, 16, 16), dtype=jnp.float32)
    y1 = jax.block_until_ready(star_relu(x1, scale, bias))
    assert y1.shape == x1.shape and y1.dtype == x1.dtype
    assert jnp.allclose(y1, ref_fn(x1, scale, bias), atol=1e-6, rtol=1e-6)

    scale2 = jnp.full((1,), 1.5, dtype=jnp.float32)
    bias2 = jnp.full((1,), -0.25, dtype=jnp.float32)

    # Test 2: aligned larger input -> zero-copy, single-tile Pallas path.
    x2 = jax.random.normal(jax.random.PRNGKey(1), (4, 16, 96, 96), dtype=jnp.float32)
    y2 = jax.block_until_ready(star_relu(x2, scale2, bias2))
    assert jnp.allclose(y2, ref_fn(x2, scale2, bias2), atol=1e-6, rtol=1e-6)

    # Test 3: big enough to need several row tiles (multi-step pipelined grid).
    x3 = jax.random.normal(jax.random.PRNGKey(2), (8, 1024, 1024), dtype=jnp.float32)
    y3 = jax.block_until_ready(star_relu(x3, scale2, bias2))
    assert jnp.allclose(y3, ref_fn(x3, scale2, bias2), atol=1e-6, rtol=1e-6)

    # Test 4: large ragged shape (exercises the pad fallback path).
    x4 = jax.random.normal(jax.random.PRNGKey(3), (3, 7, 167, 167), dtype=jnp.float32)
    y4 = jax.block_until_ready(star_relu(x4, scale2, bias2))
    assert jnp.allclose(y4, ref_fn(x4, scale2, bias2), atol=1e-6, rtol=1e-6)

    # Test 5: bf16 activations on the aligned fast path.
    x5 = jax.random.normal(jax.random.PRNGKey(4), (2, 256, 768), dtype=jnp.bfloat16)
    y5 = jax.block_until_ready(star_relu(x5, scale2, bias2))
    assert y5.dtype == jnp.bfloat16
    assert jnp.allclose(y5.astype(jnp.float32),
                        ref_fn(x5, scale2, bias2).astype(jnp.float32),
                        atol=2e-2, rtol=2e-2)

    print("KERNEL_OK")
</pallas_src>

<mosaic_0001>
module attributes {stable_mosaic.version = 11 : i64} {
  func.func @star_relu_kernel(%arg0: i32, %arg1: memref<1xf32, #tpu.memory_space<smem>>, %arg2: memref<1xf32, #tpu.memory_space<smem>>, %arg3: memref<576x1024xf32, #tpu.memory_space<vmem>>, %arg4: memref<576x1024xf32, #tpu.memory_space<vmem>>) attributes {dimension_semantics = [#tpu.dimension_semantics<parallel>], iteration_bounds = array<i64: 1>, scalar_prefetch = 0 : i64, scratch_operands = 0 : i64, tpu.core_type = #tpu.core_type<tc>, window_params = [{transform_indices = @transform_0, window_bounds = array<i64: 1>}, {transform_indices = @transform_1, window_bounds = array<i64: 1>}, {transform_indices = @transform_2, window_bounds = array<i64: 576, 1024>}, {transform_indices = @transform_3, window_bounds = array<i64: 576, 1024>}]} {
    %c0 = arith.constant 0 : index
    %0 = memref.load %arg1[%c0] : memref<1xf32, #tpu.memory_space<smem>>
    %c0_0 = arith.constant 0 : index
    %1 = memref.load %arg2[%c0_0] : memref<1xf32, #tpu.memory_space<smem>>
    %c0_1 = arith.constant 0 : index
    %c0_2 = arith.constant 0 : index
    %2 = vector.load %arg3[%c0_1, %c0_2] : memref<576x1024xf32, #tpu.memory_space<vmem>>, vector<576x1024xf32>
    %cst = arith.constant 0.000000e+00 : f32
    %3 = vector.broadcast %cst : f32 to vector<576x1024xf32>
    %4 = arith.maximumf %2, %3 : vector<576x1024xf32>
    %5 = vector.broadcast %0 : f32 to vector<576x1024xf32>
    %6 = arith.mulf %5, %4 : vector<576x1024xf32>
    %7 = arith.mulf %6, %4 : vector<576x1024xf32>
    %8 = vector.broadcast %1 : f32 to vector<576x1024xf32>
    %9 = arith.addf %7, %8 : vector<576x1024xf32>
    %c0_3 = arith.constant 0 : index
    %c0_4 = arith.constant 0 : index
    %10 = vector.load %arg4[%c0_3, %c0_4] : memref<576x1024xf32, #tpu.memory_space<vmem>>, vector<576x1024xf32>
    tpu.vector_store %arg4[%c0_3, %c0_4], %9 {strides = array<i32>} : memref<576x1024xf32, #tpu.memory_space<vmem>>, vector<576x1024xf32>,
    return
  }
  func.func @transform_0(%arg0: i32) -> i32 {
    %c0_i32 = arith.constant 0 : i32
    %c0_i32_0 = arith.constant 0 : i32
    return %c0_i32 : i32
  }
  func.func @transform_1(%arg0: i32) -> i32 {
    %c0_i32 = arith.constant 0 : i32
    %c0_i32_0 = arith.constant 0 : i32
    return %c0_i32 : i32
  }
  func.func @transform_2(%arg0: i32) -> (i32, i32) {
    %c0_i32 = arith.constant 0 : i32
    %c0_i32_0 = arith.constant 0 : i32
    return %arg0, %c0_i32 : i32, i32
  }
  func.func @transform_3(%arg0: i32) -> (i32, i32) {
    %c0_i32 = arith.constant 0 : i32
    %c0_i32_0 = arith.constant 0 : i32
    return %arg0, %c0_i32 : i32, i32
  }
}

</mosaic_0001>

<bundles_post_ra>
// kernel: tpu_custom_call.1
= control target key start
LH: loop header
LB: loop body
LE: loop exit
PB: predicated region body
PF: predicated region fallthrough
CT: control target
= control target key end

     0   :  { %10 = vsyncpa [#allocation5], 0  ;;  %s4754_s0 = inlined_call_operand.<no memory space> [shape: f32[1], index: 0, kind: input, shape index: {}]   ;;  %s4755_s1 = inlined_call_operand.<no memory space> [shape: f32[1], index: 1, kind: input, shape index: {}]   ;;  %s4756_s2 = inlined_call_operand.hbm [shape: f32[576,1024], index: 2, kind: input, shape index: {}]   ;;  %s4757_s3 = inlined_call_operand.hbm [shape: f32[576,1024], index: 3, kind: output, shape index: {}]  }
   0x1   :  { %11 = vsyncpa [#allocation6], 0  ;;  %s3556_s12 = smov [#allocation4]  }
   0x2   :  { %s21_s13 = sshll.u32 %s3556_s12, 4  ;;  %s22_s13 = int_to_ptr.vmem [resolvable:$true] %s21_s13 }
   0x3   :  { %s3520_s14 = scalar_lea.vmem %s22_s13, 73728  ;;  %p3525_p1 = scmp.lt.s32.totalorder %s22_s13, %s22_s13 }
   0x4   :  { %p3521_p0 = scmp.ne.s32.totalorder %s22_s13, %s3520_s14  ;;  %p3526_p2 = scmp.lt.s32.totalorder %s3520_s14, %s3520_s14 }
   0x6   :  { %p3527_p3 = por %p3526_p2, %p3525_p1 }
   0x8   :  { %p3528_p4 = pnand %p3527_p3, %p3521_p0 }
   0xa   :  { %3531 = shalt.err (!%p3528_p4)
}
   0xb   :  { %s3557_s15 = smov 1024   ;;  %s3558_s16 = smov 64  }
   0xc   :  { %27 = dma.hbm_to_vmem [thread:$0]  %s4756_s2, 73728, %s22_s13, [#allocation5], %s3557_s15, %s3557_s15, %s3558_s16  }
   0xd   :  { %3552 = dma.done.wait [#allocation5], 73728  }
   0xe   :  { %3553 = vsyncadd [#allocation5], 4294893568  ;;  %v33_v0 = vld [vmem:[#allocation4] sm:$0xff]  ;;  %v3589_v1 = vstv %s4754_s0  ;;  %v34_v2 = vld [vmem:[#allocation4 + $0x8] sm:$0xff]  ;;  %v3594_v10 = vstv %s4755_s1  ;;  %s3559_s0 = smov [#allocation7]  }
   0xf   :  { %v35_v3 = vld [vmem:[#allocation4 + $0x10] sm:$0xff]  ;;  %v609_v4 = vmax.f32 %v33_v0, 0.0  ;;  %v610_v5 = vmax.f32 %v34_v2, 0.0  ;;  %v36_v7 = vld [vmem:[#allocation4 + $0x18] sm:$0xff]  ;;  %v37_v8 = vld [vmem:[#allocation4 + $0x20] sm:$0xff]  ;;  %s3496_s1 = sshll.u32 %s3559_s0, 4  ;;  %s3497_s1 = int_to_ptr.vmem [resolvable:$true] %s3496_s1 }
  0x10   :  { %v611_v6 = vmax.f32 %v35_v3, 0.0  ;;  %v38_v9 = vld [vmem:[#allocation4 + $0x28] sm:$0xff]  ;;  %v612_v11 = vmax.f32 %v36_v7, 0.0  ;;  %v613_v12 = vmax.f32 %v37_v8, 0.0  ;;  %v39_v14 = vld [vmem:[#allocation4 + $0x30] sm:$0xff]  ;;  %v40_v15 = vld [vmem:[#allocation4 + $0x38] sm:$0xff]  ;;  %p3537_p6 = scmp.lt.s32.totalorder %s3497_s1, %s3497_s1 }
  0x11   :  { %v614_v13 = vmax.f32 %v38_v9, 0.0  ;;  %v1186_v16 = vmul.f32 %v3589_v1, %v609_v4  ;;  %v1187_v17 = vmul.f32 %v3589_v1, %v610_v5  ;;  %v615_v19 = vmax.f32 %v39_v14, 0.0  ;;  %v41_v32 = vld [vmem:[#allocation4 + $0x40] sm:$0xff]  ;;  %v42_v33 = vld [vmem:[#allocation4 + $0x48] sm:$0xff]  ;;  %v43_v34 = vld [vmem:[#allocation4 + $0x50] sm:$0xff]  ;;  %s3532_s2 = scalar_lea.vmem %s3497_s1, 73728 }
  0x12   :  { %v1188_v18 = vmul.f32 %v3589_v1, %v611_v6  ;;  %v1189_v20 = vmul.f32 %v3589_v1, %v612_v11  ;;  %v1190_v21 = vmul.f32 %v3589_v1, %v613_v12  ;;  %v616_v23 = vmax.f32 %v40_v15, 0.0  ;;  %v44_v39 = vld [vmem:[#allocation4 + $0x58] sm:$0xff]  ;;  %v45_v40 = vld [vmem:[#allocation4 + $0x60] sm:$0xff]  ;;  %v46_v41 = vld [vmem:[#allocation4 + $0x68] sm:$0xff]  ;;  %p3533_p5 = scmp.ne.s32.totalorder %s3497_s1, %s3532_s2  ;;  %p3538_p7 = scmp.lt.s32.totalorder %s3532_s2, %s3532_s2 }
  0x13   :  { %v1191_v22 = vmul.f32 %v3589_v1, %v614_v13  ;;  %v1762_v24 = vmul.f32 %v1186_v16, %v609_v4  ;;  %v1763_v25 = vmul.f32 %v1187_v17, %v610_v5  ;;  %v1192_v27 = vmul.f32 %v3589_v1, %v615_v19  ;;  %v47_v46 = vld [vmem:[#allocation4 + $0x70] sm:$0xff]  ;;  %v48_v51 = vld [vmem:[#allocation4 + $0x78] sm:$0xff]  ;;  %v49_v9 = vld [vmem:[#allocation4 + $0x80] sm:$0xff] }
  0x14   :  { %v1764_v26 = vmul.f32 %v1188_v18, %v611_v6  ;;  %v1765_v28 = vmul.f32 %v1189_v20, %v612_v11  ;;  %v1766_v29 = vmul.f32 %v1190_v21, %v613_v12  ;;  %v1193_v31 = vmul.f32 %v3589_v1, %v616_v23  ;;  %v50_v11 = vld [vmem:[#allocation4 + $0x88] sm:$0xff]  ;;  %v51_v12 = vld [vmem:[#allocation4 + $0x90] sm:$0xff]  ;;  %v52_v17 = vld [vmem:[#allocation4 + $0x98] sm:$0xff]  ;;  %p3539_p8 = por %p3538_p7, %p3537_p6 }
  0x15   :  { %v1767_v30 = vmul.f32 %v1191_v22, %v614_v13  ;;  %v2339_v35 = vadd.f32 %v3594_v10, %v1762_v24  ;;  %v2340_v36 = vadd.f32 %v3594_v10, %v1763_v25  ;;  %v1768_v38 = vmul.f32 %v1192_v27, %v615_v19  ;;  %v53_v18 = vld [vmem:[#allocation4 + $0xa0] sm:$0xff]  ;;  %v54_v19 = vld [vmem:[#allocation4 + $0xa8] sm:$0xff]  ;;  %v55_v24 = vld [vmem:[#allocation4 + $0xb0] sm:$0xff] }
  0x16   :  { %v2341_v37 = vadd.f32 %v3594_v10, %v1764_v26  ;;  %v2342_v42 = vadd.f32 %v3594_v10, %v1765_v28  ;;  %v2343_v43 = vadd.f32 %v3594_v10, %v1766_v29  ;;  %v1769_v45 = vmul.f32 %v1193_v31, %v616_v23  ;;  %v56_v29 = vld [vmem:[#allocation4 + $0xb8] sm:$0xff]  ;;  %p3540_p9 = pnand %p3539_p8, %p3533_p5 }
  0x17   :  { %v2344_v44 = vadd.f32 %v3594_v10, %v1767_v30  ;;  %2915 = vst [vmem:[#allocation7] sm:$0xff] %v2339_v35  ;;  %2916 = vst [vmem:[#allocation7 + $0x8] sm:$0xff] %v2340_v36  ;;  %v2345_v47 = vadd.f32 %v3594_v10, %v1768_v38  ;;  %v617_v48 = vmax.f32 %v41_v32, 0.0  ;;  %v618_v49 = vmax.f32 %v42_v33, 0.0 }
  0x18   :  { %2917 = vst [vmem:[#allocation7 + $0x10] sm:$0xff] %v2341_v37  ;;  %v619_v50 = vmax.f32 %v43_v34, 0.0  ;;  %2918 = vst [vmem:[#allocation7 + $0x18] sm:$0xff] %v2342_v42  ;;  %v2346_v52 = vadd.f32 %v3594_v10, %v1769_v45  ;;  %v620_v53 = vmax.f32 %v44_v39, 0.0  ;;  %v621_v54 = vmax.f32 %v45_v40, 0.0 }
  0x19   :  { %2919 = vst [vmem:[#allocation7 + $0x20] sm:$0xff] %v2343_v43  ;;  %2920 = vst [vmem:[#allocation7 + $0x28] sm:$0xff] %v2344_v44  ;;  %v622_v55 = vmax.f32 %v46_v41, 0.0  ;;  %v1194_v56 = vmul.f32 %v3589_v1, %v617_v48  ;;  %v1195_v57 = vmul.f32 %v3589_v1, %v618_v49  ;;  %v623_v59 = vmax.f32 %v47_v46, 0.0 }
  0x1a   :  { %2921 = vst [vmem:[#allocation7 + $0x30] sm:$0xff] %v2345_v47  ;;  %v1196_v58 = vmul.f32 %v3589_v1, %v619_v50  ;;  %2922 = vst [vmem:[#allocation7 + $0x38] sm:$0xff] %v2346_v52  ;;  %v1197_v60 = vmul.f32 %v3589_v1, %v620_v53  ;;  %v1198_v61 = vmul.f32 %v3589_v1, %v621_v54  ;;  %v624_v63 = vmax.f32 %v48_v51, 0.0  ;;  %v58_v51 = vld [vmem:[#allocation4 + $0xc8] sm:$0xff]  ;;  %v59_v52 = vld [vmem:[#allocation4 + $0xd0] sm:$0xff] }
  0x1b   :  { %v1199_v62 = vmul.f32 %v3589_v1, %v622_v55  ;;  %v1770_v0 = vmul.f32 %v1194_v56, %v617_v48  ;;  %v1771_v2 = vmul.f32 %v1195_v57, %v618_v49  ;;  %v1200_v4 = vmul.f32 %v3589_v1, %v623_v59  ;;  %v60_v57 = vld [vmem:[#allocation4 + $0xd8] sm:$0xff] }
  0x1c   :  { %v1772_v3 = vmul.f32 %v1196_v58, %v619_v50  ;;  %v1773_v5 = vmul.f32 %v1197_v60, %v620_v53  ;;  %v1774_v6 = vmul.f32 %v1198_v61, %v621_v54  ;;  %v1201_v8 = vmul.f32 %v3589_v1, %v624_v63  ;;  %v57_v50 = vld [vmem:[#allocation4 + $0xc0] sm:$0xff] }
  0x1d   :  { %v1775_v7 = vmul.f32 %v1199_v62, %v622_v55  ;;  %v2347_v13 = vadd.f32 %v3594_v10, %v1770_v0  ;;  %v2348_v14 = vadd.f32 %v3594_v10, %v1771_v2  ;;  %v1776_v16 = vmul.f32 %v1200_v4, %v623_v59  ;;  %v61_v58 = vld [vmem:[#allocation4 + $0xe0] sm:$0xff]  ;;  %v62_v59 = vld [vmem:[#allocation4 + $0xe8] sm:$0xff]  ;;  %v63_v0 = vld [vmem:[#allocation4 + $0xf0] sm:$0xff] }
  0x1e   :  { %v2349_v15 = vadd.f32 %v3594_v10, %v1772_v3  ;;  %v2350_v20 = vadd.f32 %v3594_v10, %v1773_v5  ;;  %v2351_v21 = vadd.f32 %v3594_v10, %v1774_v6  ;;  %v1777_v23 = vmul.f32 %v1201_v8, %v624_v63  ;;  %v64_v6 = vld [vmem:[#allocation4 + $0xf8] sm:$0xff] }
  0x1f   :  { %v2352_v22 = vadd.f32 %v3594_v10, %v1775_v7  ;;  %2923 = vst [vmem:[#allocation7 + $0x40] sm:$0xff] %v2347_v13  ;;  %2924 = vst [vmem:[#allocation7 + $0x48] sm:$0xff] %v2348_v14  ;;  %v2353_v25 = vadd.f32 %v3594_v10, %v1776_v16  ;;  %v625_v26 = vmax.f32 %v49_v9, 0.0  ;;  %v626_v27 = vmax.f32 %v50_v11, 0.0 }
  0x20   :  { %2925 = vst [vmem:[#allocation7 + $0x50] sm:$0xff] %v2349_v15  ;;  %v627_v28 = vmax.f32 %v51_v12, 0.0  ;;  %2926 = vst [vmem:[#allocation7 + $0x58] sm:$0xff] %v2350_v20  ;;  %v2354_v30 = vadd.f32 %v3594_v10, %v1777_v23  ;;  %v628_v31 = vmax.f32 %v52_v17, 0.0  ;;  %v629_v32 = vmax.f32 %v53_v18, 0.0 }
  0x21   :  { %2927 = vst [vmem:[#allocation7 + $0x60] sm:$0xff] %v2351_v21  ;;  %2928 = vst [vmem:[#allocation7 + $0x68] sm:$0xff] %v2352_v22  ;;  %v630_v33 = vmax.f32 %v54_v19, 0.0  ;;  %v1202_v34 = vmul.f32 %v3589_v1, %v625_v26  ;;  %v1203_v35 = vmul.f32 %v3589_v1, %v626_v27  ;;  %v631_v37 = vmax.f32 %v55_v24, 0.0 }
  0x22   :  { %2929 = vst [vmem:[#allocation7 + $0x70] sm:$0xff] %v2353_v25  ;;  %v1204_v36 = vmul.f32 %v3589_v1, %v627_v28  ;;  %2930 = vst [vmem:[#allocation7 + $0x78] sm:$0xff] %v2354_v30  ;;  %v1205_v38 = vmul.f32 %v3589_v1, %v628_v31  ;;  %v1206_v39 = vmul.f32 %v3589_v1, %v629_v32  ;;  %v632_v41 = vmax.f32 %v56_v29, 0.0  ;;  %v66_v29 = vld [vmem:[#allocation4 + $0x108] sm:$0xff]  ;;  %v67_v30 = vld [vmem:[#allocation4 + $0x110] sm:$0xff] }
  0x23   :  { %v1207_v40 = vmul.f32 %v3589_v1, %v630_v33  ;;  %v1778_v42 = vmul.f32 %v1202_v34, %v625_v26  ;;  %v1779_v43 = vmul.f32 %v1203_v35, %v626_v27  ;;  %v1208_v45 = vmul.f32 %v3589_v1, %v631_v37  ;;  %v68_v35 = vld [vmem:[#allocation4 + $0x118] sm:$0xff] }
  0x24   :  { %v1780_v44 = vmul.f32 %v1204_v36, %v627_v28  ;;  %v1781_v46 = vmul.f32 %v1205_v38, %v628_v31  ;;  %v1782_v47 = vmul.f32 %v1206_v39, %v629_v32  ;;  %v1209_v49 = vmul.f32 %v3589_v1, %v632_v41  ;;  %v65_v28 = vld [vmem:[#allocation4 + $0x100] sm:$0xff] }
  0x25   :  { %v1783_v48 = vmul.f32 %v1207_v40, %v630_v33  ;;  %v2355_v53 = vadd.f32 %v3594_v10, %v1778_v42  ;;  %v2356_v54 = vadd.f32 %v3594_v10, %v1779_v43  ;;  %v1784_v56 = vmul.f32 %v1208_v45, %v631_v37  ;;  %v69_v36 = vld [vmem:[#allocation4 + $0x120] sm:$0xff]  ;;  %v70_v37 = vld [vmem:[#allocation4 + $0x128] sm:$0xff]  ;;  %v71_v42 = vld [vmem:[#allocation4 + $0x130] sm:$0xff] }
  0x26   :  { %v2357_v55 = vadd.f32 %v3594_v10, %v1780_v44  ;;  %v2358_v60 = vadd.f32 %v3594_v10, %v1781_v46  ;;  %v2359_v61 = vadd.f32 %v3594_v10, %v1782_v47  ;;  %v1785_v63 = vmul.f32 %v1209_v49, %v632_v41  ;;  %v72_v47 = vld [vmem:[#allocation4 + $0x138] sm:$0xff] }
  0x27   :  { %v2360_v62 = vadd.f32 %v3594_v10, %v1783_v48  ;;  %2931 = vst [vmem:[#allocation7 + $0x80] sm:$0xff] %v2355_v53  ;;  %2932 = vst [vmem:[#allocation7 + $0x88] sm:$0xff] %v2356_v54  ;;  %v2361_v2 = vadd.f32 %v3594_v10, %v1784_v56  ;;  %v633_v3 = vmax.f32 %v57_v50, 0.0  ;;  %v634_v4 = vmax.f32 %v58_v51, 0.0 }
  0x28   :  { %2933 = vst [vmem:[#allocation7 + $0x90] sm:$0xff] %v2357_v55  ;;  %v635_v5 = vmax.f32 %v59_v52, 0.0  ;;  %2934 = vst [vmem:[#allocation7 + $0x98] sm:$0xff] %v2358_v60  ;;  %v2362_v7 = vadd.f32 %v3594_v10, %v1785_v63  ;;  %v636_v8 = vmax.f32 %v60_v57, 0.0  ;;  %v637_v9 = vmax.f32 %v61_v58, 0.0 }
  0x29   :  { %2935 = vst [vmem:[#allocation7 + $0xa0] sm:$0xff] %v2359_v61  ;;  %2936 = vst [vmem:[#allocation7 + $0xa8] sm:$0xff] %v2360_v62  ;;  %v638_v11 = vmax.f32 %v62_v59, 0.0  ;;  %v1210_v12 = vmul.f32 %v3589_v1, %v633_v3  ;;  %v1211_v13 = vmul.f32 %v3589_v1, %v634_v4  ;;  %v639_v15 = vmax.f32 %v63_v0, 0.0 }
  0x2a   :  { %2937 = vst [vmem:[#allocation7 + $0xb0] sm:$0xff] %v2361_v2  ;;  %v1212_v14 = vmul.f32 %v3589_v1, %v635_v5  ;;  %2938 = vst [vmem:[#allocation7 + $0xb8] sm:$0xff] %v2362_v7  ;;  %v1213_v16 = vmul.f32 %v3589_v1, %v636_v8  ;;  %v1214_v17 = vmul.f32 %v3589_v1, %v637_v9  ;;  %v640_v19 = vmax.f32 %v64_v6, 0.0  ;;  %v74_v6 = vld [vmem:[#allocation4 + $0x148] sm:$0xff]  ;;  %v75_v7 = vld [vmem:[#allocation4 + $0x150] sm:$0xff] }
  0x2b   :  { %v1215_v18 = vmul.f32 %v3589_v1, %v638_v11  ;;  %v1786_v20 = vmul.f32 %v1210_v12, %v633_v3  ;;  %v1787_v21 = vmul.f32 %v1211_v13, %v634_v4  ;;  %v1216_v23 = vmul.f32 %v3589_v1, %v639_v15  ;;  %v76_v13 = vld [vmem:[#allocation4 + $0x158] sm:$0xff] }
  0x2c   :  { %v1788_v22 = vmul.f32 %v1212_v14, %v635_v5  ;;  %v1789_v24 = vmul.f32 %v1213_v16, %v636_v8  ;;  %v1790_v25 = vmul.f32 %v1214_v17, %v637_v9  ;;  %v1217_v27 = vmul.f32 %v3589_v1, %v640_v19  ;;  %v73_v5 = vld [vmem:[#allocation4 + $0x140] sm:$0xff] }
  0x2d   :  { %v1791_v26 = vmul.f32 %v1215_v18, %v638_v11  ;;  %v2363_v31 = vadd.f32 %v3594_v10, %v1786_v20  ;;  %v2364_v32 = vadd.f32 %v3594_v10, %v1787_v21  ;;  %v1792_v34 = vmul.f32 %v1216_v23, %v639_v15  ;;  %v77_v14 = vld [vmem:[#allocation4 + $0x160] sm:$0xff]  ;;  %v78_v15 = vld [vmem:[#allocation4 + $0x168] sm:$0xff]  ;;  %v79_v20 = vld [vmem:[#allocation4 + $0x170] sm:$0xff] }
  0x2e   :  { %v2365_v33 = vadd.f32 %v3594_v10, %v1788_v22  ;;  %v2366_v38 = vadd.f32 %v3594_v10, %v1789_v24  ;;  %v2367_v39 = vadd.f32 %v3594_v10, %v1790_v25  ;;  %v1793_v41 = vmul.f32 %v1217_v27, %v640_v19  ;;  %v80_v25 = vld [vmem:[#allocation4 + $0x178] sm:$0xff] }
  0x2f   :  { %v2368_v40 = vadd.f32 %v3594_v10, %v1791_v26  ;;  %2939 = vst [vmem:[#allocation7 + $0xc0] sm:$0xff] %v2363_v31  ;;  %2940 = vst [vmem:[#allocation7 + $0xc8] sm:$0xff] %v2364_v32  ;;  %v2369_v43 = vadd.f32 %v3594_v10, %v1792_v34  ;;  %v641_v44 = vmax.f32 %v65_v28, 0.0  ;;  %v642_v45 = vmax.f32 %v66_v29, 0.0 }
  0x30   :  { %2941 = vst [vmem:[#allocation7 + $0xd0] sm:$0xff] %v2365_v33  ;;  %v643_v46 = vmax.f32 %v67_v30, 0.0  ;;  %2942 = vst [vmem:[#allocation7 + $0xd8] sm:$0xff] %v2366_v38  ;;  %v2370_v48 = vadd.f32 %v3594_v10, %v1793_v41  ;;  %v644_v49 = vmax.f32 %v68_v35, 0.0  ;;  %v645_v50 = vmax.f32 %v69_v36, 0.0 }
  0x31   :  { %2943 = vst [vmem:[#allocation7 + $0xe0] sm:$0xff] %v2367_v39  ;;  %2944 = vst [vmem:[#allocation7 + $0xe8] sm:$0xff] %v2368_v40  ;;  %v646_v51 = vmax.f32 %v70_v37, 0.0  ;;  %v1218_v52 = vmul.f32 %v3589_v1, %v641_v44  ;;  %v1219_v53 = vmul.f32 %v3589_v1, %v642_v45  ;;  %v647_v55 = vmax.f32 %v71_v42, 0.0 }
  0x32   :  { %2945 = vst [vmem:[#allocation7 + $0xf0] sm:$0xff] %v2369_v43  ;;  %v1220_v54 = vmul.f32 %v3589_v1, %v643_v46  ;;  %2946 = vst [vmem:[#allocation7 + $0xf8] sm:$0xff] %v2370_v48  ;;  %v1221_v56 = vmul.f32 %v3589_v1, %v644_v49  ;;  %v1222_v57 = vmul.f32 %v3589_v1, %v645_v50  ;;  %v648_v59 = vmax.f32 %v72_v47, 0.0  ;;  %v82_v47 = vld [vmem:[#allocation4 + $0x188] sm:$0xff]  ;;  %v83_v48 = vld [vmem:[#allocation4 + $0x190] sm:$0xff] }
  0x33   :  { %v1223_v58 = vmul.f32 %v3589_v1, %v646_v51  ;;  %v1794_v60 = vmul.f32 %v1218_v52, %v641_v44  ;;  %v1795_v61 = vmul.f32 %v1219_v53, %v642_v45  ;;  %v1224_v63 = vmul.f32 %v3589_v1, %v647_v55  ;;  %v84_v53 = vld [vmem:[#allocation4 + $0x198] sm:$0xff] }
  0x34   :  { %v1796_v62 = vmul.f32 %v1220_v54, %v643_v46  ;;  %v1797_v0 = vmul.f32 %v1221_v56, %v644_v49  ;;  %v1798_v2 = vmul.f32 %v1222_v57, %v645_v50  ;;  %v1225_v4 = vmul.f32 %v3589_v1, %v648_v59  ;;  %v81_v46 = vld [vmem:[#allocation4 + $0x180] sm:$0xff] }
  0x35   :  { %v1799_v3 = vmul.f32 %v1223_v58, %v646_v51  ;;  %v2371_v8 = vadd.f32 %v3594_v10, %v1794_v60  ;;  %v2372_v9 = vadd.f32 %v3594_v10, %v1795_v61  ;;  %v1800_v12 = vmul.f32 %v1224_v63, %v647_v55  ;;  %v85_v54 = vld [vmem:[#allocation4 + $0x1a0] sm:$0xff]  ;;  %v86_v55 = vld [vmem:[#allocation4 + $0x1a8] sm:$0xff]  ;;  %v87_v60 = vld [vmem:[#allocation4 + $0x1b0] sm:$0xff] }
  0x36   :  { %v2373_v11 = vadd.f32 %v3594_v10, %v1796_v62  ;;  %v2374_v16 = vadd.f32 %v3594_v10, %v1797_v0  ;;  %v2375_v17 = vadd.f32 %v3594_v10, %v1798_v2  ;;  %v1801_v19 = vmul.f32 %v1225_v4, %v648_v59  ;;  %v88_v2 = vld [vmem:[#allocation4 + $0x1b8] sm:$0xff] }
  0x37   :  { %v2376_v18 = vadd.f32 %v3594_v10, %v1799_v3  ;;  %2947 = vst [vmem:[#allocation7 + $0x100] sm:$0xff] %v2371_v8  ;;  %2948 = vst [vmem:[#allocation7 + $0x108] sm:$0xff] %v2372_v9  ;;  %v2377_v21 = vadd.f32 %v3594_v10, %v1800_v12  ;;  %v649_v22 = vmax.f32 %v73_v5, 0.0  ;;  %v650_v23 = vmax.f32 %v74_v6, 0.0 }
  0x38   :  { %2949 = vst [vmem:[#allocation7 + $0x110] sm:$0xff] %v2373_v11  ;;  %v651_v24 = vmax.f32 %v75_v7, 0.0  ;;  %2950 = vst [vmem:[#allocation7 + $0x118] sm:$0xff] %v2374_v16  ;;  %v2378_v26 = vadd.f32 %v3594_v10, %v1801_v19  ;;  %v652_v27 = vmax.f32 %v76_v13, 0.0  ;;  %v653_v28 = vmax.f32 %v77_v14, 0.0 }
  0x39   :  { %2951 = vst [vmem:[#allocation7 + $0x120] sm:$0xff] %v2375_v17  ;;  %2952 = vst [vmem:[#allocation7 + $0x128] sm:$0xff] %v2376_v18  ;;  %v654_v29 = vmax.f32 %v78_v15, 0.0  ;;  %v1226_v30 = vmul.f32 %v3589_v1, %v649_v22  ;;  %v1227_v31 = vmul.f32 %v3589_v1, %v650_v23  ;;  %v655_v33 = vmax.f32 %v79_v20, 0.0 }
  0x3a   :  { %2953 = vst [vmem:[#allocation7 + $0x130] sm:$0xff] %v2377_v21  ;;  %v1228_v32 = vmul.f32 %v3589_v1, %v651_v24  ;;  %2954 = vst [vmem:[#allocation7 + $0x138] sm:$0xff] %v2378_v26  ;;  %v1229_v34 = vmul.f32 %v3589_v1, %v652_v27  ;;  %v1230_v35 = vmul.f32 %v3589_v1, %v653_v28  ;;  %v656_v37 = vmax.f32 %v80_v25, 0.0  ;;  %v90_v25 = vld [vmem:[#allocation4 + $0x1c8] sm:$0xff]  ;;  %v91_v26 = vld [vmem:[#allocation4 + $0x1d0] sm:$0xff] }
  0x3b   :  { %v1231_v36 = vmul.f32 %v3589_v1, %v654_v29  ;;  %v1802_v38 = vmul.f32 %v1226_v30, %v649_v22  ;;  %v1803_v39 = vmul.f32 %v1227_v31, %v650_v23  ;;  %v1232_v41 = vmul.f32 %v3589_v1, %v655_v33  ;;  %v92_v31 = vld [vmem:[#allocation4 + $0x1d8] sm:$0xff] }
  0x3c   :  { %v1804_v40 = vmul.f32 %v1228_v32, %v651_v24  ;;  %v1805_v42 = vmul.f32 %v1229_v34, %v652_v27  ;;  %v1806_v43 = vmul.f32 %v1230_v35, %v653_v28  ;;  %v1233_v45 = vmul.f32 %v3589_v1, %v656_v37  ;;  %v89_v24 = vld [vmem:[#allocation4 + $0x1c0] sm:$0xff] }
  0x3d   :  { %v1807_v44 = vmul.f32 %v1231_v36, %v654_v29  ;;  %v2379_v49 = vadd.f32 %v3594_v10, %v1802_v38  ;;  %v2380_v50 = vadd.f32 %v3594_v10, %v1803_v39  ;;  %v1808_v52 = vmul.f32 %v1232_v41, %v655_v33  ;;  %v93_v32 = vld [vmem:[#allocation4 + $0x1e0] sm:$0xff]  ;;  %v94_v33 = vld [vmem:[#allocation4 + $0x1e8] sm:$0xff]  ;;  %v95_v38 = vld [vmem:[#allocation4 + $0x1f0] sm:$0xff] }
  0x3e   :  { %v2381_v51 = vadd.f32 %v3594_v10, %v1804_v40  ;;  %v2382_v56 = vadd.f32 %v3594_v10, %v1805_v42  ;;  %v2383_v57 = vadd.f32 %v3594_v10, %v1806_v43  ;;  %v1809_v59 = vmul.f32 %v1233_v45, %v656_v37  ;;  %v96_v43 = vld [vmem:[#allocation4 + $0x1f8] sm:$0xff] }
  0x3f   :  { %v2384_v58 = vadd.f32 %v3594_v10, %v1807_v44  ;;  %2955 = vst [vmem:[#allocation7 + $0x140] sm:$0xff] %v2379_v49  ;;  %2956 = vst [vmem:[#allocation7 + $0x148] sm:$0xff] %v2380_v50  ;;  %v2385_v61 = vadd.f32 %v3594_v10, %v1808_v52  ;;  %v657_v62 = vmax.f32 %v81_v46, 0.0  ;;  %v658_v63 = vmax.f32 %v82_v47, 0.0 }
  0x40   :  { %2957 = vst [vmem:[#allocation7 + $0x150] sm:$0xff] %v2381_v51  ;;  %v659_v0 = vmax.f32 %v83_v48, 0.0  ;;  %2958 = vst [vmem:[#allocation7 + $0x158] sm:$0xff] %v2382_v56  ;;  %v2386_v3 = vadd.f32 %v3594_v10, %v1809_v59  ;;  %v660_v4 = vmax.f32 %v84_v53, 0.0  ;;  %v661_v5 = vmax.f32 %v85_v54, 0.0 }
  0x41   :  { %2959 = vst [vmem:[#allocation7 + $0x160] sm:$0xff] %v2383_v57  ;;  %2960 = vst [vmem:[#allocation7 + $0x168] sm:$0xff] %v2384_v58  ;;  %v662_v6 = vmax.f32 %v86_v55, 0.0  ;;  %v1234_v7 = vmul.f32 %v3589_v1, %v657_v62  ;;  %v1235_v8 = vmul.f32 %v3589_v1, %v658_v63  ;;  %v663_v11 = vmax.f32 %v87_v60, 0.0 }
  0x42   :  { %2961 = vst [vmem:[#allocation7 + $0x170] sm:$0xff] %v2385_v61  ;;  %v1236_v9 = vmul.f32 %v3589_v1, %v659_v0  ;;  %2962 = vst [vmem:[#allocation7 + $0x178] sm:$0xff] %v2386_v3  ;;  %v1237_v12 = vmul.f32 %v3589_v1, %v660_v4  ;;  %v1238_v13 = vmul.f32 %v3589_v1, %v661_v5  ;;  %v664_v15 = vmax.f32 %v88_v2, 0.0  ;;  %v98_v2 = vld [vmem:[#allocation4 + $0x208] sm:$0xff]  ;;  %v99_v3 = vld [vmem:[#allocation4 + $0x210] sm:$0xff] }
  0x43   :  { %v1239_v14 = vmul.f32 %v3589_v1, %v662_v6  ;;  %v1810_v16 = vmul.f32 %v1234_v7, %v657_v62  ;;  %v1811_v17 = vmul.f32 %v1235_v8, %v658_v63  ;;  %v1240_v19 = vmul.f32 %v3589_v1, %v663_v11  ;;  %v100_v8 = vld [vmem:[#allocation4 + $0x218] sm:$0xff] }
  0x44   :  { %v1812_v18 = vmul.f32 %v1236_v9, %v659_v0  ;;  %v1813_v20 = vmul.f32 %v1237_v12, %v660_v4  ;;  %v1814_v21 = vmul.f32 %v1238_v13, %v661_v5  ;;  %v1241_v23 = vmul.f32 %v3589_v1, %v664_v15  ;;  %v97_v0 = vld [vmem:[#allocation4 + $0x200] sm:$0xff] }
  0x45   :  { %v1815_v22 = vmul.f32 %v1239_v14, %v662_v6  ;;  %v2387_v27 = vadd.f32 %v3594_v10, %v1810_v16  ;;  %v2388_v28 = vadd.f32 %v3594_v10, %v1811_v17  ;;  %v1816_v30 = vmul.f32 %v1240_v19, %v663_v11  ;;  %v101_v9 = vld [vmem:[#allocation4 + $0x220] sm:$0xff]  ;;  %v102_v11 = vld [vmem:[#allocation4 + $0x228] sm:$0xff]  ;;  %v103_v16 = vld [vmem:[#allocation4 + $0x230] sm:$0xff] }
  0x46   :  { %v2389_v29 = vadd.f32 %v3594_v10, %v1812_v18  ;;  %v2390_v34 = vadd.f32 %v3594_v10, %v1813_v20  ;;  %v2391_v35 = vadd.f32 %v3594_v10, %v1814_v21  ;;  %v1817_v37 = vmul.f32 %v1241_v23, %v664_v15  ;;  %v104_v21 = vld [vmem:[#allocation4 + $0x238] sm:$0xff] }
  0x47   :  { %v2392_v36 = vadd.f32 %v3594_v10, %v1815_v22  ;;  %2963 = vst [vmem:[#allocation7 + $0x180] sm:$0xff] %v2387_v27  ;;  %2964 = vst [vmem:[#allocation7 + $0x188] sm:$0xff] %v2388_v28  ;;  %v2393_v39 = vadd.f32 %v3594_v10, %v1816_v30  ;;  %v665_v40 = vmax.f32 %v89_v24, 0.0  ;;  %v666_v41 = vmax.f32 %v90_v25, 0.0 }
  0x48   :  { %2965 = vst [vmem:[#allocation7 + $0x190] sm:$0xff] %v2389_v29  ;;  %v667_v42 = vmax.f32 %v91_v26, 0.0  ;;  %2966 = vst [vmem:[#allocation7 + $0x198] sm:$0xff] %v2390_v34  ;;  %v2394_v44 = vadd.f32 %v3594_v10, %v1817_v37  ;;  %v668_v45 = vmax.f32 %v92_v31, 0.0  ;;  %v669_v46 = vmax.f32 %v93_v32, 0.0 }
  0x49   :  { %2967 = vst [vmem:[#allocation7 + $0x1a0] sm:$0xff] %v2391_v35  ;;  %2968 = vst [vmem:[#allocation7 + $0x1a8] sm:$0xff] %v2392_v36  ;;  %v670_v47 = vmax.f32 %v94_v33, 0.0  ;;  %v1242_v48 = vmul.f32 %v3589_v1, %v665_v40  ;;  %v1243_v49 = vmul.f32 %v3589_v1, %v666_v41  ;;  %v671_v51 = vmax.f32 %v95_v38, 0.0 }
  0x4a   :  { %2969 = vst [vmem:[#allocation7 + $0x1b0] sm:$0xff] %v2393_v39  ;;  %v1244_v50 = vmul.f32 %v3589_v1, %v667_v42  ;;  %2970 = vst [vmem:[#allocation7 + $0x1b8] sm:$0xff] %v2394_v44  ;;  %v1245_v52 = vmul.f32 %v3589_v1, %v668_v45  ;;  %v1246_v53 = vmul.f32 %v3589_v1, %v669_v46  ;;  %v672_v55 = vmax.f32 %v96_v43, 0.0  ;;  %v106_v43 = vld [vmem:[#allocation4 + $0x248] sm:$0xff]  ;;  %v107_v44 = vld [vmem:[#allocation4 + $0x250] sm:$0xff] }
  0x4b   :  { %v1247_v54 = vmul.f32 %v3589_v1, %v670_v47  ;;  %v1818_v56 = vmul.f32 %v1242_v48, %v665_v40  ;;  %v1819_v57 = vmul.f32 %v1243_v49, %v666_v41  ;;  %v1248_v59 = vmul.f32 %v3589_v1, %v671_v51  ;;  %v108_v49 = vld [vmem:[#allocation4 + $0x258] sm:$0xff] }
  0x4c   :  { %v1820_v58 = vmul.f32 %v1244_v50, %v667_v42  ;;  %v1821_v60 = vmul.f32 %v1245_v52, %v668_v45  ;;  %v1822_v61 = vmul.f32 %v1246_v53, %v669_v46  ;;  %v1249_v63 = vmul.f32 %v3589_v1, %v672_v55  ;;  %v105_v42 = vld [vmem:[#allocation4 + $0x240] sm:$0xff] }
  0x4d   :  { %v1823_v62 = vmul.f32 %v1247_v54, %v670_v47  ;;  %v2395_v4 = vadd.f32 %v3594_v10, %v1818_v56  ;;  %v2396_v5 = vadd.f32 %v3594_v10, %v1819_v57  ;;  %v1824_v7 = vmul.f32 %v1248_v59, %v671_v51  ;;  %v109_v50 = vld [vmem:[#allocation4 + $0x260] sm:$0xff]  ;;  %v110_v51 = vld [vmem:[#allocation4 + $0x268] sm:$0xff]  ;;  %v111_v56 = vld [vmem:[#allocation4 + $0x270] sm:$0xff] }
  0x4e   :  { %v2397_v6 = vadd.f32 %v3594_v10, %v1820_v58  ;;  %v2398_v12 = vadd.f32 %v3594_v10, %v1821_v60  ;;  %v2399_v13 = vadd.f32 %v3594_v10, %v1822_v61  ;;  %v1825_v15 = vmul.f32 %v1249_v63, %v672_v55  ;;  %v112_v61 = vld [vmem:[#allocation4 + $0x278] sm:$0xff] }
  0x4f   :  { %v2400_v14 = vadd.f32 %v3594_v10, %v1823_v62  ;;  %2971 = vst [vmem:[#allocation7 + $0x1c0] sm:$0xff] %v2395_v4  ;;  %2972 = vst [vmem:[#allocation7 + $0x1c8] sm:$0xff] %v2396_v5  ;;  %v2401_v17 = vadd.f32 %v3594_v10, %v1824_v7  ;;  %v673_v18 = vmax.f32 %v97_v0, 0.0  ;;  %v674_v19 = vmax.f32 %v98_v2, 0.0 }
  0x50   :  { %2973 = vst [vmem:[#allocation7 + $0x1d0] sm:$0xff] %v2397_v6  ;;  %v675_v20 = vmax.f32 %v99_v3, 0.0  ;;  %2974 = vst [vmem:[#allocation7 + $0x1d8] sm:$0xff] %v2398_v12  ;;  %v2402_v22 = vadd.f32 %v3594_v10, %v1825_v15  ;;  %v676_v23 = vmax.f32 %v100_v8, 0.0  ;;  %v677_v24 = vmax.f32 %v101_v9, 0.0 }
  0x51   :  { %2975 = vst [vmem:[#allocation7 + $0x1e0] sm:$0xff] %v2399_v13  ;;  %2976 = vst [vmem:[#allocation7 + $0x1e8] sm:$0xff] %v2400_v14  ;;  %v678_v25 = vmax.f32 %v102_v11, 0.0  ;;  %v1250_v26 = vmul.f32 %v3589_v1, %v673_v18  ;;  %v1251_v27 = vmul.f32 %v3589_v1, %v674_v19  ;;  %v679_v29 = vmax.f32 %v103_v16, 0.0 }
  0x52   :  { %2977 = vst [vmem:[#allocation7 + $0x1f0] sm:$0xff] %v2401_v17  ;;  %v1252_v28 = vmul.f32 %v3589_v1, %v675_v20  ;;  %2978 = vst [vmem:[#allocation7 + $0x1f8] sm:$0xff] %v2402_v22  ;;  %v1253_v30 = vmul.f32 %v3589_v1, %v676_v23  ;;  %v1254_v31 = vmul.f32 %v3589_v1, %v677_v24  ;;  %v680_v33 = vmax.f32 %v104_v21, 0.0  ;;  %v114_v21 = vld [vmem:[#allocation4 + $0x288] sm:$0xff]  ;;  %v115_v22 = vld [vmem:[#allocation4 + $0x290] sm:$0xff] }
  0x53   :  { %v1255_v32 = vmul.f32 %v3589_v1, %v678_v25  ;;  %v1826_v34 = vmul.f32 %v1250_v26, %v673_v18  ;;  %v1827_v35 = vmul.f32 %v1251_v27, %v674_v19  ;;  %v1256_v37 = vmul.f32 %v3589_v1, %v679_v29  ;;  %v116_v27 = vld [vmem:[#allocation4 + $0x298] sm:$0xff] }
  0x54   :  { %v1828_v36 = vmul.f32 %v1252_v28, %v675_v20  ;;  %v1829_v38 = vmul.f32 %v1253_v30, %v676_v23  ;;  %v1830_v39 = vmul.f32 %v1254_v31, %v677_v24  ;;  %v1257_v41 = vmul.f32 %v3589_v1, %v680_v33  ;;  %v113_v20 = vld [vmem:[#allocation4 + $0x280] sm:$0xff] }
  0x55   :  { %v1831_v40 = vmul.f32 %v1255_v32, %v678_v25  ;;  %v2403_v45 = vadd.f32 %v3594_v10, %v1826_v34  ;;  %v2404_v46 = vadd.f32 %v3594_v10, %v1827_v35  ;;  %v1832_v48 = vmul.f32 %v1256_v37, %v679_v29  ;;  %v117_v28 = vld [vmem:[#allocation4 + $0x2a0] sm:$0xff]  ;;  %v118_v29 = vld [vmem:[#allocation4 + $0x2a8] sm:$0xff]  ;;  %v119_v34 = vld [vmem:[#allocation4 + $0x2b0] sm:$0xff] }
  0x56   :  { %v2405_v47 = vadd.f32 %v3594_v10, %v1828_v36  ;;  %v2406_v52 = vadd.f32 %v3594_v10, %v1829_v38  ;;  %v2407_v53 = vadd.f32 %v3594_v10, %v1830_v39  ;;  %v1833_v55 = vmul.f32 %v1257_v41, %v680_v33  ;;  %v120_v39 = vld [vmem:[#allocation4 + $0x2b8] sm:$0xff] }
  0x57   :  { %v2408_v54 = vadd.f32 %v3594_v10, %v1831_v40  ;;  %2979 = vst [vmem:[#allocation7 + $0x200] sm:$0xff] %v2403_v45  ;;  %2980 = vst [vmem:[#allocation7 + $0x208] sm:$0xff] %v2404_v46  ;;  %v2409_v57 = vadd.f32 %v3594_v10, %v1832_v48  ;;  %v681_v58 = vmax.f32 %v105_v42, 0.0  ;;  %v682_v59 = vmax.f32 %v106_v43, 0.0 }
  0x58   :  { %2981 = vst [vmem:[#allocation7 + $0x210] sm:$0xff] %v2405_v47  ;;  %v683_v60 = vmax.f32 %v107_v44, 0.0  ;;  %2982 = vst [vmem:[#allocation7 + $0x218] sm:$0xff] %v2406_v52  ;;  %v2410_v62 = vadd.f32 %v3594_v10, %v1833_v55  ;;  %v684_v63 = vmax.f32 %v108_v49, 0.0  ;;  %v685_v0 = vmax.f32 %v109_v50, 0.0 }
  0x59   :  { %2983 = vst [vmem:[#allocation7 + $0x220] sm:$0xff] %v2407_v53  ;;  %2984 = vst [vmem:[#allocation7 + $0x228] sm:$0xff] %v2408_v54  ;;  %v686_v2 = vmax.f32 %v110_v51, 0.0  ;;  %v1258_v3 = vmul.f32 %v3589_v1, %v681_v58  ;;  %v1259_v4 = vmul.f32 %v3589_v1, %v682_v59  ;;  %v687_v6 = vmax.f32 %v111_v56, 0.0 }
  0x5a   :  { %2985 = vst [vmem:[#allocation7 + $0x230] sm:$0xff] %v2409_v57  ;;  %v1260_v5 = vmul.f32 %v3589_v1, %v683_v60  ;;  %2986 = vst [vmem:[#allocation7 + $0x238] sm:$0xff] %v2410_v62  ;;  %v1261_v7 = vmul.f32 %v3589_v1, %v684_v63  ;;  %v1262_v8 = vmul.f32 %v3589_v1, %v685_v0  ;;  %v688_v11 = vmax.f32 %v112_v61, 0.0  ;;  %v122_v61 = vld [vmem:[#allocation4 + $0x2c8] sm:$0xff]  ;;  %v123_v62 = vld [vmem:[#allocation4 + $0x2d0] sm:$0xff] }
  0x5b   :  { %v1263_v9 = vmul.f32 %v3589_v1, %v686_v2  ;;  %v1834_v12 = vmul.f32 %v1258_v3, %v681_v58  ;;  %v1835_v13 = vmul.f32 %v1259_v4, %v682_v59  ;;  %v1264_v15 = vmul.f32 %v3589_v1, %v687_v6  ;;  %v124_v4 = vld [vmem:[#allocation4 + $0x2d8] sm:$0xff] }
  0x5c   :  { %v1836_v14 = vmul.f32 %v1260_v5, %v683_v60  ;;  %v1837_v16 = vmul.f32 %v1261_v7, %v684_v63  ;;  %v1838_v17 = vmul.f32 %v1262_v8, %v685_v0  ;;  %v1265_v19 = vmul.f32 %v3589_v1, %v688_v11  ;;  %v121_v60 = vld [vmem:[#allocation4 + $0x2c0] sm:$0xff] }
  0x5d   :  { %v1839_v18 = vmul.f32 %v1263_v9, %v686_v2  ;;  %v2411_v23 = vadd.f32 %v3594_v10, %v1834_v12  ;;  %v2412_v24 = vadd.f32 %v3594_v10, %v1835_v13  ;;  %v1840_v26 = vmul.f32 %v1264_v15, %v687_v6  ;;  %v125_v5 = vld [vmem:[#allocation4 + $0x2e0] sm:$0xff]  ;;  %v126_v6 = vld [vmem:[#allocation4 + $0x2e8] sm:$0xff]  ;;  %v127_v12 = vld [vmem:[#allocation4 + $0x2f0] sm:$0xff] }
  0x5e   :  { %v2413_v25 = vadd.f32 %v3594_v10, %v1836_v14  ;;  %v2414_v30 = vadd.f32 %v3594_v10, %v1837_v16  ;;  %v2415_v31 = vadd.f32 %v3594_v10, %v1838_v17  ;;  %v1841_v33 = vmul.f32 %v1265_v19, %v688_v11  ;;  %v128_v17 = vld [vmem:[#allocation4 + $0x2f8] sm:$0xff] }
  0x5f   :  { %v2416_v32 = vadd.f32 %v3594_v10, %v1839_v18  ;;  %2987 = vst [vmem:[#allocation7 + $0x240] sm:$0xff] %v2411_v23  ;;  %2988 = vst [vmem:[#allocation7 + $0x248] sm:$0xff] %v2412_v24  ;;  %v2417_v35 = vadd.f32 %v3594_v10, %v1840_v26  ;;  %v689_v36 = vmax.f32 %v113_v20, 0.0  ;;  %v690_v37 = vmax.f32 %v114_v21, 0.0 }
  0x60   :  { %2989 = vst [vmem:[#allocation7 + $0x250] sm:$0xff] %v2413_v25  ;;  %v691_v38 = vmax.f32 %v115_v22, 0.0  ;;  %2990 = vst [vmem:[#allocation7 + $0x258] sm:$0xff] %v2414_v30  ;;  %v2418_v40 = vadd.f32 %v3594_v10, %v1841_v33  ;;  %v692_v41 = vmax.f32 %v116_v27, 0.0  ;;  %v693_v42 = vmax.f32 %v117_v28, 0.0 }
  0x61   :  { %2991 = vst [vmem:[#allocation7 + $0x260] sm:$0xff] %v2415_v31  ;;  %2992 = vst [vmem:[#allocation7 + $0x268] sm:$0xff] %v2416_v32  ;;  %v694_v43 = vmax.f32 %v118_v29, 0.0  ;;  %v1266_v44 = vmul.f32 %v3589_v1, %v689_v36  ;;  %v1267_v45 = vmul.f32 %v3589_v1, %v690_v37  ;;  %v695_v47 = vmax.f32 %v119_v34, 0.0 }
  0x62   :  { %2993 = vst [vmem:[#allocation7 + $0x270] sm:$0xff] %v2417_v35  ;;  %v1268_v46 = vmul.f32 %v3589_v1, %v691_v38  ;;  %2994 = vst [vmem:[#allocation7 + $0x278] sm:$0xff] %v2418_v40  ;;  %v1269_v48 = vmul.f32 %v3589_v1, %v692_v41  ;;  %v1270_v49 = vmul.f32 %v3589_v1, %v693_v42  ;;  %v696_v51 = vmax.f32 %v120_v39, 0.0  ;;  %v130_v39 = vld [vmem:[#allocation4 + $0x308] sm:$0xff]  ;;  %v131_v40 = vld [vmem:[#allocation4 + $0x310] sm:$0xff] }
  0x63   :  { %v1271_v50 = vmul.f32 %v3589_v1, %v694_v43  ;;  %v1842_v52 = vmul.f32 %v1266_v44, %v689_v36  ;;  %v1843_v53 = vmul.f32 %v1267_v45, %v690_v37  ;;  %v1272_v55 = vmul.f32 %v3589_v1, %v695_v47  ;;  %v132_v45 = vld [vmem:[#allocation4 + $0x318] sm:$0xff] }
  0x64   :  { %v1844_v54 = vmul.f32 %v1268_v46, %v691_v38  ;;  %v1845_v56 = vmul.f32 %v1269_v48, %v692_v41  ;;  %v1846_v57 = vmul.f32 %v1270_v49, %v693_v42  ;;  %v1273_v59 = vmul.f32 %v3589_v1, %v696_v51  ;;  %v129_v38 = vld [vmem:[#allocation4 + $0x300] sm:$0xff] }
  0x65   :  { %v1847_v58 = vmul.f32 %v1271_v50, %v694_v43  ;;  %v2419_v63 = vadd.f32 %v3594_v10, %v1842_v52  ;;  %v2420_v0 = vadd.f32 %v3594_v10, %v1843_v53  ;;  %v1848_v3 = vmul.f32 %v1272_v55, %v695_v47  ;;  %v133_v46 = vld [vmem:[#allocation4 + $0x320] sm:$0xff]  ;;  %v134_v47 = vld [vmem:[#allocation4 + $0x328] sm:$0xff]  ;;  %v135_v52 = vld [vmem:[#allocation4 + $0x330] sm:$0xff] }
  0x66   :  { %v2421_v2 = vadd.f32 %v3594_v10, %v1844_v54  ;;  %v2422_v7 = vadd.f32 %v3594_v10, %v1845_v56  ;;  %v2423_v8 = vadd.f32 %v3594_v10, %v1846_v57  ;;  %v1849_v11 = vmul.f32 %v1273_v59, %v696_v51  ;;  %v136_v57 = vld [vmem:[#allocation4 + $0x338] sm:$0xff] }
  0x67   :  { %v2424_v9 = vadd.f32 %v3594_v10, %v1847_v58  ;;  %2995 = vst [vmem:[#allocation7 + $0x280] sm:$0xff] %v2419_v63  ;;  %2996 = vst [vmem:[#allocation7 + $0x288] sm:$0xff] %v2420_v0  ;;  %v2425_v13 = vadd.f32 %v3594_v10, %v1848_v3  ;;  %v697_v14 = vmax.f32 %v121_v60, 0.0  ;;  %v698_v15 = vmax.f32 %v122_v61, 0.0 }
  0x68   :  { %2997 = vst [vmem:[#allocation7 + $0x290] sm:$0xff] %v2421_v2  ;;  %v699_v16 = vmax.f32 %v123_v62, 0.0  ;;  %2998 = vst [vmem:[#allocation7 + $0x298] sm:$0xff] %v2422_v7  ;;  %v2426_v18 = vadd.f32 %v3594_v10, %v1849_v11  ;;  %v700_v19 = vmax.f32 %v124_v4, 0.0  ;;  %v701_v20 = vmax.f32 %v125_v5, 0.0 }
  0x69   :  { %2999 = vst [vmem:[#allocation7 + $0x2a0] sm:$0xff] %v2423_v8  ;;  %3000 = vst [vmem:[#allocation7 + $0x2a8] sm:$0xff] %v2424_v9  ;;  %v702_v21 = vmax.f32 %v126_v6, 0.0  ;;  %v1274_v22 = vmul.f32 %v3589_v1, %v697_v14  ;;  %v1275_v23 = vmul.f32 %v3589_v1, %v698_v15  ;;  %v703_v25 = vmax.f32 %v127_v12, 0.0 }
  0x6a   :  { %3001 = vst [vmem:[#allocation7 + $0x2b0] sm:$0xff] %v2425_v13  ;;  %v1276_v24 = vmul.f32 %v3589_v1, %v699_v16  ;;  %3002 = vst [vmem:[#allocation7 + $0x2b8] sm:$0xff] %v2426_v18  ;;  %v1277_v26 = vmul.f32 %v3589_v1, %v700_v19  ;;  %v1278_v27 = vmul.f32 %v3589_v1, %v701_v20  ;;  %v704_v29 = vmax.f32 %v128_v17, 0.0  ;;  %v138_v17 = vld [vmem:[#allocation4 + $0x348] sm:$0xff]  ;;  %v139_v18 = vld [vmem:[#allocation4 + $0x350] sm:$0xff] }
  0x6b   :  { %v1279_v28 = vmul.f32 %v3589_v1, %v702_v21  ;;  %v1850_v30 = vmul.f32 %v1274_v22, %v697_v14  ;;  %v1851_v31 = vmul.f32 %v1275_v23, %v698_v15  ;;  %v1280_v33 = vmul.f32 %v3589_v1, %v703_v25  ;;  %v140_v23 = vld [vmem:[#allocation4 + $0x358] sm:$0xff] }
  0x6c   :  { %v1852_v32 = vmul.f32 %v1276_v24, %v699_v16  ;;  %v1853_v34 = vmul.f32 %v1277_v26, %v700_v19  ;;  %v1854_v35 = vmul.f32 %v1278_v27, %v701_v20  ;;  %v1281_v37 = vmul.f32 %v3589_v1, %v704_v29  ;;  %v137_v16 = vld [vmem:[#allocation4 + $0x340] sm:$0xff] }
  0x6d   :  { %v1855_v36 = vmul.f32 %v1279_v28, %v702_v21  ;;  %v2427_v41 = vadd.f32 %v3594_v10, %v1850_v30  ;;  %v2428_v42 = vadd.f32 %v3594_v10, %v1851_v31  ;;  %v1856_v44 = vmul.f32 %v1280_v33, %v703_v25  ;;  %v141_v24 = vld [vmem:[#allocation4 + $0x360] sm:$0xff]  ;;  %v142_v25 = vld [vmem:[#allocation4 + $0x368] sm:$0xff]  ;;  %v143_v30 = vld [vmem:[#allocation4 + $0x370] sm:$0xff] }
  0x6e   :  { %v2429_v43 = vadd.f32 %v3594_v10, %v1852_v32  ;;  %v2430_v48 = vadd.f32 %v3594_v10, %v1853_v34  ;;  %v2431_v49 = vadd.f32 %v3594_v10, %v1854_v35  ;;  %v1857_v51 = vmul.f32 %v1281_v37, %v704_v29  ;;  %v144_v35 = vld [vmem:[#allocation4 + $0x378] sm:$0xff] }
  0x6f   :  { %v2432_v50 = vadd.f32 %v3594_v10, %v1855_v36  ;;  %3003 = vst [vmem:[#allocation7 + $0x2c0] sm:$0xff] %v2427_v41  ;;  %3004 = vst [vmem:[#allocation7 + $0x2c8] sm:$0xff] %v2428_v42  ;;  %v2433_v53 = vadd.f32 %v3594_v10, %v1856_v44  ;;  %v705_v54 = vmax.f32 %v129_v38, 0.0  ;;  %v706_v55 = vmax.f32 %v130_v39, 0.0 }
  0x70   :  { %3005 = vst [vmem:[#allocation7 + $0x2d0] sm:$0xff] %v2429_v43  ;;  %v707_v56 = vmax.f32 %v131_v40, 0.0  ;;  %3006 = vst [vmem:[#allocation7 + $0x2d8] sm:$0xff] %v2430_v48  ;;  %v2434_v58 = vadd.f32 %v3594_v10, %v1857_v51  ;;  %v708_v59 = vmax.f32 %v132_v45, 0.0  ;;  %v709_v60 = vmax.f32 %v133_v46, 0.0 }
  0x71   :  { %3007 = vst [vmem:[#allocation7 + $0x2e0] sm:$0xff] %v2431_v49  ;;  %3008 = vst [vmem:[#allocation7 + $0x2e8] sm:$0xff] %v2432_v50  ;;  %v710_v61 = vmax.f32 %v134_v47, 0.0  ;;  %v1282_v62 = vmul.f32 %v3589_v1, %v705_v54  ;;  %v1283_v63 = vmul.f32 %v3589_v1, %v706_v55  ;;  %v711_v2 = vmax.f32 %v135_v52, 0.0 }
  0x72   :  { %3009 = vst [vmem:[#allocation7 + $0x2f0] sm:$0xff] %v2433_v53  ;;  %v1284_v0 = vmul.f32 %v3589_v1, %v707_v56  ;;  %3010 = vst [vmem:[#allocation7 + $0x2f8] sm:$0xff] %v2434_v58  ;;  %v1285_v3 = vmul.f32 %v3589_v1, %v708_v59  ;;  %v1286_v4 = vmul.f32 %v3589_v1, %v709_v60  ;;  %v712_v6 = vmax.f32 %v136_v57, 0.0  ;;  %v146_v57 = vld [vmem:[#allocation4 + $0x388] sm:$0xff]  ;;  %v147_v58 = vld [vmem:[#allocation4 + $0x390] sm:$0xff] }
  0x73   :  { %v1287_v5 = vmul.f32 %v3589_v1, %v710_v61  ;;  %v1858_v7 = vmul.f32 %v1282_v62, %v705_v54  ;;  %v1859_v8 = vmul.f32 %v1283_v63, %v706_v55  ;;  %v1288_v11 = vmul.f32 %v3589_v1, %v711_v2  ;;  %v148_v63 = vld [vmem:[#allocation4 + $0x398] sm:$0xff] }
  0x74   :  { %v1860_v9 = vmul.f32 %v1284_v0, %v707_v56  ;;  %v1861_v12 = vmul.f32 %v1285_v3, %v708_v59  ;;  %v1862_v13 = vmul.f32 %v1286_v4, %v709_v60  ;;  %v1289_v15 = vmul.f32 %v3589_v1, %v712_v6  ;;  %v145_v56 = vld [vmem:[#allocation4 + $0x380] sm:$0xff] }
  0x75   :  { %v1863_v14 = vmul.f32 %v1287_v5, %v710_v61  ;;  %v2435_v19 = vadd.f32 %v3594_v10, %v1858_v7  ;;  %v2436_v20 = vadd.f32 %v3594_v10, %v1859_v8  ;;  %v1864_v22 = vmul.f32 %v1288_v11, %v711_v2  ;;  %v149_v0 = vld [vmem:[#allocation4 + $0x3a0] sm:$0xff]  ;;  %v150_v2 = vld [vmem:[#allocation4 + $0x3a8] sm:$0xff]  ;;  %v151_v7 = vld [vmem:[#allocation4 + $0x3b0] sm:$0xff] }
  0x76   :  { %v2437_v21 = vadd.f32 %v3594_v10, %v1860_v9  ;;  %v2438_v26 = vadd.f32 %v3594_v10, %v1861_v12  ;;  %v2439_v27 = vadd.f32 %v3594_v10, %v1862_v13  ;;  %v1865_v29 = vmul.f32 %v1289_v15, %v712_v6  ;;  %v152_v13 = vld [vmem:[#allocation4 + $0x3b8] sm:$0xff] }
  0x77   :  { %v2440_v28 = vadd.f32 %v3594_v10, %v1863_v14  ;;  %3011 = vst [vmem:[#allocation7 + $0x300] sm:$0xff] %v2435_v19  ;;  %3012 = vst [vmem:[#allocation7 + $0x308] sm:$0xff] %v2436_v20  ;;  %v2441_v31 = vadd.f32 %v3594_v10, %v1864_v22  ;;  %v713_v32 = vmax.f32 %v137_v16, 0.0  ;;  %v714_v33 = vmax.f32 %v138_v17, 0.0 }
  0x78   :  { %3013 = vst [vmem:[#allocation7 + $0x310] sm:$0xff] %v2437_v21  ;;  %v715_v34 = vmax.f32 %v139_v18, 0.0  ;;  %3014 = vst [vmem:[#allocation7 + $0x318] sm:$0xff] %v2438_v26  ;;  %v2442_v36 = vadd.f32 %v3594_v10, %v1865_v29  ;;  %v716_v37 = vmax.f32 %v140_v23, 0.0  ;;  %v717_v38 = vmax.f32 %v141_v24, 0.0 }
  0x79   :  { %3015 = vst [vmem:[#allocation7 + $0x320] sm:$0xff] %v2439_v27  ;;  %3016 = vst [vmem:[#allocation7 + $0x328] sm:$0xff] %v2440_v28  ;;  %v718_v39 = vmax.f32 %v142_v25, 0.0  ;;  %v1290_v40 = vmul.f32 %v3589_v1, %v713_v32  ;;  %v1291_v41 = vmul.f32 %v3589_v1, %v714_v33  ;;  %v719_v43 = vmax.f32 %v143_v30, 0.0 }
  0x7a   :  { %3017 = vst [vmem:[#allocation7 + $0x330] sm:$0xff] %v2441_v31  ;;  %v1292_v42 = vmul.f32 %v3589_v1, %v715_v34  ;;  %3018 = vst [vmem:[#allocation7 + $0x338] sm:$0xff] %v2442_v36  ;;  %v1293_v44 = vmul.f32 %v3589_v1, %v716_v37  ;;  %v1294_v45 = vmul.f32 %v3589_v1, %v717_v38  ;;  %v720_v47 = vmax.f32 %v144_v35, 0.0  ;;  %v154_v35 = vld [vmem:[#allocation4 + $0x3c8] sm:$0xff]  ;;  %v155_v36 = vld [vmem:[#allocation4 + $0x3d0] sm:$0xff] }
  0x7b   :  { %v1295_v46 = vmul.f32 %v3589_v1, %v718_v39  ;;  %v1866_v48 = vmul.f32 %v1290_v40, %v713_v32  ;;  %v1867_v49 = vmul.f32 %v1291_v41, %v714_v33  ;;  %v1296_v51 = vmul.f32 %v3589_v1, %v719_v43  ;;  %v156_v41 = vld [vmem:[#allocation4 + $0x3d8] sm:$0xff] }
  0x7c   :  { %v1868_v50 = vmul.f32 %v1292_v42, %v715_v34  ;;  %v1869_v52 = vmul.f32 %v1293_v44, %v716_v37  ;;  %v1870_v53 = vmul.f32 %v1294_v45, %v717_v38  ;;  %v1297_v55 = vmul.f32 %v3589_v1, %v720_v47  ;;  %v153_v34 = vld [vmem:[#allocation4 + $0x3c0] sm:$0xff] }
  0x7d   :  { %v1871_v54 = vmul.f32 %v1295_v46, %v718_v39  ;;  %v2443_v59 = vadd.f32 %v3594_v10, %v1866_v48  ;;  %v2444_v60 = vadd.f32 %v3594_v10, %v1867_v49  ;;  %v1872_v62 = vmul.f32 %v1296_v51, %v719_v43  ;;  %v157_v42 = vld [vmem:[#allocation4 + $0x3e0] sm:$0xff]  ;;  %v158_v43 = vld [vmem:[#allocation4 + $0x3e8] sm:$0xff]  ;;  %v159_v48 = vld [vmem:[#allocation4 + $0x3f0] sm:$0xff] }
  0x7e   :  { %v2445_v61 = vadd.f32 %v3594_v10, %v1868_v50  ;;  %v2446_v3 = vadd.f32 %v3594_v10, %v1869_v52  ;;  %v2447_v4 = vadd.f32 %v3594_v10, %v1870_v53  ;;  %v1873_v6 = vmul.f32 %v1297_v55, %v720_v47  ;;  %v160_v53 = vld [vmem:[#allocation4 + $0x3f8] sm:$0xff] }
  0x7f   :  { %v2448_v5 = vadd.f32 %v3594_v10, %v1871_v54  ;;  %3019 = vst [vmem:[#allocation7 + $0x340] sm:$0xff] %v2443_v59  ;;  %3020 = vst [vmem:[#allocation7 + $0x348] sm:$0xff] %v2444_v60  ;;  %v2449_v8 = vadd.f32 %v3594_v10, %v1872_v62  ;;  %v721_v9 = vmax.f32 %v145_v56, 0.0  ;;  %v722_v11 = vmax.f32 %v146_v57, 0.0 }
  0x80   :  { %3021 = vst [vmem:[#allocation7 + $0x350] sm:$0xff] %v2445_v61  ;;  %v723_v12 = vmax.f32 %v147_v58, 0.0  ;;  %3022 = vst [vmem:[#allocation7 + $0x358] sm:$0xff] %v2446_v3  ;;  %v2450_v14 = vadd.f32 %v3594_v10, %v1873_v6  ;;  %v724_v15 = vmax.f32 %v148_v63, 0.0  ;;  %v725_v16 = vmax.f32 %v149_v0, 0.0 }
  0x81   :  { %3023 = vst [vmem:[#allocation7 + $0x360] sm:$0xff] %v2447_v4  ;;  %3024 = vst [vmem:[#allocation7 + $0x368] sm:$0xff] %v2448_v5  ;;  %v726_v17 = vmax.f32 %v150_v2, 0.0  ;;  %v1298_v18 = vmul.f32 %v3589_v1, %v721_v9  ;;  %v1299_v19 = vmul.f32 %v3589_v1, %v722_v11  ;;  %v727_v21 = vmax.f32 %v151_v7, 0.0 }
  0x82   :  { %3025 = vst [vmem:[#allocation7 + $0x370] sm:$0xff] %v2449_v8  ;;  %v1300_v20 = vmul.f32 %v3589_v1, %v723_v12  ;;  %3026 = vst [vmem:[#allocation7 + $0x378] sm:$0xff] %v2450_v14  ;;  %v1301_v22 = vmul.f32 %v3589_v1, %v724_v15  ;;  %v1302_v23 = vmul.f32 %v3589_v1, %v725_v16  ;;  %v728_v25 = vmax.f32 %v152_v13, 0.0  ;;  %v162_v13 = vld [vmem:[#allocation4 + $0x408] sm:$0xff]  ;;  %v163_v14 = vld [vmem:[#allocation4 + $0x410] sm:$0xff] }
  0x83   :  { %v1303_v24 = vmul.f32 %v3589_v1, %v726_v17  ;;  %v1874_v26 = vmul.f32 %v1298_v18, %v721_v9  ;;  %v1875_v27 = vmul.f32 %v1299_v19, %v722_v11  ;;  %v1304_v29 = vmul.f32 %v3589_v1, %v727_v21  ;;  %v164_v19 = vld [vmem:[#allocation4 + $0x418] sm:$0xff] }
  0x84   :  { %v1876_v28 = vmul.f32 %v1300_v20, %v723_v12  ;;  %v1877_v30 = vmul.f32 %v1301_v22, %v724_v15  ;;  %v1878_v31 = vmul.f32 %v1302_v23, %v725_v16  ;;  %v1305_v33 = vmul.f32 %v3589_v1, %v728_v25  ;;  %v161_v12 = vld [vmem:[#allocation4 + $0x400] sm:$0xff] }
  0x85   :  { %v1879_v32 = vmul.f32 %v1303_v24, %v726_v17  ;;  %v2451_v37 = vadd.f32 %v3594_v10, %v1874_v26  ;;  %v2452_v38 = vadd.f32 %v3594_v10, %v1875_v27  ;;  %v1880_v40 = vmul.f32 %v1304_v29, %v727_v21  ;;  %v165_v20 = vld [vmem:[#allocation4 + $0x420] sm:$0xff]  ;;  %v166_v21 = vld [vmem:[#allocation4 + $0x428] sm:$0xff]  ;;  %v167_v26 = vld [vmem:[#allocation4 + $0x430] sm:$0xff] }
  0x86   :  { %v2453_v39 = vadd.f32 %v3594_v10, %v1876_v28  ;;  %v2454_v44 = vadd.f32 %v3594_v10, %v1877_v30  ;;  %v2455_v45 = vadd.f32 %v3594_v10, %v1878_v31  ;;  %v1881_v47 = vmul.f32 %v1305_v33, %v728_v25  ;;  %v168_v31 = vld [vmem:[#allocation4 + $0x438] sm:$0xff] }
  0x87   :  { %v2456_v46 = vadd.f32 %v3594_v10, %v1879_v32  ;;  %3027 = vst [vmem:[#allocation7 + $0x380] sm:$0xff] %v2451_v37  ;;  %3028 = vst [vmem:[#allocation7 + $0x388] sm:$0xff] %v2452_v38  ;;  %v2457_v49 = vadd.f32 %v3594_v10, %v1880_v40  ;;  %v729_v50 = vmax.f32 %v153_v34, 0.0  ;;  %v730_v51 = vmax.f32 %v154_v35, 0.0 }
  0x88   :  { %3029 = vst [vmem:[#allocation7 + $0x390] sm:$0xff] %v2453_v39  ;;  %v731_v52 = vmax.f32 %v155_v36, 0.0  ;;  %3030 = vst [vmem:[#allocation7 + $0x398] sm:$0xff] %v2454_v44  ;;  %v2458_v54 = vadd.f32 %v3594_v10, %v1881_v47  ;;  %v732_v55 = vmax.f32 %v156_v41, 0.0  ;;  %v733_v56 = vmax.f32 %v157_v42, 0.0 }
  0x89   :  { %3031 = vst [vmem:[#allocation7 + $0x3a0] sm:$0xff] %v2455_v45  ;;  %3032 = vst [vmem:[#allocation7 + $0x3a8] sm:$0xff] %v2456_v46  ;;  %v734_v57 = vmax.f32 %v158_v43, 0.0  ;;  %v1306_v58 = vmul.f32 %v3589_v1, %v729_v50  ;;  %v1307_v59 = vmul.f32 %v3589_v1, %v730_v51  ;;  %v735_v61 = vmax.f32 %v159_v48, 0.0 }
  0x8a   :  { %3033 = vst [vmem:[#allocation7 + $0x3b0] sm:$0xff] %v2457_v49  ;;  %v1308_v60 = vmul.f32 %v3589_v1, %v731_v52  ;;  %3034 = vst [vmem:[#allocation7 + $0x3b8] sm:$0xff] %v2458_v54  ;;  %v1309_v62 = vmul.f32 %v3589_v1, %v732_v55  ;;  %v1310_v63 = vmul.f32 %v3589_v1, %v733_v56  ;;  %v736_v2 = vmax.f32 %v160_v53, 0.0  ;;  %v170_v53 = vld [vmem:[#allocation4 + $0x448] sm:$0xff]  ;;  %v171_v54 = vld [vmem:[#allocation4 + $0x450] sm:$0xff] }
  0x8b   :  { %v1311_v0 = vmul.f32 %v3589_v1, %v734_v57  ;;  %v1882_v3 = vmul.f32 %v1306_v58, %v729_v50  ;;  %v1883_v4 = vmul.f32 %v1307_v59, %v730_v51  ;;  %v1312_v6 = vmul.f32 %v3589_v1, %v735_v61  ;;  %v172_v59 = vld [vmem:[#allocation4 + $0x458] sm:$0xff] }
  0x8c   :  { %v1884_v5 = vmul.f32 %v1308_v60, %v731_v52  ;;  %v1885_v7 = vmul.f32 %v1309_v62, %v732_v55  ;;  %v1886_v8 = vmul.f32 %v1310_v63, %v733_v56  ;;  %v1313_v11 = vmul.f32 %v3589_v1, %v736_v2  ;;  %v169_v52 = vld [vmem:[#allocation4 + $0x440] sm:$0xff] }
  0x8d   :  { %v1887_v9 = vmul.f32 %v1311_v0, %v734_v57  ;;  %v2459_v15 = vadd.f32 %v3594_v10, %v1882_v3  ;;  %v2460_v16 = vadd.f32 %v3594_v10, %v1883_v4  ;;  %v1888_v18 = vmul.f32 %v1312_v6, %v735_v61  ;;  %v173_v60 = vld [vmem:[#allocation4 + $0x460] sm:$0xff]  ;;  %v174_v61 = vld [vmem:[#allocation4 + $0x468] sm:$0xff]  ;;  %v175_v3 = vld [vmem:[#allocation4 + $0x470] sm:$0xff] }
  0x8e   :  { %v2461_v17 = vadd.f32 %v3594_v10, %v1884_v5  ;;  %v2462_v22 = vadd.f32 %v3594_v10, %v1885_v7  ;;  %v2463_v23 = vadd.f32 %v3594_v10, %v1886_v8  ;;  %v1889_v25 = vmul.f32 %v1313_v11, %v736_v2  ;;  %v176_v8 = vld [vmem:[#allocation4 + $0x478] sm:$0xff] }
  0x8f   :  { %v2464_v24 = vadd.f32 %v3594_v10, %v1887_v9  ;;  %3035 = vst [vmem:[#allocation7 + $0x3c0] sm:$0xff] %v2459_v15  ;;  %3036 = vst [vmem:[#allocation7 + $0x3c8] sm:$0xff] %v2460_v16  ;;  %v2465_v27 = vadd.f32 %v3594_v10, %v1888_v18  ;;  %v737_v28 = vmax.f32 %v161_v12, 0.0  ;;  %v738_v29 = vmax.f32 %v162_v13, 0.0 }
  0x90   :  { %3037 = vst [vmem:[#allocation7 + $0x3d0] sm:$0xff] %v2461_v17  ;;  %v739_v30 = vmax.f32 %v163_v14, 0.0  ;;  %3038 = vst [vmem:[#allocation7 + $0x3d8] sm:$0xff] %v2462_v22  ;;  %v2466_v32 = vadd.f32 %v3594_v10, %v1889_v25  ;;  %v740_v33 = vmax.f32 %v164_v19, 0.0  ;;  %v741_v34 = vmax.f32 %v165_v20, 0.0 }
  0x91   :  { %3039 = vst [vmem:[#allocation7 + $0x3e0] sm:$0xff] %v2463_v23  ;;  %3040 = vst [vmem:[#allocation7 + $0x3e8] sm:$0xff] %v2464_v24  ;;  %v742_v35 = vmax.f32 %v166_v21, 0.0  ;;  %v1314_v36 = vmul.f32 %v3589_v1, %v737_v28  ;;  %v1315_v37 = vmul.f32 %v3589_v1, %v738_v29  ;;  %v743_v39 = vmax.f32 %v167_v26, 0.0 }
  0x92   :  { %3041 = vst [vmem:[#allocation7 + $0x3f0] sm:$0xff] %v2465_v27  ;;  %v1316_v38 = vmul.f32 %v3589_v1, %v739_v30  ;;  %3042 = vst [vmem:[#allocation7 + $0x3f8] sm:$0xff] %v2466_v32  ;;  %v1317_v40 = vmul.f32 %v3589_v1, %v740_v33  ;;  %v1318_v41 = vmul.f32 %v3589_v1, %v741_v34  ;;  %v744_v43 = vmax.f32 %v168_v31, 0.0  ;;  %v178_v31 = vld [vmem:[#allocation4 + $0x488] sm:$0xff]  ;;  %v179_v32 = vld [vmem:[#allocation4 + $0x490] sm:$0xff] }
  0x93   :  { %v1319_v42 = vmul.f32 %v3589_v1, %v742_v35  ;;  %v1890_v44 = vmul.f32 %v1314_v36, %v737_v28  ;;  %v1891_v45 = vmul.f32 %v1315_v37, %v738_v29  ;;  %v1320_v47 = vmul.f32 %v3589_v1, %v743_v39  ;;  %v180_v37 = vld [vmem:[#allocation4 + $0x498] sm:$0xff] }
  0x94   :  { %v1892_v46 = vmul.f32 %v1316_v38, %v739_v30  ;;  %v1893_v48 = vmul.f32 %v1317_v40, %v740_v33  ;;  %v1894_v49 = vmul.f32 %v1318_v41, %v741_v34  ;;  %v1321_v51 = vmul.f32 %v3589_v1, %v744_v43  ;;  %v177_v30 = vld [vmem:[#allocation4 + $0x480] sm:$0xff] }
  0x95   :  { %v1895_v50 = vmul.f32 %v1319_v42, %v742_v35  ;;  %v2467_v55 = vadd.f32 %v3594_v10, %v1890_v44  ;;  %v2468_v56 = vadd.f32 %v3594_v10, %v1891_v45  ;;  %v1896_v58 = vmul.f32 %v1320_v47, %v743_v39  ;;  %v181_v38 = vld [vmem:[#allocation4 + $0x4a0] sm:$0xff]  ;;  %v182_v39 = vld [vmem:[#allocation4 + $0x4a8] sm:$0xff]  ;;  %v183_v44 = vld [vmem:[#allocation4 + $0x4b0] sm:$0xff] }
  0x96   :  { %v2469_v57 = vadd.f32 %v3594_v10, %v1892_v46  ;;  %v2470_v62 = vadd.f32 %v3594_v10, %v1893_v48  ;;  %v2471_v63 = vadd.f32 %v3594_v10, %v1894_v49  ;;  %v1897_v2 = vmul.f32 %v1321_v51, %v744_v43  ;;  %v184_v49 = vld [vmem:[#allocation4 + $0x4b8] sm:$0xff] }
  0x97   :  { %v2472_v0 = vadd.f32 %v3594_v10, %v1895_v50  ;;  %3043 = vst [vmem:[#allocation7 + $0x400] sm:$0xff] %v2467_v55  ;;  %3044 = vst [vmem:[#allocation7 + $0x408] sm:$0xff] %v2468_v56  ;;  %v2473_v4 = vadd.f32 %v3594_v10, %v1896_v58  ;;  %v745_v5 = vmax.f32 %v169_v52, 0.0  ;;  %v746_v6 = vmax.f32 %v170_v53, 0.0 }
  0x98   :  { %3045 = vst [vmem:[#allocation7 + $0x410] sm:$0xff] %v2469_v57  ;;  %v747_v7 = vmax.f32 %v171_v54, 0.0  ;;  %3046 = vst [vmem:[#allocation7 + $0x418] sm:$0xff] %v2470_v62  ;;  %v2474_v9 = vadd.f32 %v3594_v10, %v1897_v2  ;;  %v748_v11 = vmax.f32 %v172_v59, 0.0  ;;  %v749_v12 = vmax.f32 %v173_v60, 0.0 }
  0x99   :  { %3047 = vst [vmem:[#allocation7 + $0x420] sm:$0xff] %v2471_v63  ;;  %3048 = vst [vmem:[#allocation7 + $0x428] sm:$0xff] %v2472_v0  ;;  %v750_v13 = vmax.f32 %v174_v61, 0.0  ;;  %v1322_v14 = vmul.f32 %v3589_v1, %v745_v5  ;;  %v1323_v15 = vmul.f32 %v3589_v1, %v746_v6  ;;  %v751_v17 = vmax.f32 %v175_v3, 0.0 }
  0x9a   :  { %3049 = vst [vmem:[#allocation7 + $0x430] sm:$0xff] %v2473_v4  ;;  %v1324_v16 = vmul.f32 %v3589_v1, %v747_v7  ;;  %3050 = vst [vmem:[#allocation7 + $0x438] sm:$0xff] %v2474_v9  ;;  %v1325_v18 = vmul.f32 %v3589_v1, %v748_v11  ;;  %v1326_v19 = vmul.f32 %v3589_v1, %v749_v12  ;;  %v752_v21 = vmax.f32 %v176_v8, 0.0  ;;  %v186_v8 = vld [vmem:[#allocation4 + $0x4c8] sm:$0xff]  ;;  %v187_v9 = vld [vmem:[#allocation4 + $0x4d0] sm:$0xff] }
  0x9b   :  { %v1327_v20 = vmul.f32 %v3589_v1, %v750_v13  ;;  %v1898_v22 = vmul.f32 %v1322_v14, %v745_v5  ;;  %v1899_v23 = vmul.f32 %v1323_v15, %v746_v6  ;;  %v1328_v25 = vmul.f32 %v3589_v1, %v751_v17  ;;  %v188_v15 = vld [vmem:[#allocation4 + $0x4d8] sm:$0xff] }
  0x9c   :  { %v1900_v24 = vmul.f32 %v1324_v16, %v747_v7  ;;  %v1901_v26 = vmul.f32 %v1325_v18, %v748_v11  ;;  %v1902_v27 = vmul.f32 %v1326_v19, %v749_v12  ;;  %v1329_v29 = vmul.f32 %v3589_v1, %v752_v21  ;;  %v185_v7 = vld [vmem:[#allocation4 + $0x4c0] sm:$0xff] }
  0x9d   :  { %v1903_v28 = vmul.f32 %v1327_v20, %v750_v13  ;;  %v2475_v33 = vadd.f32 %v3594_v10, %v1898_v22  ;;  %v2476_v34 = vadd.f32 %v3594_v10, %v1899_v23  ;;  %v1904_v36 = vmul.f32 %v1328_v25, %v751_v17  ;;  %v189_v16 = vld [vmem:[#allocation4 + $0x4e0] sm:$0xff]  ;;  %v190_v17 = vld [vmem:[#allocation4 + $0x4e8] sm:$0xff]  ;;  %v191_v22 = vld [vmem:[#allocation4 + $0x4f0] sm:$0xff] }
  0x9e   :  { %v2477_v35 = vadd.f32 %v3594_v10, %v1900_v24  ;;  %v2478_v40 = vadd.f32 %v3594_v10, %v1901_v26  ;;  %v2479_v41 = vadd.f32 %v3594_v10, %v1902_v27  ;;  %v1905_v43 = vmul.f32 %v1329_v29, %v752_v21  ;;  %v192_v27 = vld [vmem:[#allocation4 + $0x4f8] sm:$0xff] }
  0x9f   :  { %v2480_v42 = vadd.f32 %v3594_v10, %v1903_v28  ;;  %3051 = vst [vmem:[#allocation7 + $0x440] sm:$0xff] %v2475_v33  ;;  %3052 = vst [vmem:[#allocation7 + $0x448] sm:$0xff] %v2476_v34  ;;  %v2481_v45 = vadd.f32 %v3594_v10, %v1904_v36  ;;  %v753_v46 = vmax.f32 %v177_v30, 0.0  ;;  %v754_v47 = vmax.f32 %v178_v31, 0.0 }
  0xa0   :  { %3053 = vst [vmem:[#allocation7 + $0x450] sm:$0xff] %v2477_v35  ;;  %v755_v48 = vmax.f32 %v179_v32, 0.0  ;;  %3054 = vst [vmem:[#allocation7 + $0x458] sm:$0xff] %v2478_v40  ;;  %v2482_v50 = vadd.f32 %v3594_v10, %v1905_v43  ;;  %v756_v51 = vmax.f32 %v180_v37, 0.0  ;;  %v757_v52 = vmax.f32 %v181_v38, 0.0 }
  0xa1   :  { %3055 = vst [vmem:[#allocation7 + $0x460] sm:$0xff] %v2479_v41  ;;  %3056 = vst [vmem:[#allocation7 + $0x468] sm:$0xff] %v2480_v42  ;;  %v758_v53 = vmax.f32 %v182_v39, 0.0  ;;  %v1330_v54 = vmul.f32 %v3589_v1, %v753_v46  ;;  %v1331_v55 = vmul.f32 %v3589_v1, %v754_v47  ;;  %v759_v57 = vmax.f32 %v183_v44, 0.0 }
  0xa2   :  { %3057 = vst [vmem:[#allocation7 + $0x470] sm:$0xff] %v2481_v45  ;;  %v1332_v56 = vmul.f32 %v3589_v1, %v755_v48  ;;  %3058 = vst [vmem:[#allocation7 + $0x478] sm:$0xff] %v2482_v50  ;;  %v1333_v58 = vmul.f32 %v3589_v1, %v756_v51  ;;  %v1334_v59 = vmul.f32 %v3589_v1, %v757_v52  ;;  %v760_v61 = vmax.f32 %v184_v49, 0.0  ;;  %v194_v49 = vld [vmem:[#allocation4 + $0x508] sm:$0xff]  ;;  %v195_v50 = vld [vmem:[#allocation4 + $0x510] sm:$0xff] }
  0xa3   :  { %v1335_v60 = vmul.f32 %v3589_v1, %v758_v53  ;;  %v1906_v62 = vmul.f32 %v1330_v54, %v753_v46  ;;  %v1907_v63 = vmul.f32 %v1331_v55, %v754_v47  ;;  %v1336_v2 = vmul.f32 %v3589_v1, %v759_v57  ;;  %v196_v55 = vld [vmem:[#allocation4 + $0x518] sm:$0xff] }
  0xa4   :  { %v1908_v0 = vmul.f32 %v1332_v56, %v755_v48  ;;  %v1909_v3 = vmul.f32 %v1333_v58, %v756_v51  ;;  %v1910_v4 = vmul.f32 %v1334_v59, %v757_v52  ;;  %v1337_v6 = vmul.f32 %v3589_v1, %v760_v61  ;;  %v193_v48 = vld [vmem:[#allocation4 + $0x500] sm:$0xff] }
  0xa5   :  { %v1911_v5 = vmul.f32 %v1335_v60, %v758_v53  ;;  %v2483_v11 = vadd.f32 %v3594_v10, %v1906_v62  ;;  %v2484_v12 = vadd.f32 %v3594_v10, %v1907_v63  ;;  %v1912_v14 = vmul.f32 %v1336_v2, %v759_v57  ;;  %v197_v56 = vld [vmem:[#allocation4 + $0x520] sm:$0xff]  ;;  %v198_v57 = vld [vmem:[#allocation4 + $0x528] sm:$0xff]  ;;  %v199_v62 = vld [vmem:[#allocation4 + $0x530] sm:$0xff] }
  0xa6   :  { %v2485_v13 = vadd.f32 %v3594_v10, %v1908_v0  ;;  %v2486_v18 = vadd.f32 %v3594_v10, %v1909_v3  ;;  %v2487_v19 = vadd.f32 %v3594_v10, %v1910_v4  ;;  %v1913_v21 = vmul.f32 %v1337_v6, %v760_v61  ;;  %v200_v4 = vld [vmem:[#allocation4 + $0x538] sm:$0xff] }
  0xa7   :  { %v2488_v20 = vadd.f32 %v3594_v10, %v1911_v5  ;;  %3059 = vst [vmem:[#allocation7 + $0x480] sm:$0xff] %v2483_v11  ;;  %3060 = vst [vmem:[#allocation7 + $0x488] sm:$0xff] %v2484_v12  ;;  %v2489_v23 = vadd.f32 %v3594_v10, %v1912_v14  ;;  %v761_v24 = vmax.f32 %v185_v7, 0.0  ;;  %v762_v25 = vmax.f32 %v186_v8, 0.0 }
  0xa8   :  { %3061 = vst [vmem:[#allocation7 + $0x490] sm:$0xff] %v2485_v13  ;;  %v763_v26 = vmax.f32 %v187_v9, 0.0  ;;  %3062 = vst [vmem:[#allocation7 + $0x498] sm:$0xff] %v2486_v18  ;;  %v2490_v28 = vadd.f32 %v3594_v10, %v1913_v21  ;;  %v764_v29 = vmax.f32 %v188_v15, 0.0  ;;  %v765_v30 = vmax.f32 %v189_v16, 0.0 }
  0xa9   :  { %3063 = vst [vmem:[#allocation7 + $0x4a0] sm:$0xff] %v2487_v19  ;;  %3064 = vst [vmem:[#allocation7 + $0x4a8] sm:$0xff] %v2488_v20  ;;  %v766_v31 = vmax.f32 %v190_v17, 0.0  ;;  %v1338_v32 = vmul.f32 %v3589_v1, %v761_v24  ;;  %v1339_v33 = vmul.f32 %v3589_v1, %v762_v25  ;;  %v767_v35 = vmax.f32 %v191_v22, 0.0 }
  0xaa   :  { %3065 = vst [vmem:[#allocation7 + $0x4b0] sm:$0xff] %v2489_v23  ;;  %v1340_v34 = vmul.f32 %v3589_v1, %v763_v26  ;;  %3066 = vst [vmem:[#allocation7 + $0x4b8] sm:$0xff] %v2490_v28  ;;  %v1341_v36 = vmul.f32 %v3589_v1, %v764_v29  ;;  %v1342_v37 = vmul.f32 %v3589_v1, %v765_v30  ;;  %v768_v39 = vmax.f32 %v192_v27, 0.0  ;;  %v202_v27 = vld [vmem:[#allocation4 + $0x548] sm:$0xff]  ;;  %v203_v28 = vld [vmem:[#allocation4 + $0x550] sm:$0xff] }
  0xab   :  { %v1343_v38 = vmul.f32 %v3589_v1, %v766_v31  ;;  %v1914_v40 = vmul.f32 %v1338_v32, %v761_v24  ;;  %v1915_v41 = vmul.f32 %v1339_v33, %v762_v25  ;;  %v1344_v43 = vmul.f32 %v3589_v1, %v767_v35  ;;  %v204_v33 = vld [vmem:[#allocation4 + $0x558] sm:$0xff] }
  0xac   :  { %v1916_v42 = vmul.f32 %v1340_v34, %v763_v26  ;;  %v1917_v44 = vmul.f32 %v1341_v36, %v764_v29  ;;  %v1918_v45 = vmul.f32 %v1342_v37, %v765_v30  ;;  %v1345_v47 = vmul.f32 %v3589_v1, %v768_v39  ;;  %v201_v26 = vld [vmem:[#allocation4 + $0x540] sm:$0xff] }
  0xad   :  { %v1919_v46 = vmul.f32 %v1343_v38, %v766_v31  ;;  %v2491_v51 = vadd.f32 %v3594_v10, %v1914_v40  ;;  %v2492_v52 = vadd.f32 %v3594_v10, %v1915_v41  ;;  %v1920_v54 = vmul.f32 %v1344_v43, %v767_v35  ;;  %v205_v34 = vld [vmem:[#allocation4 + $0x560] sm:$0xff]  ;;  %v206_v35 = vld [vmem:[#allocation4 + $0x568] sm:$0xff]  ;;  %v207_v40 = vld [vmem:[#allocation4 + $0x570] sm:$0xff] }
  0xae   :  { %v2493_v53 = vadd.f32 %v3594_v10, %v1916_v42  ;;  %v2494_v58 = vadd.f32 %v3594_v10, %v1917_v44  ;;  %v2495_v59 = vadd.f32 %v3594_v10, %v1918_v45  ;;  %v1921_v61 = vmul.f32 %v1345_v47, %v768_v39  ;;  %v208_v45 = vld [vmem:[#allocation4 + $0x578] sm:$0xff] }
  0xaf   :  { %v2496_v60 = vadd.f32 %v3594_v10, %v1919_v46  ;;  %3067 = vst [vmem:[#allocation7 + $0x4c0] sm:$0xff] %v2491_v51  ;;  %3068 = vst [vmem:[#allocation7 + $0x4c8] sm:$0xff] %v2492_v52  ;;  %v2497_v63 = vadd.f32 %v3594_v10, %v1920_v54  ;;  %v769_v0 = vmax.f32 %v193_v48, 0.0  ;;  %v770_v2 = vmax.f32 %v194_v49, 0.0 }
  0xb0   :  { %3069 = vst [vmem:[#allocation7 + $0x4d0] sm:$0xff] %v2493_v53  ;;  %v771_v3 = vmax.f32 %v195_v50, 0.0  ;;  %3070 = vst [vmem:[#allocation7 + $0x4d8] sm:$0xff] %v2494_v58  ;;  %v2498_v5 = vadd.f32 %v3594_v10, %v1921_v61  ;;  %v772_v6 = vmax.f32 %v196_v55, 0.0  ;;  %v773_v7 = vmax.f32 %v197_v56, 0.0 }
  0xb1   :  { %3071 = vst [vmem:[#allocation7 + $0x4e0] sm:$0xff] %v2495_v59  ;;  %3072 = vst [vmem:[#allocation7 + $0x4e8] sm:$0xff] %v2496_v60  ;;  %v774_v8 = vmax.f32 %v198_v57, 0.0  ;;  %v1346_v9 = vmul.f32 %v3589_v1, %v769_v0  ;;  %v1347_v11 = vmul.f32 %v3589_v1, %v770_v2  ;;  %v775_v13 = vmax.f32 %v199_v62, 0.0 }
  0xb2   :  { %3073 = vst [vmem:[#allocation7 + $0x4f0] sm:$0xff] %v2497_v63  ;;  %v1348_v12 = vmul.f32 %v3589_v1, %v771_v3  ;;  %3074 = vst [vmem:[#allocation7 + $0x4f8] sm:$0xff] %v2498_v5  ;;  %v1349_v14 = vmul.f32 %v3589_v1, %v772_v6  ;;  %v1350_v15 = vmul.f32 %v3589_v1, %v773_v7  ;;  %v776_v17 = vmax.f32 %v200_v4, 0.0  ;;  %v210_v4 = vld [vmem:[#allocation4 + $0x588] sm:$0xff]  ;;  %v211_v5 = vld [vmem:[#allocation4 + $0x590] sm:$0xff] }
  0xb3   :  { %v1351_v16 = vmul.f32 %v3589_v1, %v774_v8  ;;  %v1922_v18 = vmul.f32 %v1346_v9, %v769_v0  ;;  %v1923_v19 = vmul.f32 %v1347_v11, %v770_v2  ;;  %v1352_v21 = vmul.f32 %v3589_v1, %v775_v13  ;;  %v212_v11 = vld [vmem:[#allocation4 + $0x598] sm:$0xff] }
  0xb4   :  { %v1924_v20 = vmul.f32 %v1348_v12, %v771_v3  ;;  %v1925_v22 = vmul.f32 %v1349_v14, %v772_v6  ;;  %v1926_v23 = vmul.f32 %v1350_v15, %v773_v7  ;;  %v1353_v25 = vmul.f32 %v3589_v1, %v776_v17  ;;  %v209_v3 = vld [vmem:[#allocation4 + $0x580] sm:$0xff] }
  0xb5   :  { %v1927_v24 = vmul.f32 %v1351_v16, %v774_v8  ;;  %v2499_v29 = vadd.f32 %v3594_v10, %v1922_v18  ;;  %v2500_v30 = vadd.f32 %v3594_v10, %v1923_v19  ;;  %v1928_v32 = vmul.f32 %v1352_v21, %v775_v13  ;;  %v213_v12 = vld [vmem:[#allocation4 + $0x5a0] sm:$0xff]  ;;  %v214_v13 = vld [vmem:[#allocation4 + $0x5a8] sm:$0xff]  ;;  %v215_v18 = vld [vmem:[#allocation4 + $0x5b0] sm:$0xff] }
  0xb6   :  { %v2501_v31 = vadd.f32 %v3594_v10, %v1924_v20  ;;  %v2502_v36 = vadd.f32 %v3594_v10, %v1925_v22  ;;  %v2503_v37 = vadd.f32 %v3594_v10, %v1926_v23  ;;  %v1929_v39 = vmul.f32 %v1353_v25, %v776_v17  ;;  %v216_v23 = vld [vmem:[#allocation4 + $0x5b8] sm:$0xff] }
  0xb7   :  { %v2504_v38 = vadd.f32 %v3594_v10, %v1927_v24  ;;  %3075 = vst [vmem:[#allocation7 + $0x500] sm:$0xff] %v2499_v29  ;;  %3076 = vst [vmem:[#allocation7 + $0x508] sm:$0xff] %v2500_v30  ;;  %v2505_v41 = vadd.f32 %v3594_v10, %v1928_v32  ;;  %v777_v42 = vmax.f32 %v201_v26, 0.0  ;;  %v778_v43 = vmax.f32 %v202_v27, 0.0 }
  0xb8   :  { %3077 = vst [vmem:[#allocation7 + $0x510] sm:$0xff] %v2501_v31  ;;  %v779_v44 = vmax.f32 %v203_v28, 0.0  ;;  %3078 = vst [vmem:[#allocation7 + $0x518] sm:$0xff] %v2502_v36  ;;  %v2506_v46 = vadd.f32 %v3594_v10, %v1929_v39  ;;  %v780_v47 = vmax.f32 %v204_v33, 0.0  ;;  %v781_v48 = vmax.f32 %v205_v34, 0.0 }
  0xb9   :  { %3079 = vst [vmem:[#allocation7 + $0x520] sm:$0xff] %v2503_v37  ;;  %3080 = vst [vmem:[#allocation7 + $0x528] sm:$0xff] %v2504_v38  ;;  %v782_v49 = vmax.f32 %v206_v35, 0.0  ;;  %v1354_v50 = vmul.f32 %v3589_v1, %v777_v42  ;;  %v1355_v51 = vmul.f32 %v3589_v1, %v778_v43  ;;  %v783_v53 = vmax.f32 %v207_v40, 0.0 }
  0xba   :  { %3081 = vst [vmem:[#allocation7 + $0x530] sm:$0xff] %v2505_v41  ;;  %v1356_v52 = vmul.f32 %v3589_v1, %v779_v44  ;;  %3082 = vst [vmem:[#allocation7 + $0x538] sm:$0xff] %v2506_v46  ;;  %v1357_v54 = vmul.f32 %v3589_v1, %v780_v47  ;;  %v1358_v55 = vmul.f32 %v3589_v1, %v781_v48  ;;  %v784_v57 = vmax.f32 %v208_v45, 0.0  ;;  %v218_v45 = vld [vmem:[#allocation4 + $0x5c8] sm:$0xff]  ;;  %v219_v46 = vld [vmem:[#allocation4 + $0x5d0] sm:$0xff] }
  0xbb   :  { %v1359_v56 = vmul.f32 %v3589_v1, %v782_v49  ;;  %v1930_v58 = vmul.f32 %v1354_v50, %v777_v42  ;;  %v1931_v59 = vmul.f32 %v1355_v51, %v778_v43  ;;  %v1360_v61 = vmul.f32 %v3589_v1, %v783_v53  ;;  %v220_v51 = vld [vmem:[#allocation4 + $0x5d8] sm:$0xff] }
  0xbc   :  { %v1932_v60 = vmul.f32 %v1356_v52, %v779_v44  ;;  %v1933_v62 = vmul.f32 %v1357_v54, %v780_v47  ;;  %v1934_v63 = vmul.f32 %v1358_v55, %v781_v48  ;;  %v1361_v2 = vmul.f32 %v3589_v1, %v784_v57  ;;  %v217_v44 = vld [vmem:[#allocation4 + $0x5c0] sm:$0xff] }
  0xbd   :  { %v1935_v0 = vmul.f32 %v1359_v56, %v782_v49  ;;  %v2507_v6 = vadd.f32 %v3594_v10, %v1930_v58  ;;  %v2508_v7 = vadd.f32 %v3594_v10, %v1931_v59  ;;  %v1936_v9 = vmul.f32 %v1360_v61, %v783_v53  ;;  %v221_v52 = vld [vmem:[#allocation4 + $0x5e0] sm:$0xff]  ;;  %v222_v53 = vld [vmem:[#allocation4 + $0x5e8] sm:$0xff]  ;;  %v223_v58 = vld [vmem:[#allocation4 + $0x5f0] sm:$0xff] }
  0xbe   :  { %v2509_v8 = vadd.f32 %v3594_v10, %v1932_v60  ;;  %v2510_v14 = vadd.f32 %v3594_v10, %v1933_v62  ;;  %v2511_v15 = vadd.f32 %v3594_v10, %v1934_v63  ;;  %v1937_v17 = vmul.f32 %v1361_v2, %v784_v57  ;;  %v224_v63 = vld [vmem:[#allocation4 + $0x5f8] sm:$0xff] }
  0xbf   :  { %v2512_v16 = vadd.f32 %v3594_v10, %v1935_v0  ;;  %3083 = vst [vmem:[#allocation7 + $0x540] sm:$0xff] %v2507_v6  ;;  %3084 = vst [vmem:[#allocation7 + $0x548] sm:$0xff] %v2508_v7  ;;  %v2513_v19 = vadd.f32 %v3594_v10, %v1936_v9  ;;  %v785_v20 = vmax.f32 %v209_v3, 0.0  ;;  %v786_v21 = vmax.f32 %v210_v4, 0.0 }
  0xc0   :  { %3085 = vst [vmem:[#allocation7 + $0x550] sm:$0xff] %v2509_v8  ;;  %v787_v22 = vmax.f32 %v211_v5, 0.0  ;;  %3086 = vst [vmem:[#allocation7 + $0x558] sm:$0xff] %v2510_v14  ;;  %v2514_v24 = vadd.f32 %v3594_v10, %v1937_v17  ;;  %v788_v25 = vmax.f32 %v212_v11, 0.0  ;;  %v789_v26 = vmax.f32 %v213_v12, 0.0 }
  0xc1   :  { %3087 = vst [vmem:[#allocation7 + $0x560] sm:$0xff] %v2511_v15  ;;  %3088 = vst [vmem:[#allocation7 + $0x568] sm:$0xff] %v2512_v16  ;;  %v790_v27 = vmax.f32 %v214_v13, 0.0  ;;  %v1362_v28 = vmul.f32 %v3589_v1, %v785_v20  ;;  %v1363_v29 = vmul.f32 %v3589_v1, %v786_v21  ;;  %v791_v31 = vmax.f32 %v215_v18, 0.0 }
  0xc2   :  { %3089 = vst [vmem:[#allocation7 + $0x570] sm:$0xff] %v2513_v19  ;;  %v1364_v30 = vmul.f32 %v3589_v1, %v787_v22  ;;  %3090 = vst [vmem:[#allocation7 + $0x578] sm:$0xff] %v2514_v24  ;;  %v1365_v32 = vmul.f32 %v3589_v1, %v788_v25  ;;  %v1366_v33 = vmul.f32 %v3589_v1, %v789_v26  ;;  %v792_v35 = vmax.f32 %v216_v23, 0.0  ;;  %v226_v23 = vld [vmem:[#allocation4 + $0x608] sm:$0xff]  ;;  %v227_v24 = vld [vmem:[#allocation4 + $0x610] sm:$0xff] }
  0xc3   :  { %v1367_v34 = vmul.f32 %v3589_v1, %v790_v27  ;;  %v1938_v36 = vmul.f32 %v1362_v28, %v785_v20  ;;  %v1939_v37 = vmul.f32 %v1363_v29, %v786_v21  ;;  %v1368_v39 = vmul.f32 %v3589_v1, %v791_v31  ;;  %v228_v29 = vld [vmem:[#allocation4 + $0x618] sm:$0xff] }
  0xc4   :  { %v1940_v38 = vmul.f32 %v1364_v30, %v787_v22  ;;  %v1941_v40 = vmul.f32 %v1365_v32, %v788_v25  ;;  %v1942_v41 = vmul.f32 %v1366_v33, %v789_v26  ;;  %v1369_v43 = vmul.f32 %v3589_v1, %v792_v35  ;;  %v225_v22 = vld [vmem:[#allocation4 + $0x600] sm:$0xff] }
  0xc5   :  { %v1943_v42 = vmul.f32 %v1367_v34, %v790_v27  ;;  %v2515_v47 = vadd.f32 %v3594_v10, %v1938_v36  ;;  %v2516_v48 = vadd.f32 %v3594_v10, %v1939_v37  ;;  %v1944_v50 = vmul.f32 %v1368_v39, %v791_v31  ;;  %v229_v30 = vld [vmem:[#allocation4 + $0x620] sm:$0xff]  ;;  %v230_v31 = vld [vmem:[#allocation4 + $0x628] sm:$0xff]  ;;  %v231_v36 = vld [vmem:[#allocation4 + $0x630] sm:$0xff] }
  0xc6   :  { %v2517_v49 = vadd.f32 %v3594_v10, %v1940_v38  ;;  %v2518_v54 = vadd.f32 %v3594_v10, %v1941_v40  ;;  %v2519_v55 = vadd.f32 %v3594_v10, %v1942_v41  ;;  %v1945_v57 = vmul.f32 %v1369_v43, %v792_v35  ;;  %v232_v41 = vld [vmem:[#allocation4 + $0x638] sm:$0xff] }
  0xc7   :  { %v2520_v56 = vadd.f32 %v3594_v10, %v1943_v42  ;;  %3091 = vst [vmem:[#allocation7 + $0x580] sm:$0xff] %v2515_v47  ;;  %3092 = vst [vmem:[#allocation7 + $0x588] sm:$0xff] %v2516_v48  ;;  %v2521_v59 = vadd.f32 %v3594_v10, %v1944_v50  ;;  %v793_v60 = vmax.f32 %v217_v44, 0.0  ;;  %v794_v61 = vmax.f32 %v218_v45, 0.0 }
  0xc8   :  { %3093 = vst [vmem:[#allocation7 + $0x590] sm:$0xff] %v2517_v49  ;;  %v795_v62 = vmax.f32 %v219_v46, 0.0  ;;  %3094 = vst [vmem:[#allocation7 + $0x598] sm:$0xff] %v2518_v54  ;;  %v2522_v0 = vadd.f32 %v3594_v10, %v1945_v57  ;;  %v796_v2 = vmax.f32 %v220_v51, 0.0  ;;  %v797_v3 = vmax.f32 %v221_v52, 0.0 }
  0xc9   :  { %3095 = vst [vmem:[#allocation7 + $0x5a0] sm:$0xff] %v2519_v55  ;;  %3096 = vst [vmem:[#allocation7 + $0x5a8] sm:$0xff] %v2520_v56  ;;  %v798_v4 = vmax.f32 %v222_v53, 0.0  ;;  %v1370_v5 = vmul.f32 %v3589_v1, %v793_v60  ;;  %v1371_v6 = vmul.f32 %v3589_v1, %v794_v61  ;;  %v799_v8 = vmax.f32 %v223_v58, 0.0 }
  0xca   :  { %3097 = vst [vmem:[#allocation7 + $0x5b0] sm:$0xff] %v2521_v59  ;;  %v1372_v7 = vmul.f32 %v3589_v1, %v795_v62  ;;  %3098 = vst [vmem:[#allocation7 + $0x5b8] sm:$0xff] %v2522_v0  ;;  %v1373_v9 = vmul.f32 %v3589_v1, %v796_v2  ;;  %v1374_v11 = vmul.f32 %v3589_v1, %v797_v3  ;;  %v800_v13 = vmax.f32 %v224_v63, 0.0  ;;  %v234_v63 = vld [vmem:[#allocation4 + $0x648] sm:$0xff]  ;;  %v235_v0 = vld [vmem:[#allocation4 + $0x650] sm:$0xff] }
  0xcb   :  { %v1375_v12 = vmul.f32 %v3589_v1, %v798_v4  ;;  %v1946_v14 = vmul.f32 %v1370_v5, %v793_v60  ;;  %v1947_v15 = vmul.f32 %v1371_v6, %v794_v61  ;;  %v1376_v17 = vmul.f32 %v3589_v1, %v799_v8  ;;  %v236_v6 = vld [vmem:[#allocation4 + $0x658] sm:$0xff] }
  0xcc   :  { %v1948_v16 = vmul.f32 %v1372_v7, %v795_v62  ;;  %v1949_v18 = vmul.f32 %v1373_v9, %v796_v2  ;;  %v1950_v19 = vmul.f32 %v1374_v11, %v797_v3  ;;  %v1377_v21 = vmul.f32 %v3589_v1, %v800_v13  ;;  %v233_v62 = vld [vmem:[#allocation4 + $0x640] sm:$0xff] }
  0xcd   :  { %v1951_v20 = vmul.f32 %v1375_v12, %v798_v4  ;;  %v2523_v25 = vadd.f32 %v3594_v10, %v1946_v14  ;;  %v2524_v26 = vadd.f32 %v3594_v10, %v1947_v15  ;;  %v1952_v28 = vmul.f32 %v1376_v17, %v799_v8  ;;  %v237_v7 = vld [vmem:[#allocation4 + $0x660] sm:$0xff]  ;;  %v238_v8 = vld [vmem:[#allocation4 + $0x668] sm:$0xff]  ;;  %v239_v14 = vld [vmem:[#allocation4 + $0x670] sm:$0xff] }
  0xce   :  { %v2525_v27 = vadd.f32 %v3594_v10, %v1948_v16  ;;  %v2526_v32 = vadd.f32 %v3594_v10, %v1949_v18  ;;  %v2527_v33 = vadd.f32 %v3594_v10, %v1950_v19  ;;  %v1953_v35 = vmul.f32 %v1377_v21, %v800_v13  ;;  %v240_v19 = vld [vmem:[#allocation4 + $0x678] sm:$0xff] }
  0xcf   :  { %v2528_v34 = vadd.f32 %v3594_v10, %v1951_v20  ;;  %3099 = vst [vmem:[#allocation7 + $0x5c0] sm:$0xff] %v2523_v25  ;;  %3100 = vst [vmem:[#allocation7 + $0x5c8] sm:$0xff] %v2524_v26  ;;  %v2529_v37 = vadd.f32 %v3594_v10, %v1952_v28  ;;  %v801_v38 = vmax.f32 %v225_v22, 0.0  ;;  %v802_v39 = vmax.f32 %v226_v23, 0.0 }
  0xd0   :  { %3101 = vst [vmem:[#allocation7 + $0x5d0] sm:$0xff] %v2525_v27  ;;  %v803_v40 = vmax.f32 %v227_v24, 0.0  ;;  %3102 = vst [vmem:[#allocation7 + $0x5d8] sm:$0xff] %v2526_v32  ;;  %v2530_v42 = vadd.f32 %v3594_v10, %v1953_v35  ;;  %v804_v43 = vmax.f32 %v228_v29, 0.0  ;;  %v805_v44 = vmax.f32 %v229_v30, 0.0 }
  0xd1   :  { %3103 = vst [vmem:[#allocation7 + $0x5e0] sm:$0xff] %v2527_v33  ;;  %3104 = vst [vmem:[#allocation7 + $0x5e8] sm:$0xff] %v2528_v34  ;;  %v806_v45 = vmax.f32 %v230_v31, 0.0  ;;  %v1378_v46 = vmul.f32 %v3589_v1, %v801_v38  ;;  %v1379_v47 = vmul.f32 %v3589_v1, %v802_v39  ;;  %v807_v49 = vmax.f32 %v231_v36, 0.0 }
  0xd2   :  { %3105 = vst [vmem:[#allocation7 + $0x5f0] sm:$0xff] %v2529_v37  ;;  %v1380_v48 = vmul.f32 %v3589_v1, %v803_v40  ;;  %3106 = vst [vmem:[#allocation7 + $0x5f8] sm:$0xff] %v2530_v42  ;;  %v1381_v50 = vmul.f32 %v3589_v1, %v804_v43  ;;  %v1382_v51 = vmul.f32 %v3589_v1, %v805_v44  ;;  %v808_v53 = vmax.f32 %v232_v41, 0.0  ;;  %v242_v41 = vld [vmem:[#allocation4 + $0x688] sm:$0xff]  ;;  %v243_v42 = vld [vmem:[#allocation4 + $0x690] sm:$0xff] }
  0xd3   :  { %v1383_v52 = vmul.f32 %v3589_v1, %v806_v45  ;;  %v1954_v54 = vmul.f32 %v1378_v46, %v801_v38  ;;  %v1955_v55 = vmul.f32 %v1379_v47, %v802_v39  ;;  %v1384_v57 = vmul.f32 %v3589_v1, %v807_v49  ;;  %v244_v47 = vld [vmem:[#allocation4 + $0x698] sm:$0xff] }
  0xd4   :  { %v1956_v56 = vmul.f32 %v1380_v48, %v803_v40  ;;  %v1957_v58 = vmul.f32 %v1381_v50, %v804_v43  ;;  %v1958_v59 = vmul.f32 %v1382_v51, %v805_v44  ;;  %v1385_v61 = vmul.f32 %v3589_v1, %v808_v53  ;;  %v241_v40 = vld [vmem:[#allocation4 + $0x680] sm:$0xff] }
  0xd5   :  { %v1959_v60 = vmul.f32 %v1383_v52, %v806_v45  ;;  %v2531_v2 = vadd.f32 %v3594_v10, %v1954_v54  ;;  %v2532_v3 = vadd.f32 %v3594_v10, %v1955_v55  ;;  %v1960_v5 = vmul.f32 %v1384_v57, %v807_v49  ;;  %v245_v48 = vld [vmem:[#allocation4 + $0x6a0] sm:$0xff]  ;;  %v246_v49 = vld [vmem:[#allocation4 + $0x6a8] sm:$0xff]  ;;  %v247_v54 = vld [vmem:[#allocation4 + $0x6b0] sm:$0xff] }
  0xd6   :  { %v2533_v4 = vadd.f32 %v3594_v10, %v1956_v56  ;;  %v2534_v9 = vadd.f32 %v3594_v10, %v1957_v58  ;;  %v2535_v11 = vadd.f32 %v3594_v10, %v1958_v59  ;;  %v1961_v13 = vmul.f32 %v1385_v61, %v808_v53  ;;  %v248_v59 = vld [vmem:[#allocation4 + $0x6b8] sm:$0xff] }
  0xd7   :  { %v2536_v12 = vadd.f32 %v3594_v10, %v1959_v60  ;;  %3107 = vst [vmem:[#allocation7 + $0x600] sm:$0xff] %v2531_v2  ;;  %3108 = vst [vmem:[#allocation7 + $0x608] sm:$0xff] %v2532_v3  ;;  %v2537_v15 = vadd.f32 %v3594_v10, %v1960_v5  ;;  %v809_v16 = vmax.f32 %v233_v62, 0.0  ;;  %v810_v17 = vmax.f32 %v234_v63, 0.0 }
  0xd8   :  { %3109 = vst [vmem:[#allocation7 + $0x610] sm:$0xff] %v2533_v4  ;;  %v811_v18 = vmax.f32 %v235_v0, 0.0  ;;  %3110 = vst [vmem:[#allocation7 + $0x618] sm:$0xff] %v2534_v9  ;;  %v2538_v20 = vadd.f32 %v3594_v10, %v1961_v13  ;;  %v812_v21 = vmax.f32 %v236_v6, 0.0  ;;  %v813_v22 = vmax.f32 %v237_v7, 0.0 }
  0xd9   :  { %3111 = vst [vmem:[#allocation7 + $0x620] sm:$0xff] %v2535_v11  ;;  %3112 = vst [vmem:[#allocation7 + $0x628] sm:$0xff] %v2536_v12  ;;  %v814_v23 = vmax.f32 %v238_v8, 0.0  ;;  %v1386_v24 = vmul.f32 %v3589_v1, %v809_v16  ;;  %v1387_v25 = vmul.f32 %v3589_v1, %v810_v17  ;;  %v815_v27 = vmax.f32 %v239_v14, 0.0 }
  0xda   :  { %3113 = vst [vmem:[#allocation7 + $0x630] sm:$0xff] %v2537_v15  ;;  %v1388_v26 = vmul.f32 %v3589_v1, %v811_v18  ;;  %3114 = vst [vmem:[#allocation7 + $0x638] sm:$0xff] %v2538_v20  ;;  %v1389_v28 = vmul.f32 %v3589_v1, %v812_v21  ;;  %v1390_v29 = vmul.f32 %v3589_v1, %v813_v22  ;;  %v816_v31 = vmax.f32 %v240_v19, 0.0  ;;  %v250_v19 = vld [vmem:[#allocation4 + $0x6c8] sm:$0xff]  ;;  %v251_v20 = vld [vmem:[#allocation4 + $0x6d0] sm:$0xff] }
  0xdb   :  { %v1391_v30 = vmul.f32 %v3589_v1, %v814_v23  ;;  %v1962_v32 = vmul.f32 %v1386_v24, %v809_v16  ;;  %v1963_v33 = vmul.f32 %v1387_v25, %v810_v17  ;;  %v1392_v35 = vmul.f32 %v3589_v1, %v815_v27  ;;  %v252_v25 = vld [vmem:[#allocation4 + $0x6d8] sm:$0xff] }
  0xdc   :  { %v1964_v34 = vmul.f32 %v1388_v26, %v811_v18  ;;  %v1965_v36 = vmul.f32 %v1389_v28, %v812_v21  ;;  %v1966_v37 = vmul.f32 %v1390_v29, %v813_v22  ;;  %v1393_v39 = vmul.f32 %v3589_v1, %v816_v31  ;;  %v249_v18 = vld [vmem:[#allocation4 + $0x6c0] sm:$0xff] }
  0xdd   :  { %v1967_v38 = vmul.f32 %v1391_v30, %v814_v23  ;;  %v2539_v43 = vadd.f32 %v3594_v10, %v1962_v32  ;;  %v2540_v44 = vadd.f32 %v3594_v10, %v1963_v33  ;;  %v1968_v46 = vmul.f32 %v1392_v35, %v815_v27  ;;  %v253_v26 = vld [vmem:[#allocation4 + $0x6e0] sm:$0xff]  ;;  %v254_v27 = vld [vmem:[#allocation4 + $0x6e8] sm:$0xff]  ;;  %v255_v32 = vld [vmem:[#allocation4 + $0x6f0] sm:$0xff] }
  0xde   :  { %v2541_v45 = vadd.f32 %v3594_v10, %v1964_v34  ;;  %v2542_v50 = vadd.f32 %v3594_v10, %v1965_v36  ;;  %v2543_v51 = vadd.f32 %v3594_v10, %v1966_v37  ;;  %v1969_v53 = vmul.f32 %v1393_v39, %v816_v31  ;;  %v256_v37 = vld [vmem:[#allocation4 + $0x6f8] sm:$0xff] }
  0xdf   :  { %v2544_v52 = vadd.f32 %v3594_v10, %v1967_v38  ;;  %3115 = vst [vmem:[#allocation7 + $0x640] sm:$0xff] %v2539_v43  ;;  %3116 = vst [vmem:[#allocation7 + $0x648] sm:$0xff] %v2540_v44  ;;  %v2545_v55 = vadd.f32 %v3594_v10, %v1968_v46  ;;  %v817_v56 = vmax.f32 %v241_v40, 0.0  ;;  %v818_v57 = vmax.f32 %v242_v41, 0.0 }
  0xe0   :  { %3117 = vst [vmem:[#allocation7 + $0x650] sm:$0xff] %v2541_v45  ;;  %v819_v58 = vmax.f32 %v243_v42, 0.0  ;;  %3118 = vst [vmem:[#allocation7 + $0x658] sm:$0xff] %v2542_v50  ;;  %v2546_v60 = vadd.f32 %v3594_v10, %v1969_v53  ;;  %v820_v61 = vmax.f32 %v244_v47, 0.0  ;;  %v821_v62 = vmax.f32 %v245_v48, 0.0 }
  0xe1   :  { %3119 = vst [vmem:[#allocation7 + $0x660] sm:$0xff] %v2543_v51  ;;  %3120 = vst [vmem:[#allocation7 + $0x668] sm:$0xff] %v2544_v52  ;;  %v822_v63 = vmax.f32 %v246_v49, 0.0  ;;  %v1394_v0 = vmul.f32 %v3589_v1, %v817_v56  ;;  %v1395_v2 = vmul.f32 %v3589_v1, %v818_v57  ;;  %v823_v4 = vmax.f32 %v247_v54, 0.0 }
  0xe2   :  { %3121 = vst [vmem:[#allocation7 + $0x670] sm:$0xff] %v2545_v55  ;;  %v1396_v3 = vmul.f32 %v3589_v1, %v819_v58  ;;  %3122 = vst [vmem:[#allocation7 + $0x678] sm:$0xff] %v2546_v60  ;;  %v1397_v5 = vmul.f32 %v3589_v1, %v820_v61  ;;  %v1398_v6 = vmul.f32 %v3589_v1, %v821_v62  ;;  %v824_v8 = vmax.f32 %v248_v59, 0.0  ;;  %v258_v59 = vld [vmem:[#allocation4 + $0x708] sm:$0xff]  ;;  %v259_v60 = vld [vmem:[#allocation4 + $0x710] sm:$0xff] }
  0xe3   :  { %v1399_v7 = vmul.f32 %v3589_v1, %v822_v63  ;;  %v1970_v9 = vmul.f32 %v1394_v0, %v817_v56  ;;  %v1971_v11 = vmul.f32 %v1395_v2, %v818_v57  ;;  %v1400_v13 = vmul.f32 %v3589_v1, %v823_v4  ;;  %v260_v2 = vld [vmem:[#allocation4 + $0x718] sm:$0xff] }
  0xe4   :  { %v1972_v12 = vmul.f32 %v1396_v3, %v819_v58  ;;  %v1973_v14 = vmul.f32 %v1397_v5, %v820_v61  ;;  %v1974_v15 = vmul.f32 %v1398_v6, %v821_v62  ;;  %v1401_v17 = vmul.f32 %v3589_v1, %v824_v8  ;;  %v257_v58 = vld [vmem:[#allocation4 + $0x700] sm:$0xff] }
  0xe5   :  { %v1975_v16 = vmul.f32 %v1399_v7, %v822_v63  ;;  %v2547_v21 = vadd.f32 %v3594_v10, %v1970_v9  ;;  %v2548_v22 = vadd.f32 %v3594_v10, %v1971_v11  ;;  %v1976_v24 = vmul.f32 %v1400_v13, %v823_v4  ;;  %v261_v3 = vld [vmem:[#allocation4 + $0x720] sm:$0xff]  ;;  %v262_v4 = vld [vmem:[#allocation4 + $0x728] sm:$0xff]  ;;  %v263_v9 = vld [vmem:[#allocation4 + $0x730] sm:$0xff] }
  0xe6   :  { %v2549_v23 = vadd.f32 %v3594_v10, %v1972_v12  ;;  %v2550_v28 = vadd.f32 %v3594_v10, %v1973_v14  ;;  %v2551_v29 = vadd.f32 %v3594_v10, %v1974_v15  ;;  %v1977_v31 = vmul.f32 %v1401_v17, %v824_v8  ;;  %v264_v15 = vld [vmem:[#allocation4 + $0x738] sm:$0xff] }
  0xe7   :  { %v2552_v30 = vadd.f32 %v3594_v10, %v1975_v16  ;;  %3123 = vst [vmem:[#allocation7 + $0x680] sm:$0xff] %v2547_v21  ;;  %3124 = vst [vmem:[#allocation7 + $0x688] sm:$0xff] %v2548_v22  ;;  %v2553_v33 = vadd.f32 %v3594_v10, %v1976_v24  ;;  %v825_v34 = vmax.f32 %v249_v18, 0.0  ;;  %v826_v35 = vmax.f32 %v250_v19, 0.0 }
  0xe8   :  { %3125 = vst [vmem:[#allocation7 + $0x690] sm:$0xff] %v2549_v23  ;;  %v827_v36 = vmax.f32 %v251_v20, 0.0  ;;  %3126 = vst [vmem:[#allocation7 + $0x698] sm:$0xff] %v2550_v28  ;;  %v2554_v38 = vadd.f32 %v3594_v10, %v1977_v31  ;;  %v828_v39 = vmax.f32 %v252_v25, 0.0  ;;  %v829_v40 = vmax.f32 %v253_v26, 0.0 }
  0xe9   :  { %3127 = vst [vmem:[#allocation7 + $0x6a0] sm:$0xff] %v2551_v29  ;;  %3128 = vst [vmem:[#allocation7 + $0x6a8] sm:$0xff] %v2552_v30  ;;  %v830_v41 = vmax.f32 %v254_v27, 0.0  ;;  %v1402_v42 = vmul.f32 %v3589_v1, %v825_v34  ;;  %v1403_v43 = vmul.f32 %v3589_v1, %v826_v35  ;;  %v831_v45 = vmax.f32 %v255_v32, 0.0 }
  0xea   :  { %3129 = vst [vmem:[#allocation7 + $0x6b0] sm:$0xff] %v2553_v33  ;;  %v1404_v44 = vmul.f32 %v3589_v1, %v827_v36  ;;  %3130 = vst [vmem:[#allocation7 + $0x6b8] sm:$0xff] %v2554_v38  ;;  %v1405_v46 = vmul.f32 %v3589_v1, %v828_v39  ;;  %v1406_v47 = vmul.f32 %v3589_v1, %v829_v40  ;;  %v832_v49 = vmax.f32 %v256_v37, 0.0  ;;  %v266_v37 = vld [vmem:[#allocation4 + $0x748] sm:$0xff]  ;;  %v267_v38 = vld [vmem:[#allocation4 + $0x750] sm:$0xff] }
  0xeb   :  { %v1407_v48 = vmul.f32 %v3589_v1, %v830_v41  ;;  %v1978_v50 = vmul.f32 %v1402_v42, %v825_v34  ;;  %v1979_v51 = vmul.f32 %v1403_v43, %v826_v35  ;;  %v1408_v53 = vmul.f32 %v3589_v1, %v831_v45  ;;  %v268_v43 = vld [vmem:[#allocation4 + $0x758] sm:$0xff] }
  0xec   :  { %v1980_v52 = vmul.f32 %v1404_v44, %v827_v36  ;;  %v1981_v54 = vmul.f32 %v1405_v46, %v828_v39  ;;  %v1982_v55 = vmul.f32 %v1406_v47, %v829_v40  ;;  %v1409_v57 = vmul.f32 %v3589_v1, %v832_v49  ;;  %v265_v36 = vld [vmem:[#allocation4 + $0x740] sm:$0xff] }
  0xed   :  { %v1983_v56 = vmul.f32 %v1407_v48, %v830_v41  ;;  %v2555_v61 = vadd.f32 %v3594_v10, %v1978_v50  ;;  %v2556_v62 = vadd.f32 %v3594_v10, %v1979_v51  ;;  %v1984_v0 = vmul.f32 %v1408_v53, %v831_v45  ;;  %v269_v44 = vld [vmem:[#allocation4 + $0x760] sm:$0xff]  ;;  %v270_v45 = vld [vmem:[#allocation4 + $0x768] sm:$0xff]  ;;  %v271_v50 = vld [vmem:[#allocation4 + $0x770] sm:$0xff] }
  0xee   :  { %v2557_v63 = vadd.f32 %v3594_v10, %v1980_v52  ;;  %v2558_v5 = vadd.f32 %v3594_v10, %v1981_v54  ;;  %v2559_v6 = vadd.f32 %v3594_v10, %v1982_v55  ;;  %v1985_v8 = vmul.f32 %v1409_v57, %v832_v49  ;;  %v272_v55 = vld [vmem:[#allocation4 + $0x778] sm:$0xff] }
  0xef   :  { %v2560_v7 = vadd.f32 %v3594_v10, %v1983_v56  ;;  %3131 = vst [vmem:[#allocation7 + $0x6c0] sm:$0xff] %v2555_v61  ;;  %3132 = vst [vmem:[#allocation7 + $0x6c8] sm:$0xff] %v2556_v62  ;;  %v2561_v11 = vadd.f32 %v3594_v10, %v1984_v0  ;;  %v833_v12 = vmax.f32 %v257_v58, 0.0  ;;  %v834_v13 = vmax.f32 %v258_v59, 0.0 }
  0xf0   :  { %3133 = vst [vmem:[#allocation7 + $0x6d0] sm:$0xff] %v2557_v63  ;;  %v835_v14 = vmax.f32 %v259_v60, 0.0  ;;  %3134 = vst [vmem:[#allocation7 + $0x6d8] sm:$0xff] %v2558_v5  ;;  %v2562_v16 = vadd.f32 %v3594_v10, %v1985_v8  ;;  %v836_v17 = vmax.f32 %v260_v2, 0.0  ;;  %v837_v18 = vmax.f32 %v261_v3, 0.0 }
  0xf1   :  { %3135 = vst [vmem:[#allocation7 + $0x6e0] sm:$0xff] %v2559_v6  ;;  %3136 = vst [vmem:[#allocation7 + $0x6e8] sm:$0xff] %v2560_v7  ;;  %v838_v19 = vmax.f32 %v262_v4, 0.0  ;;  %v1410_v20 = vmul.f32 %v3589_v1, %v833_v12  ;;  %v1411_v21 = vmul.f32 %v3589_v1, %v834_v13  ;;  %v839_v23 = vmax.f32 %v263_v9, 0.0 }
  0xf2   :  { %3137 = vst [vmem:[#allocation7 + $0x6f0] sm:$0xff] %v2561_v11  ;;  %v1412_v22 = vmul.f32 %v3589_v1, %v835_v14  ;;  %3138 = vst [vmem:[#allocation7 + $0x6f8] sm:$0xff] %v2562_v16  ;;  %v1413_v24 = vmul.f32 %v3589_v1, %v836_v17  ;;  %v1414_v25 = vmul.f32 %v3589_v1, %v837_v18  ;;  %v840_v27 = vmax.f32 %v264_v15, 0.0  ;;  %v274_v15 = vld [vmem:[#allocation4 + $0x788] sm:$0xff]  ;;  %v275_v16 = vld [vmem:[#allocation4 + $0x790] sm:$0xff] }
  0xf3   :  { %v1415_v26 = vmul.f32 %v3589_v1, %v838_v19  ;;  %v1986_v28 = vmul.f32 %v1410_v20, %v833_v12  ;;  %v1987_v29 = vmul.f32 %v1411_v21, %v834_v13  ;;  %v1416_v31 = vmul.f32 %v3589_v1, %v839_v23  ;;  %v276_v21 = vld [vmem:[#allocation4 + $0x798] sm:$0xff] }
  0xf4   :  { %v1988_v30 = vmul.f32 %v1412_v22, %v835_v14  ;;  %v1989_v32 = vmul.f32 %v1413_v24, %v836_v17  ;;  %v1990_v33 = vmul.f32 %v1414_v25, %v837_v18  ;;  %v1417_v35 = vmul.f32 %v3589_v1, %v840_v27  ;;  %v273_v14 = vld [vmem:[#allocation4 + $0x780] sm:$0xff] }
  0xf5   :  { %v1991_v34 = vmul.f32 %v1415_v26, %v838_v19  ;;  %v2563_v39 = vadd.f32 %v3594_v10, %v1986_v28  ;;  %v2564_v40 = vadd.f32 %v3594_v10, %v1987_v29  ;;  %v1992_v42 = vmul.f32 %v1416_v31, %v839_v23  ;;  %v277_v22 = vld [vmem:[#allocation4 + $0x7a0] sm:$0xff]  ;;  %v278_v23 = vld [vmem:[#allocation4 + $0x7a8] sm:$0xff]  ;;  %v279_v28 = vld [vmem:[#allocation4 + $0x7b0] sm:$0xff] }
  0xf6   :  { %v2565_v41 = vadd.f32 %v3594_v10, %v1988_v30  ;;  %v2566_v46 = vadd.f32 %v3594_v10, %v1989_v32  ;;  %v2567_v47 = vadd.f32 %v3594_v10, %v1990_v33  ;;  %v1993_v49 = vmul.f32 %v1417_v35, %v840_v27  ;;  %v280_v33 = vld [vmem:[#allocation4 + $0x7b8] sm:$0xff] }
  0xf7   :  { %v2568_v48 = vadd.f32 %v3594_v10, %v1991_v34  ;;  %3139 = vst [vmem:[#allocation7 + $0x700] sm:$0xff] %v2563_v39  ;;  %3140 = vst [vmem:[#allocation7 + $0x708] sm:$0xff] %v2564_v40  ;;  %v2569_v51 = vadd.f32 %v3594_v10, %v1992_v42  ;;  %v841_v52 = vmax.f32 %v265_v36, 0.0  ;;  %v842_v53 = vmax.f32 %v266_v37, 0.0 }
  0xf8   :  { %3141 = vst [vmem:[#allocation7 + $0x710] sm:$0xff] %v2565_v41  ;;  %v843_v54 = vmax.f32 %v267_v38, 0.0  ;;  %3142 = vst [vmem:[#allocation7 + $0x718] sm:$0xff] %v2566_v46  ;;  %v2570_v56 = vadd.f32 %v3594_v10, %v1993_v49  ;;  %v844_v57 = vmax.f32 %v268_v43, 0.0  ;;  %v845_v58 = vmax.f32 %v269_v44, 0.0 }
  0xf9   :  { %3143 = vst [vmem:[#allocation7 + $0x720] sm:$0xff] %v2567_v47  ;;  %3144 = vst [vmem:[#allocation7 + $0x728] sm:$0xff] %v2568_v48  ;;  %v846_v59 = vmax.f32 %v270_v45, 0.0  ;;  %v1418_v60 = vmul.f32 %v3589_v1, %v841_v52  ;;  %v1419_v61 = vmul.f32 %v3589_v1, %v842_v53  ;;  %v847_v63 = vmax.f32 %v271_v50, 0.0 }
  0xfa   :  { %3145 = vst [vmem:[#allocation7 + $0x730] sm:$0xff] %v2569_v51  ;;  %v1420_v62 = vmul.f32 %v3589_v1, %v843_v54  ;;  %3146 = vst [vmem:[#allocation7 + $0x738] sm:$0xff] %v2570_v56  ;;  %v1421_v0 = vmul.f32 %v3589_v1, %v844_v57  ;;  %v1422_v2 = vmul.f32 %v3589_v1, %v845_v58  ;;  %v848_v4 = vmax.f32 %v272_v55, 0.0  ;;  %v282_v55 = vld [vmem:[#allocation4 + $0x7c8] sm:$0xff]  ;;  %v283_v56 = vld [vmem:[#allocation4 + $0x7d0] sm:$0xff] }
  0xfb   :  { %v1423_v3 = vmul.f32 %v3589_v1, %v846_v59  ;;  %v1994_v5 = vmul.f32 %v1418_v60, %v841_v52  ;;  %v1995_v6 = vmul.f32 %v1419_v61, %v842_v53  ;;  %v1424_v8 = vmul.f32 %v3589_v1, %v847_v63  ;;  %v284_v61 = vld [vmem:[#allocation4 + $0x7d8] sm:$0xff] }
  0xfc   :  { %v1996_v7 = vmul.f32 %v1420_v62, %v843_v54  ;;  %v1997_v9 = vmul.f32 %v1421_v0, %v844_v57  ;;  %v1998_v11 = vmul.f32 %v1422_v2, %v845_v58  ;;  %v1425_v13 = vmul.f32 %v3589_v1, %v848_v4  ;;  %v281_v54 = vld [vmem:[#allocation4 + $0x7c0] sm:$0xff] }
  0xfd   :  { %v1999_v12 = vmul.f32 %v1423_v3, %v846_v59  ;;  %v2571_v17 = vadd.f32 %v3594_v10, %v1994_v5  ;;  %v2572_v18 = vadd.f32 %v3594_v10, %v1995_v6  ;;  %v2000_v20 = vmul.f32 %v1424_v8, %v847_v63  ;;  %v285_v62 = vld [vmem:[#allocation4 + $0x7e0] sm:$0xff]  ;;  %v286_v63 = vld [vmem:[#allocation4 + $0x7e8] sm:$0xff]  ;;  %v287_v5 = vld [vmem:[#allocation4 + $0x7f0] sm:$0xff] }
  0xfe   :  { %v2573_v19 = vadd.f32 %v3594_v10, %v1996_v7  ;;  %v2574_v24 = vadd.f32 %v3594_v10, %v1997_v9  ;;  %v2575_v25 = vadd.f32 %v3594_v10, %v1998_v11  ;;  %v2001_v27 = vmul.f32 %v1425_v13, %v848_v4  ;;  %v288_v11 = vld [vmem:[#allocation4 + $0x7f8] sm:$0xff] }
  0xff   :  { %v2576_v26 = vadd.f32 %v3594_v10, %v1999_v12  ;;  %3147 = vst [vmem:[#allocation7 + $0x740] sm:$0xff] %v2571_v17  ;;  %3148 = vst [vmem:[#allocation7 + $0x748] sm:$0xff] %v2572_v18  ;;  %v2577_v29 = vadd.f32 %v3594_v10, %v2000_v20  ;;  %v849_v30 = vmax.f32 %v273_v14, 0.0  ;;  %v850_v31 = vmax.f32 %v274_v15, 0.0 }
 0x100   :  { %3149 = vst [vmem:[#allocation7 + $0x750] sm:$0xff] %v2573_v19  ;;  %v851_v32 = vmax.f32 %v275_v16, 0.0  ;;  %3150 = vst [vmem:[#allocation7 + $0x758] sm:$0xff] %v2574_v24  ;;  %v2578_v34 = vadd.f32 %v3594_v10, %v2001_v27  ;;  %v852_v35 = vmax.f32 %v276_v21, 0.0  ;;  %v853_v36 = vmax.f32 %v277_v22, 0.0 }
 0x101   :  { %3151 = vst [vmem:[#allocation7 + $0x760] sm:$0xff] %v2575_v25  ;;  %3152 = vst [vmem:[#allocation7 + $0x768] sm:$0xff] %v2576_v26  ;;  %v854_v37 = vmax.f32 %v278_v23, 0.0  ;;  %v1426_v38 = vmul.f32 %v3589_v1, %v849_v30  ;;  %v1427_v39 = vmul.f32 %v3589_v1, %v850_v31  ;;  %v855_v41 = vmax.f32 %v279_v28, 0.0 }
 0x102   :  { %3153 = vst [vmem:[#allocation7 + $0x770] sm:$0xff] %v2577_v29  ;;  %v1428_v40 = vmul.f32 %v3589_v1, %v851_v32  ;;  %3154 = vst [vmem:[#allocation7 + $0x778] sm:$0xff] %v2578_v34  ;;  %v1429_v42 = vmul.f32 %v3589_v1, %v852_v35  ;;  %v1430_v43 = vmul.f32 %v3589_v1, %v853_v36  ;;  %v856_v45 = vmax.f32 %v280_v33, 0.0  ;;  %v290_v33 = vld [vmem:[#allocation4 + $0x808] sm:$0xff]  ;;  %v291_v34 = vld [vmem:[#allocation4 + $0x810] sm:$0xff] }
 0x103   :  { %v1431_v44 = vmul.f32 %v3589_v1, %v854_v37  ;;  %v2002_v46 = vmul.f32 %v1426_v38, %v849_v30  ;;  %v2003_v47 = vmul.f32 %v1427_v39, %v850_v31  ;;  %v1432_v49 = vmul.f32 %v3589_v1, %v855_v41  ;;  %v292_v39 = vld [vmem:[#allocation4 + $0x818] sm:$0xff] }
 0x104   :  { %v2004_v48 = vmul.f32 %v1428_v40, %v851_v32  ;;  %v2005_v50 = vmul.f32 %v1429_v42, %v852_v35  ;;  %v2006_v51 = vmul.f32 %v1430_v43, %v853_v36  ;;  %v1433_v53 = vmul.f32 %v3589_v1, %v856_v45  ;;  %v289_v32 = vld [vmem:[#allocation4 + $0x800] sm:$0xff] }
 0x105   :  { %v2007_v52 = vmul.f32 %v1431_v44, %v854_v37  ;;  %v2579_v57 = vadd.f32 %v3594_v10, %v2002_v46  ;;  %v2580_v58 = vadd.f32 %v3594_v10, %v2003_v47  ;;  %v2008_v60 = vmul.f32 %v1432_v49, %v855_v41  ;;  %v293_v40 = vld [vmem:[#allocation4 + $0x820] sm:$0xff]  ;;  %v294_v41 = vld [vmem:[#allocation4 + $0x828] sm:$0xff]  ;;  %v295_v46 = vld [vmem:[#allocation4 + $0x830] sm:$0xff] }
 0x106   :  { %v2581_v59 = vadd.f32 %v3594_v10, %v2004_v48  ;;  %v2582_v0 = vadd.f32 %v3594_v10, %v2005_v50  ;;  %v2583_v2 = vadd.f32 %v3594_v10, %v2006_v51  ;;  %v2009_v4 = vmul.f32 %v1433_v53, %v856_v45  ;;  %v296_v51 = vld [vmem:[#allocation4 + $0x838] sm:$0xff] }
 0x107   :  { %v2584_v3 = vadd.f32 %v3594_v10, %v2007_v52  ;;  %3155 = vst [vmem:[#allocation7 + $0x780] sm:$0xff] %v2579_v57  ;;  %3156 = vst [vmem:[#allocation7 + $0x788] sm:$0xff] %v2580_v58  ;;  %v2585_v6 = vadd.f32 %v3594_v10, %v2008_v60  ;;  %v857_v7 = vmax.f32 %v281_v54, 0.0  ;;  %v858_v8 = vmax.f32 %v282_v55, 0.0 }
 0x108   :  { %3157 = vst [vmem:[#allocation7 + $0x790] sm:$0xff] %v2581_v59  ;;  %v859_v9 = vmax.f32 %v283_v56, 0.0  ;;  %3158 = vst [vmem:[#allocation7 + $0x798] sm:$0xff] %v2582_v0  ;;  %v2586_v12 = vadd.f32 %v3594_v10, %v2009_v4  ;;  %v860_v13 = vmax.f32 %v284_v61, 0.0  ;;  %v861_v14 = vmax.f32 %v285_v62, 0.0 }
 0x109   :  { %3159 = vst [vmem:[#allocation7 + $0x7a0] sm:$0xff] %v2583_v2  ;;  %3160 = vst [vmem:[#allocation7 + $0x7a8] sm:$0xff] %v2584_v3  ;;  %v862_v15 = vmax.f32 %v286_v63, 0.0  ;;  %v1434_v16 = vmul.f32 %v3589_v1, %v857_v7  ;;  %v1435_v17 = vmul.f32 %v3589_v1, %v858_v8  ;;  %v863_v19 = vmax.f32 %v287_v5, 0.0 }
 0x10a   :  { %3161 = vst [vmem:[#allocation7 + $0x7b0] sm:$0xff] %v2585_v6  ;;  %v1436_v18 = vmul.f32 %v3589_v1, %v859_v9  ;;  %3162 = vst [vmem:[#allocation7 + $0x7b8] sm:$0xff] %v2586_v12  ;;  %v1437_v20 = vmul.f32 %v3589_v1, %v860_v13  ;;  %v1438_v21 = vmul.f32 %v3589_v1, %v861_v14  ;;  %v864_v23 = vmax.f32 %v288_v11, 0.0  ;;  %v298_v11 = vld [vmem:[#allocation4 + $0x848] sm:$0xff]  ;;  %v299_v12 = vld [vmem:[#allocation4 + $0x850] sm:$0xff] }
 0x10b   :  { %v1439_v22 = vmul.f32 %v3589_v1, %v862_v15  ;;  %v2010_v24 = vmul.f32 %v1434_v16, %v857_v7  ;;  %v2011_v25 = vmul.f32 %v1435_v17, %v858_v8  ;;  %v1440_v27 = vmul.f32 %v3589_v1, %v863_v19  ;;  %v300_v17 = vld [vmem:[#allocation4 + $0x858] sm:$0xff] }
 0x10c   :  { %v2012_v26 = vmul.f32 %v1436_v18, %v859_v9  ;;  %v2013_v28 = vmul.f32 %v1437_v20, %v860_v13  ;;  %v2014_v29 = vmul.f32 %v1438_v21, %v861_v14  ;;  %v1441_v31 = vmul.f32 %v3589_v1, %v864_v23  ;;  %v297_v9 = vld [vmem:[#allocation4 + $0x840] sm:$0xff] }
 0x10d   :  { %v2015_v30 = vmul.f32 %v1439_v22, %v862_v15  ;;  %v2587_v35 = vadd.f32 %v3594_v10, %v2010_v24  ;;  %v2588_v36 = vadd.f32 %v3594_v10, %v2011_v25  ;;  %v2016_v38 = vmul.f32 %v1440_v27, %v863_v19  ;;  %v301_v18 = vld [vmem:[#allocation4 + $0x860] sm:$0xff]  ;;  %v302_v19 = vld [vmem:[#allocation4 + $0x868] sm:$0xff]  ;;  %v303_v24 = vld [vmem:[#allocation4 + $0x870] sm:$0xff] }
 0x10e   :  { %v2589_v37 = vadd.f32 %v3594_v10, %v2012_v26  ;;  %v2590_v42 = vadd.f32 %v3594_v10, %v2013_v28  ;;  %v2591_v43 = vadd.f32 %v3594_v10, %v2014_v29  ;;  %v2017_v45 = vmul.f32 %v1441_v31, %v864_v23  ;;  %v304_v29 = vld [vmem:[#allocation4 + $0x878] sm:$0xff] }
 0x10f   :  { %v2592_v44 = vadd.f32 %v3594_v10, %v2015_v30  ;;  %3163 = vst [vmem:[#allocation7 + $0x7c0] sm:$0xff] %v2587_v35  ;;  %3164 = vst [vmem:[#allocation7 + $0x7c8] sm:$0xff] %v2588_v36  ;;  %v2593_v47 = vadd.f32 %v3594_v10, %v2016_v38  ;;  %v865_v48 = vmax.f32 %v289_v32, 0.0  ;;  %v866_v49 = vmax.f32 %v290_v33, 0.0 }
 0x110   :  { %3165 = vst [vmem:[#allocation7 + $0x7d0] sm:$0xff] %v2589_v37  ;;  %v867_v50 = vmax.f32 %v291_v34, 0.0  ;;  %3166 = vst [vmem:[#allocation7 + $0x7d8] sm:$0xff] %v2590_v42  ;;  %v2594_v52 = vadd.f32 %v3594_v10, %v2017_v45  ;;  %v868_v53 = vmax.f32 %v292_v39, 0.0  ;;  %v869_v54 = vmax.f32 %v293_v40, 0.0 }
 0x111   :  { %3167 = vst [vmem:[#allocation7 + $0x7e0] sm:$0xff] %v2591_v43  ;;  %3168 = vst [vmem:[#allocation7 + $0x7e8] sm:$0xff] %v2592_v44  ;;  %v870_v55 = vmax.f32 %v294_v41, 0.0  ;;  %v1442_v56 = vmul.f32 %v3589_v1, %v865_v48  ;;  %v1443_v57 = vmul.f32 %v3589_v1, %v866_v49  ;;  %v871_v59 = vmax.f32 %v295_v46, 0.0 }
 0x112   :  { %3169 = vst [vmem:[#allocation7 + $0x7f0] sm:$0xff] %v2593_v47  ;;  %v1444_v58 = vmul.f32 %v3589_v1, %v867_v50  ;;  %3170 = vst [vmem:[#allocation7 + $0x7f8] sm:$0xff] %v2594_v52  ;;  %v1445_v60 = vmul.f32 %v3589_v1, %v868_v53  ;;  %v1446_v61 = vmul.f32 %v3589_v1, %v869_v54  ;;  %v872_v63 = vmax.f32 %v296_v51, 0.0  ;;  %v306_v51 = vld [vmem:[#allocation4 + $0x888] sm:$0xff]  ;;  %v307_v52 = vld [vmem:[#allocation4 + $0x890] sm:$0xff] }
 0x113   :  { %v1447_v62 = vmul.f32 %v3589_v1, %v870_v55  ;;  %v2018_v0 = vmul.f32 %v1442_v56, %v865_v48  ;;  %v2019_v2 = vmul.f32 %v1443_v57, %v866_v49  ;;  %v1448_v4 = vmul.f32 %v3589_v1, %v871_v59  ;;  %v308_v57 = vld [vmem:[#allocation4 + $0x898] sm:$0xff] }
 0x114   :  { %v2020_v3 = vmul.f32 %v1444_v58, %v867_v50  ;;  %v2021_v5 = vmul.f32 %v1445_v60, %v868_v53  ;;  %v2022_v6 = vmul.f32 %v1446_v61, %v869_v54  ;;  %v1449_v8 = vmul.f32 %v3589_v1, %v872_v63  ;;  %v305_v50 = vld [vmem:[#allocation4 + $0x880] sm:$0xff] }
 0x115   :  { %v2023_v7 = vmul.f32 %v1447_v62, %v870_v55  ;;  %v2595_v13 = vadd.f32 %v3594_v10, %v2018_v0  ;;  %v2596_v14 = vadd.f32 %v3594_v10, %v2019_v2  ;;  %v2024_v16 = vmul.f32 %v1448_v4, %v871_v59  ;;  %v309_v58 = vld [vmem:[#allocation4 + $0x8a0] sm:$0xff]  ;;  %v310_v59 = vld [vmem:[#allocation4 + $0x8a8] sm:$0xff]  ;;  %v311_v0 = vld [vmem:[#allocation4 + $0x8b0] sm:$0xff] }
 0x116   :  { %v2597_v15 = vadd.f32 %v3594_v10, %v2020_v3  ;;  %v2598_v20 = vadd.f32 %v3594_v10, %v2021_v5  ;;  %v2599_v21 = vadd.f32 %v3594_v10, %v2022_v6  ;;  %v2025_v23 = vmul.f32 %v1449_v8, %v872_v63  ;;  %v312_v6 = vld [vmem:[#allocation4 + $0x8b8] sm:$0xff] }
 0x117   :  { %v2600_v22 = vadd.f32 %v3594_v10, %v2023_v7  ;;  %3171 = vst [vmem:[#allocation7 + $0x800] sm:$0xff] %v2595_v13  ;;  %3172 = vst [vmem:[#allocation7 + $0x808] sm:$0xff] %v2596_v14  ;;  %v2601_v25 = vadd.f32 %v3594_v10, %v2024_v16  ;;  %v873_v26 = vmax.f32 %v297_v9, 0.0  ;;  %v874_v27 = vmax.f32 %v298_v11, 0.0 }
 0x118   :  { %3173 = vst [vmem:[#allocation7 + $0x810] sm:$0xff] %v2597_v15  ;;  %v875_v28 = vmax.f32 %v299_v12, 0.0  ;;  %3174 = vst [vmem:[#allocation7 + $0x818] sm:$0xff] %v2598_v20  ;;  %v2602_v30 = vadd.f32 %v3594_v10, %v2025_v23  ;;  %v876_v31 = vmax.f32 %v300_v17, 0.0  ;;  %v877_v32 = vmax.f32 %v301_v18, 0.0 }
 0x119   :  { %3175 = vst [vmem:[#allocation7 + $0x820] sm:$0xff] %v2599_v21  ;;  %3176 = vst [vmem:[#allocation7 + $0x828] sm:$0xff] %v2600_v22  ;;  %v878_v33 = vmax.f32 %v302_v19, 0.0  ;;  %v1450_v34 = vmul.f32 %v3589_v1, %v873_v26  ;;  %v1451_v35 = vmul.f32 %v3589_v1, %v874_v27  ;;  %v879_v37 = vmax.f32 %v303_v24, 0.0 }
 0x11a   :  { %3177 = vst [vmem:[#allocation7 + $0x830] sm:$0xff] %v2601_v25  ;;  %v1452_v36 = vmul.f32 %v3589_v1, %v875_v28  ;;  %3178 = vst [vmem:[#allocation7 + $0x838] sm:$0xff] %v2602_v30  ;;  %v1453_v38 = vmul.f32 %v3589_v1, %v876_v31  ;;  %v1454_v39 = vmul.f32 %v3589_v1, %v877_v32  ;;  %v880_v41 = vmax.f32 %v304_v29, 0.0  ;;  %v314_v29 = vld [vmem:[#allocation4 + $0x8c8] sm:$0xff]  ;;  %v315_v30 = vld [vmem:[#allocation4 + $0x8d0] sm:$0xff] }
 0x11b   :  { %v1455_v40 = vmul.f32 %v3589_v1, %v878_v33  ;;  %v2026_v42 = vmul.f32 %v1450_v34, %v873_v26  ;;  %v2027_v43 = vmul.f32 %v1451_v35, %v874_v27  ;;  %v1456_v45 = vmul.f32 %v3589_v1, %v879_v37  ;;  %v316_v35 = vld [vmem:[#allocation4 + $0x8d8] sm:$0xff] }
 0x11c   :  { %v2028_v44 = vmul.f32 %v1452_v36, %v875_v28  ;;  %v2029_v46 = vmul.f32 %v1453_v38, %v876_v31  ;;  %v2030_v47 = vmul.f32 %v1454_v39, %v877_v32  ;;  %v1457_v49 = vmul.f32 %v3589_v1, %v880_v41  ;;  %v313_v28 = vld [vmem:[#allocation4 + $0x8c0] sm:$0xff] }
 0x11d   :  { %v2031_v48 = vmul.f32 %v1455_v40, %v878_v33  ;;  %v2603_v53 = vadd.f32 %v3594_v10, %v2026_v42  ;;  %v2604_v54 = vadd.f32 %v3594_v10, %v2027_v43  ;;  %v2032_v56 = vmul.f32 %v1456_v45, %v879_v37  ;;  %v317_v36 = vld [vmem:[#allocation4 + $0x8e0] sm:$0xff]  ;;  %v318_v37 = vld [vmem:[#allocation4 + $0x8e8] sm:$0xff]  ;;  %v319_v42 = vld [vmem:[#allocation4 + $0x8f0] sm:$0xff] }
 0x11e   :  { %v2605_v55 = vadd.f32 %v3594_v10, %v2028_v44  ;;  %v2606_v60 = vadd.f32 %v3594_v10, %v2029_v46  ;;  %v2607_v61 = vadd.f32 %v3594_v10, %v2030_v47  ;;  %v2033_v63 = vmul.f32 %v1457_v49, %v880_v41  ;;  %v320_v47 = vld [vmem:[#allocation4 + $0x8f8] sm:$0xff] }
 0x11f   :  { %v2608_v62 = vadd.f32 %v3594_v10, %v2031_v48  ;;  %3179 = vst [vmem:[#allocation7 + $0x840] sm:$0xff] %v2603_v53  ;;  %3180 = vst [vmem:[#allocation7 + $0x848] sm:$0xff] %v2604_v54  ;;  %v2609_v2 = vadd.f32 %v3594_v10, %v2032_v56  ;;  %v881_v3 = vmax.f32 %v305_v50, 0.0  ;;  %v882_v4 = vmax.f32 %v306_v51, 0.0 }
 0x120   :  { %3181 = vst [vmem:[#allocation7 + $0x850] sm:$0xff] %v2605_v55  ;;  %v883_v5 = vmax.f32 %v307_v52, 0.0  ;;  %3182 = vst [vmem:[#allocation7 + $0x858] sm:$0xff] %v2606_v60  ;;  %v2610_v7 = vadd.f32 %v3594_v10, %v2033_v63  ;;  %v884_v8 = vmax.f32 %v308_v57, 0.0  ;;  %v885_v9 = vmax.f32 %v309_v58, 0.0 }
 0x121   :  { %3183 = vst [vmem:[#allocation7 + $0x860] sm:$0xff] %v2607_v61  ;;  %3184 = vst [vmem:[#allocation7 + $0x868] sm:$0xff] %v2608_v62  ;;  %v886_v11 = vmax.f32 %v310_v59, 0.0  ;;  %v1458_v12 = vmul.f32 %v3589_v1, %v881_v3  ;;  %v1459_v13 = vmul.f32 %v3589_v1, %v882_v4  ;;  %v887_v15 = vmax.f32 %v311_v0, 0.0 }
 0x122   :  { %3185 = vst [vmem:[#allocation7 + $0x870] sm:$0xff] %v2609_v2  ;;  %v1460_v14 = vmul.f32 %v3589_v1, %v883_v5  ;;  %3186 = vst [vmem:[#allocation7 + $0x878] sm:$0xff] %v2610_v7  ;;  %v1461_v16 = vmul.f32 %v3589_v1, %v884_v8  ;;  %v1462_v17 = vmul.f32 %v3589_v1, %v885_v9  ;;  %v888_v19 = vmax.f32 %v312_v6, 0.0  ;;  %v322_v6 = vld [vmem:[#allocation4 + $0x908] sm:$0xff]  ;;  %v323_v7 = vld [vmem:[#allocation4 + $0x910] sm:$0xff] }
 0x123   :  { %v1463_v18 = vmul.f32 %v3589_v1, %v886_v11  ;;  %v2034_v20 = vmul.f32 %v1458_v12, %v881_v3  ;;  %v2035_v21 = vmul.f32 %v1459_v13, %v882_v4  ;;  %v1464_v23 = vmul.f32 %v3589_v1, %v887_v15  ;;  %v324_v13 = vld [vmem:[#allocation4 + $0x918] sm:$0xff] }
 0x124   :  { %v2036_v22 = vmul.f32 %v1460_v14, %v883_v5  ;;  %v2037_v24 = vmul.f32 %v1461_v16, %v884_v8  ;;  %v2038_v25 = vmul.f32 %v1462_v17, %v885_v9  ;;  %v1465_v27 = vmul.f32 %v3589_v1, %v888_v19  ;;  %v321_v5 = vld [vmem:[#allocation4 + $0x900] sm:$0xff] }
 0x125   :  { %v2039_v26 = vmul.f32 %v1463_v18, %v886_v11  ;;  %v2611_v31 = vadd.f32 %v3594_v10, %v2034_v20  ;;  %v2612_v32 = vadd.f32 %v3594_v10, %v2035_v21  ;;  %v2040_v34 = vmul.f32 %v1464_v23, %v887_v15  ;;  %v325_v14 = vld [vmem:[#allocation4 + $0x920] sm:$0xff]  ;;  %v326_v15 = vld [vmem:[#allocation4 + $0x928] sm:$0xff]  ;;  %v327_v20 = vld [vmem:[#allocation4 + $0x930] sm:$0xff] }
 0x126   :  { %v2613_v33 = vadd.f32 %v3594_v10, %v2036_v22  ;;  %v2614_v38 = vadd.f32 %v3594_v10, %v2037_v24  ;;  %v2615_v39 = vadd.f32 %v3594_v10, %v2038_v25  ;;  %v2041_v41 = vmul.f32 %v1465_v27, %v888_v19  ;;  %v328_v25 = vld [vmem:[#allocation4 + $0x938] sm:$0xff] }
 0x127   :  { %v2616_v40 = vadd.f32 %v3594_v10, %v2039_v26  ;;  %3187 = vst [vmem:[#allocation7 + $0x880] sm:$0xff] %v2611_v31  ;;  %3188 = vst [vmem:[#allocation7 + $0x888] sm:$0xff] %v2612_v32  ;;  %v2617_v43 = vadd.f32 %v3594_v10, %v2040_v34  ;;  %v889_v44 = vmax.f32 %v313_v28, 0.0  ;;  %v890_v45 = vmax.f32 %v314_v29, 0.0 }
 0x128   :  { %3189 = vst [vmem:[#allocation7 + $0x890] sm:$0xff] %v2613_v33  ;;  %v891_v46 = vmax.f32 %v315_v30, 0.0  ;;  %3190 = vst [vmem:[#allocation7 + $0x898] sm:$0xff] %v2614_v38  ;;  %v2618_v48 = vadd.f32 %v3594_v10, %v2041_v41  ;;  %v892_v49 = vmax.f32 %v316_v35, 0.0  ;;  %v893_v50 = vmax.f32 %v317_v36, 0.0 }
 0x129   :  { %3191 = vst [vmem:[#allocation7 + $0x8a0] sm:$0xff] %v2615_v39  ;;  %3192 = vst [vmem:[#allocation7 + $0x8a8] sm:$0xff] %v2616_v40  ;;  %v894_v51 = vmax.f32 %v318_v37, 0.0  ;;  %v1466_v52 = vmul.f32 %v3589_v1, %v889_v44  ;;  %v1467_v53 = vmul.f32 %v3589_v1, %v890_v45  ;;  %v895_v55 = vmax.f32 %v319_v42, 0.0 }
 0x12a   :  { %3193 = vst [vmem:[#allocation7 + $0x8b0] sm:$0xff] %v2617_v43  ;;  %v1468_v54 = vmul.f32 %v3589_v1, %v891_v46  ;;  %3194 = vst [vmem:[#allocation7 + $0x8b8] sm:$0xff] %v2618_v48  ;;  %v1469_v56 = vmul.f32 %v3589_v1, %v892_v49  ;;  %v1470_v57 = vmul.f32 %v3589_v1, %v893_v50  ;;  %v896_v59 = vmax.f32 %v320_v47, 0.0  ;;  %v330_v47 = vld [vmem:[#allocation4 + $0x948] sm:$0xff]  ;;  %v331_v48 = vld [vmem:[#allocation4 + $0x950] sm:$0xff] }
 0x12b   :  { %v1471_v58 = vmul.f32 %v3589_v1, %v894_v51  ;;  %v2042_v60 = vmul.f32 %v1466_v52, %v889_v44  ;;  %v2043_v61 = vmul.f32 %v1467_v53, %v890_v45  ;;  %v1472_v63 = vmul.f32 %v3589_v1, %v895_v55  ;;  %v332_v53 = vld [vmem:[#allocation4 + $0x958] sm:$0xff] }
 0x12c   :  { %v2044_v62 = vmul.f32 %v1468_v54, %v891_v46  ;;  %v2045_v0 = vmul.f32 %v1469_v56, %v892_v49  ;;  %v2046_v2 = vmul.f32 %v1470_v57, %v893_v50  ;;  %v1473_v4 = vmul.f32 %v3589_v1, %v896_v59  ;;  %v329_v46 = vld [vmem:[#allocation4 + $0x940] sm:$0xff] }
 0x12d   :  { %v2047_v3 = vmul.f32 %v1471_v58, %v894_v51  ;;  %v2619_v8 = vadd.f32 %v3594_v10, %v2042_v60  ;;  %v2620_v9 = vadd.f32 %v3594_v10, %v2043_v61  ;;  %v2048_v12 = vmul.f32 %v1472_v63, %v895_v55  ;;  %v333_v54 = vld [vmem:[#allocation4 + $0x960] sm:$0xff]  ;;  %v334_v55 = vld [vmem:[#allocation4 + $0x968] sm:$0xff]  ;;  %v335_v60 = vld [vmem:[#allocation4 + $0x970] sm:$0xff] }
 0x12e   :  { %v2621_v11 = vadd.f32 %v3594_v10, %v2044_v62  ;;  %v2622_v16 = vadd.f32 %v3594_v10, %v2045_v0  ;;  %v2623_v17 = vadd.f32 %v3594_v10, %v2046_v2  ;;  %v2049_v19 = vmul.f32 %v1473_v4, %v896_v59  ;;  %v336_v2 = vld [vmem:[#allocation4 + $0x978] sm:$0xff] }
 0x12f   :  { %v2624_v18 = vadd.f32 %v3594_v10, %v2047_v3  ;;  %3195 = vst [vmem:[#allocation7 + $0x8c0] sm:$0xff] %v2619_v8  ;;  %3196 = vst [vmem:[#allocation7 + $0x8c8] sm:$0xff] %v2620_v9  ;;  %v2625_v21 = vadd.f32 %v3594_v10, %v2048_v12  ;;  %v897_v22 = vmax.f32 %v321_v5, 0.0  ;;  %v898_v23 = vmax.f32 %v322_v6, 0.0 }
 0x130   :  { %3197 = vst [vmem:[#allocation7 + $0x8d0] sm:$0xff] %v2621_v11  ;;  %v899_v24 = vmax.f32 %v323_v7, 0.0  ;;  %3198 = vst [vmem:[#allocation7 + $0x8d8] sm:$0xff] %v2622_v16  ;;  %v2626_v26 = vadd.f32 %v3594_v10, %v2049_v19  ;;  %v900_v27 = vmax.f32 %v324_v13, 0.0  ;;  %v901_v28 = vmax.f32 %v325_v14, 0.0 }
 0x131   :  { %3199 = vst [vmem:[#allocation7 + $0x8e0] sm:$0xff] %v2623_v17  ;;  %3200 = vst [vmem:[#allocation7 + $0x8e8] sm:$0xff] %v2624_v18  ;;  %v902_v29 = vmax.f32 %v326_v15, 0.0  ;;  %v1474_v30 = vmul.f32 %v3589_v1, %v897_v22  ;;  %v1475_v31 = vmul.f32 %v3589_v1, %v898_v23  ;;  %v903_v33 = vmax.f32 %v327_v20, 0.0 }
 0x132   :  { %3201 = vst [vmem:[#allocation7 + $0x8f0] sm:$0xff] %v2625_v21  ;;  %v1476_v32 = vmul.f32 %v3589_v1, %v899_v24  ;;  %3202 = vst [vmem:[#allocation7 + $0x8f8] sm:$0xff] %v2626_v26  ;;  %v1477_v34 = vmul.f32 %v3589_v1, %v900_v27  ;;  %v1478_v35 = vmul.f32 %v3589_v1, %v901_v28  ;;  %v904_v37 = vmax.f32 %v328_v25, 0.0  ;;  %v338_v25 = vld [vmem:[#allocation4 + $0x988] sm:$0xff]  ;;  %v339_v26 = vld [vmem:[#allocation4 + $0x990] sm:$0xff] }
 0x133   :  { %v1479_v36 = vmul.f32 %v3589_v1, %v902_v29  ;;  %v2050_v38 = vmul.f32 %v1474_v30, %v897_v22  ;;  %v2051_v39 = vmul.f32 %v1475_v31, %v898_v23  ;;  %v1480_v41 = vmul.f32 %v3589_v1, %v903_v33  ;;  %v340_v31 = vld [vmem:[#allocation4 + $0x998] sm:$0xff] }
 0x134   :  { %v2052_v40 = vmul.f32 %v1476_v32, %v899_v24  ;;  %v2053_v42 = vmul.f32 %v1477_v34, %v900_v27  ;;  %v2054_v43 = vmul.f32 %v1478_v35, %v901_v28  ;;  %v1481_v45 = vmul.f32 %v3589_v1, %v904_v37  ;;  %v337_v24 = vld [vmem:[#allocation4 + $0x980] sm:$0xff] }
 0x135   :  { %v2055_v44 = vmul.f32 %v1479_v36, %v902_v29  ;;  %v2627_v49 = vadd.f32 %v3594_v10, %v2050_v38  ;;  %v2628_v50 = vadd.f32 %v3594_v10, %v2051_v39  ;;  %v2056_v52 = vmul.f32 %v1480_v41, %v903_v33  ;;  %v341_v32 = vld [vmem:[#allocation4 + $0x9a0] sm:$0xff]  ;;  %v342_v33 = vld [vmem:[#allocation4 + $0x9a8] sm:$0xff]  ;;  %v343_v38 = vld [vmem:[#allocation4 + $0x9b0] sm:$0xff] }
 0x136   :  { %v2629_v51 = vadd.f32 %v3594_v10, %v2052_v40  ;;  %v2630_v56 = vadd.f32 %v3594_v10, %v2053_v42  ;;  %v2631_v57 = vadd.f32 %v3594_v10, %v2054_v43  ;;  %v2057_v59 = vmul.f32 %v1481_v45, %v904_v37  ;;  %v344_v43 = vld [vmem:[#allocation4 + $0x9b8] sm:$0xff] }
 0x137   :  { %v2632_v58 = vadd.f32 %v3594_v10, %v2055_v44  ;;  %3203 = vst [vmem:[#allocation7 + $0x900] sm:$0xff] %v2627_v49  ;;  %3204 = vst [vmem:[#allocation7 + $0x908] sm:$0xff] %v2628_v50  ;;  %v2633_v61 = vadd.f32 %v3594_v10, %v2056_v52  ;;  %v905_v62 = vmax.f32 %v329_v46, 0.0  ;;  %v906_v63 = vmax.f32 %v330_v47, 0.0 }
 0x138   :  { %3205 = vst [vmem:[#allocation7 + $0x910] sm:$0xff] %v2629_v51  ;;  %v907_v0 = vmax.f32 %v331_v48, 0.0  ;;  %3206 = vst [vmem:[#allocation7 + $0x918] sm:$0xff] %v2630_v56  ;;  %v2634_v3 = vadd.f32 %v3594_v10, %v2057_v59  ;;  %v908_v4 = vmax.f32 %v332_v53, 0.0  ;;  %v909_v5 = vmax.f32 %v333_v54, 0.0 }
 0x139   :  { %3207 = vst [vmem:[#allocation7 + $0x920] sm:$0xff] %v2631_v57  ;;  %3208 = vst [vmem:[#allocation7 + $0x928] sm:$0xff] %v2632_v58  ;;  %v910_v6 = vmax.f32 %v334_v55, 0.0  ;;  %v1482_v7 = vmul.f32 %v3589_v1, %v905_v62  ;;  %v1483_v8 = vmul.f32 %v3589_v1, %v906_v63  ;;  %v911_v11 = vmax.f32 %v335_v60, 0.0 }
 0x13a   :  { %3209 = vst [vmem:[#allocation7 + $0x930] sm:$0xff] %v2633_v61  ;;  %v1484_v9 = vmul.f32 %v3589_v1, %v907_v0  ;;  %3210 = vst [vmem:[#allocation7 + $0x938] sm:$0xff] %v2634_v3  ;;  %v1485_v12 = vmul.f32 %v3589_v1, %v908_v4  ;;  %v1486_v13 = vmul.f32 %v3589_v1, %v909_v5  ;;  %v912_v15 = vmax.f32 %v336_v2, 0.0  ;;  %v346_v2 = vld [vmem:[#allocation4 + $0x9c8] sm:$0xff]  ;;  %v347_v3 = vld [vmem:[#allocation4 + $0x9d0] sm:$0xff] }
 0x13b   :  { %v1487_v14 = vmul.f32 %v3589_v1, %v910_v6  ;;  %v2058_v16 = vmul.f32 %v1482_v7, %v905_v62  ;;  %v2059_v17 = vmul.f32 %v1483_v8, %v906_v63  ;;  %v1488_v19 = vmul.f32 %v3589_v1, %v911_v11  ;;  %v348_v8 = vld [vmem:[#allocation4 + $0x9d8] sm:$0xff] }
 0x13c   :  { %v2060_v18 = vmul.f32 %v1484_v9, %v907_v0  ;;  %v2061_v20 = vmul.f32 %v1485_v12, %v908_v4  ;;  %v2062_v21 = vmul.f32 %v1486_v13, %v909_v5  ;;  %v1489_v23 = vmul.f32 %v3589_v1, %v912_v15  ;;  %v345_v0 = vld [vmem:[#allocation4 + $0x9c0] sm:$0xff] }
 0x13d   :  { %v2063_v22 = vmul.f32 %v1487_v14, %v910_v6  ;;  %v2635_v27 = vadd.f32 %v3594_v10, %v2058_v16  ;;  %v2636_v28 = vadd.f32 %v3594_v10, %v2059_v17  ;;  %v2064_v30 = vmul.f32 %v1488_v19, %v911_v11  ;;  %v349_v9 = vld [vmem:[#allocation4 + $0x9e0] sm:$0xff]  ;;  %v350_v11 = vld [vmem:[#allocation4 + $0x9e8] sm:$0xff]  ;;  %v351_v16 = vld [vmem:[#allocation4 + $0x9f0] sm:$0xff] }
 0x13e   :  { %v2637_v29 = vadd.f32 %v3594_v10, %v2060_v18  ;;  %v2638_v34 = vadd.f32 %v3594_v10, %v2061_v20  ;;  %v2639_v35 = vadd.f32 %v3594_v10, %v2062_v21  ;;  %v2065_v37 = vmul.f32 %v1489_v23, %v912_v15  ;;  %v352_v21 = vld [vmem:[#allocation4 + $0x9f8] sm:$0xff] }
 0x13f   :  { %v2640_v36 = vadd.f32 %v3594_v10, %v2063_v22  ;;  %3211 = vst [vmem:[#allocation7 + $0x940] sm:$0xff] %v2635_v27  ;;  %3212 = vst [vmem:[#allocation7 + $0x948] sm:$0xff] %v2636_v28  ;;  %v2641_v39 = vadd.f32 %v3594_v10, %v2064_v30  ;;  %v913_v40 = vmax.f32 %v337_v24, 0.0  ;;  %v914_v41 = vmax.f32 %v338_v25, 0.0 }
 0x140   :  { %3213 = vst [vmem:[#allocation7 + $0x950] sm:$0xff] %v2637_v29  ;;  %v915_v42 = vmax.f32 %v339_v26, 0.0  ;;  %3214 = vst [vmem:[#allocation7 + $0x958] sm:$0xff] %v2638_v34  ;;  %v2642_v44 = vadd.f32 %v3594_v10, %v2065_v37  ;;  %v916_v45 = vmax.f32 %v340_v31, 0.0  ;;  %v917_v46 = vmax.f32 %v341_v32, 0.0 }
 0x141   :  { %3215 = vst [vmem:[#allocation7 + $0x960] sm:$0xff] %v2639_v35  ;;  %3216 = vst [vmem:[#allocation7 + $0x968] sm:$0xff] %v2640_v36  ;;  %v918_v47 = vmax.f32 %v342_v33, 0.0  ;;  %v1490_v48 = vmul.f32 %v3589_v1, %v913_v40  ;;  %v1491_v49 = vmul.f32 %v3589_v1, %v914_v41  ;;  %v919_v51 = vmax.f32 %v343_v38, 0.0 }
 0x142   :  { %3217 = vst [vmem:[#allocation7 + $0x970] sm:$0xff] %v2641_v39  ;;  %v1492_v50 = vmul.f32 %v3589_v1, %v915_v42  ;;  %3218 = vst [vmem:[#allocation7 + $0x978] sm:$0xff] %v2642_v44  ;;  %v1493_v52 = vmul.f32 %v3589_v1, %v916_v45  ;;  %v1494_v53 = vmul.f32 %v3589_v1, %v917_v46  ;;  %v920_v55 = vmax.f32 %v344_v43, 0.0  ;;  %v354_v43 = vld [vmem:[#allocation4 + $0xa08] sm:$0xff]  ;;  %v355_v44 = vld [vmem:[#allocation4 + $0xa10] sm:$0xff] }
 0x143   :  { %v1495_v54 = vmul.f32 %v3589_v1, %v918_v47  ;;  %v2066_v56 = vmul.f32 %v1490_v48, %v913_v40  ;;  %v2067_v57 = vmul.f32 %v1491_v49, %v914_v41  ;;  %v1496_v59 = vmul.f32 %v3589_v1, %v919_v51  ;;  %v356_v49 = vld [vmem:[#allocation4 + $0xa18] sm:$0xff] }
 0x144   :  { %v2068_v58 = vmul.f32 %v1492_v50, %v915_v42  ;;  %v2069_v60 = vmul.f32 %v1493_v52, %v916_v45  ;;  %v2070_v61 = vmul.f32 %v1494_v53, %v917_v46  ;;  %v1497_v63 = vmul.f32 %v3589_v1, %v920_v55  ;;  %v353_v42 = vld [vmem:[#allocation4 + $0xa00] sm:$0xff] }
 0x145   :  { %v2071_v62 = vmul.f32 %v1495_v54, %v918_v47  ;;  %v2643_v4 = vadd.f32 %v3594_v10, %v2066_v56  ;;  %v2644_v5 = vadd.f32 %v3594_v10, %v2067_v57  ;;  %v2072_v7 = vmul.f32 %v1496_v59, %v919_v51  ;;  %v357_v50 = vld [vmem:[#allocation4 + $0xa20] sm:$0xff]  ;;  %v358_v51 = vld [vmem:[#allocation4 + $0xa28] sm:$0xff]  ;;  %v359_v56 = vld [vmem:[#allocation4 + $0xa30] sm:$0xff] }
 0x146   :  { %v2645_v6 = vadd.f32 %v3594_v10, %v2068_v58  ;;  %v2646_v12 = vadd.f32 %v3594_v10, %v2069_v60  ;;  %v2647_v13 = vadd.f32 %v3594_v10, %v2070_v61  ;;  %v2073_v15 = vmul.f32 %v1497_v63, %v920_v55  ;;  %v360_v61 = vld [vmem:[#allocation4 + $0xa38] sm:$0xff] }
 0x147   :  { %v2648_v14 = vadd.f32 %v3594_v10, %v2071_v62  ;;  %3219 = vst [vmem:[#allocation7 + $0x980] sm:$0xff] %v2643_v4  ;;  %3220 = vst [vmem:[#allocation7 + $0x988] sm:$0xff] %v2644_v5  ;;  %v2649_v17 = vadd.f32 %v3594_v10, %v2072_v7  ;;  %v921_v18 = vmax.f32 %v345_v0, 0.0  ;;  %v922_v19 = vmax.f32 %v346_v2, 0.0 }
 0x148   :  { %3221 = vst [vmem:[#allocation7 + $0x990] sm:$0xff] %v2645_v6  ;;  %v923_v20 = vmax.f32 %v347_v3, 0.0  ;;  %3222 = vst [vmem:[#allocation7 + $0x998] sm:$0xff] %v2646_v12  ;;  %v2650_v22 = vadd.f32 %v3594_v10, %v2073_v15  ;;  %v924_v23 = vmax.f32 %v348_v8, 0.0  ;;  %v925_v24 = vmax.f32 %v349_v9, 0.0 }
 0x149   :  { %3223 = vst [vmem:[#allocation7 + $0x9a0] sm:$0xff] %v2647_v13  ;;  %3224 = vst [vmem:[#allocation7 + $0x9a8] sm:$0xff] %v2648_v14  ;;  %v926_v25 = vmax.f32 %v350_v11, 0.0  ;;  %v1498_v26 = vmul.f32 %v3589_v1, %v921_v18  ;;  %v1499_v27 = vmul.f32 %v3589_v1, %v922_v19  ;;  %v927_v29 = vmax.f32 %v351_v16, 0.0 }
 0x14a   :  { %3225 = vst [vmem:[#allocation7 + $0x9b0] sm:$0xff] %v2649_v17  ;;  %v1500_v28 = vmul.f32 %v3589_v1, %v923_v20  ;;  %3226 = vst [vmem:[#allocation7 + $0x9b8] sm:$0xff] %v2650_v22  ;;  %v1501_v30 = vmul.f32 %v3589_v1, %v924_v23  ;;  %v1502_v31 = vmul.f32 %v3589_v1, %v925_v24  ;;  %v928_v33 = vmax.f32 %v352_v21, 0.0  ;;  %v362_v21 = vld [vmem:[#allocation4 + $0xa48] sm:$0xff]  ;;  %v363_v22 = vld [vmem:[#allocation4 + $0xa50] sm:$0xff] }
 0x14b   :  { %v1503_v32 = vmul.f32 %v3589_v1, %v926_v25  ;;  %v2074_v34 = vmul.f32 %v1498_v26, %v921_v18  ;;  %v2075_v35 = vmul.f32 %v1499_v27, %v922_v19  ;;  %v1504_v37 = vmul.f32 %v3589_v1, %v927_v29  ;;  %v364_v27 = vld [vmem:[#allocation4 + $0xa58] sm:$0xff] }
 0x14c   :  { %v2076_v36 = vmul.f32 %v1500_v28, %v923_v20  ;;  %v2077_v38 = vmul.f32 %v1501_v30, %v924_v23  ;;  %v2078_v39 = vmul.f32 %v1502_v31, %v925_v24  ;;  %v1505_v41 = vmul.f32 %v3589_v1, %v928_v33  ;;  %v361_v20 = vld [vmem:[#allocation4 + $0xa40] sm:$0xff] }
 0x14d   :  { %v2079_v40 = vmul.f32 %v1503_v32, %v926_v25  ;;  %v2651_v45 = vadd.f32 %v3594_v10, %v2074_v34  ;;  %v2652_v46 = vadd.f32 %v3594_v10, %v2075_v35  ;;  %v2080_v48 = vmul.f32 %v1504_v37, %v927_v29  ;;  %v365_v28 = vld [vmem:[#allocation4 + $0xa60] sm:$0xff]  ;;  %v366_v29 = vld [vmem:[#allocation4 + $0xa68] sm:$0xff]  ;;  %v367_v34 = vld [vmem:[#allocation4 + $0xa70] sm:$0xff] }
 0x14e   :  { %v2653_v47 = vadd.f32 %v3594_v10, %v2076_v36  ;;  %v2654_v52 = vadd.f32 %v3594_v10, %v2077_v38  ;;  %v2655_v53 = vadd.f32 %v3594_v10, %v2078_v39  ;;  %v2081_v55 = vmul.f32 %v1505_v41, %v928_v33  ;;  %v368_v39 = vld [vmem:[#allocation4 + $0xa78] sm:$0xff] }
 0x14f   :  { %v2656_v54 = vadd.f32 %v3594_v10, %v2079_v40  ;;  %3227 = vst [vmem:[#allocation7 + $0x9c0] sm:$0xff] %v2651_v45  ;;  %3228 = vst [vmem:[#allocation7 + $0x9c8] sm:$0xff] %v2652_v46  ;;  %v2657_v57 = vadd.f32 %v3594_v10, %v2080_v48  ;;  %v929_v58 = vmax.f32 %v353_v42, 0.0  ;;  %v930_v59 = vmax.f32 %v354_v43, 0.0 }
 0x150   :  { %3229 = vst [vmem:[#allocation7 + $0x9d0] sm:$0xff] %v2653_v47  ;;  %v931_v60 = vmax.f32 %v355_v44, 0.0  ;;  %3230 = vst [vmem:[#allocation7 + $0x9d8] sm:$0xff] %v2654_v52  ;;  %v2658_v62 = vadd.f32 %v3594_v10, %v2081_v55  ;;  %v932_v63 = vmax.f32 %v356_v49, 0.0  ;;  %v933_v0 = vmax.f32 %v357_v50, 0.0 }
 0x151   :  { %3231 = vst [vmem:[#allocation7 + $0x9e0] sm:$0xff] %v2655_v53  ;;  %3232 = vst [vmem:[#allocation7 + $0x9e8] sm:$0xff] %v2656_v54  ;;  %v934_v2 = vmax.f32 %v358_v51, 0.0  ;;  %v1506_v3 = vmul.f32 %v3589_v1, %v929_v58  ;;  %v1507_v4 = vmul.f32 %v3589_v1, %v930_v59  ;;  %v935_v6 = vmax.f32 %v359_v56, 0.0 }
 0x152   :  { %3233 = vst [vmem:[#allocation7 + $0x9f0] sm:$0xff] %v2657_v57  ;;  %v1508_v5 = vmul.f32 %v3589_v1, %v931_v60  ;;  %3234 = vst [vmem:[#allocation7 + $0x9f8] sm:$0xff] %v2658_v62  ;;  %v1509_v7 = vmul.f32 %v3589_v1, %v932_v63  ;;  %v1510_v8 = vmul.f32 %v3589_v1, %v933_v0  ;;  %v936_v11 = vmax.f32 %v360_v61, 0.0  ;;  %v370_v61 = vld [vmem:[#allocation4 + $0xa88] sm:$0xff]  ;;  %v371_v62 = vld [vmem:[#allocation4 + $0xa90] sm:$0xff] }
 0x153   :  { %v1511_v9 = vmul.f32 %v3589_v1, %v934_v2  ;;  %v2082_v12 = vmul.f32 %v1506_v3, %v929_v58  ;;  %v2083_v13 = vmul.f32 %v1507_v4, %v930_v59  ;;  %v1512_v15 = vmul.f32 %v3589_v1, %v935_v6  ;;  %v372_v4 = vld [vmem:[#allocation4 + $0xa98] sm:$0xff] }
 0x154   :  { %v2084_v14 = vmul.f32 %v1508_v5, %v931_v60  ;;  %v2085_v16 = vmul.f32 %v1509_v7, %v932_v63  ;;  %v2086_v17 = vmul.f32 %v1510_v8, %v933_v0  ;;  %v1513_v19 = vmul.f32 %v3589_v1, %v936_v11  ;;  %v369_v60 = vld [vmem:[#allocation4 + $0xa80] sm:$0xff] }
 0x155   :  { %v2087_v18 = vmul.f32 %v1511_v9, %v934_v2  ;;  %v2659_v23 = vadd.f32 %v3594_v10, %v2082_v12  ;;  %v2660_v24 = vadd.f32 %v3594_v10, %v2083_v13  ;;  %v2088_v26 = vmul.f32 %v1512_v15, %v935_v6  ;;  %v373_v5 = vld [vmem:[#allocation4 + $0xaa0] sm:$0xff]  ;;  %v374_v6 = vld [vmem:[#allocation4 + $0xaa8] sm:$0xff]  ;;  %v375_v12 = vld [vmem:[#allocation4 + $0xab0] sm:$0xff] }
 0x156   :  { %v2661_v25 = vadd.f32 %v3594_v10, %v2084_v14  ;;  %v2662_v30 = vadd.f32 %v3594_v10, %v2085_v16  ;;  %v2663_v31 = vadd.f32 %v3594_v10, %v2086_v17  ;;  %v2089_v33 = vmul.f32 %v1513_v19, %v936_v11  ;;  %v376_v17 = vld [vmem:[#allocation4 + $0xab8] sm:$0xff] }
 0x157   :  { %v2664_v32 = vadd.f32 %v3594_v10, %v2087_v18  ;;  %3235 = vst [vmem:[#allocation7 + $0xa00] sm:$0xff] %v2659_v23  ;;  %3236 = vst [vmem:[#allocation7 + $0xa08] sm:$0xff] %v2660_v24  ;;  %v2665_v35 = vadd.f32 %v3594_v10, %v2088_v26  ;;  %v937_v36 = vmax.f32 %v361_v20, 0.0  ;;  %v938_v37 = vmax.f32 %v362_v21, 0.0 }
 0x158   :  { %3237 = vst [vmem:[#allocation7 + $0xa10] sm:$0xff] %v2661_v25  ;;  %v939_v38 = vmax.f32 %v363_v22, 0.0  ;;  %3238 = vst [vmem:[#allocation7 + $0xa18] sm:$0xff] %v2662_v30  ;;  %v2666_v40 = vadd.f32 %v3594_v10, %v2089_v33  ;;  %v940_v41 = vmax.f32 %v364_v27, 0.0  ;;  %v941_v42 = vmax.f32 %v365_v28, 0.0 }
 0x159   :  { %3239 = vst [vmem:[#allocation7 + $0xa20] sm:$0xff] %v2663_v31  ;;  %3240 = vst [vmem:[#allocation7 + $0xa28] sm:$0xff] %v2664_v32  ;;  %v942_v43 = vmax.f32 %v366_v29, 0.0  ;;  %v1514_v44 = vmul.f32 %v3589_v1, %v937_v36  ;;  %v1515_v45 = vmul.f32 %v3589_v1, %v938_v37  ;;  %v943_v47 = vmax.f32 %v367_v34, 0.0 }
 0x15a   :  { %3241 = vst [vmem:[#allocation7 + $0xa30] sm:$0xff] %v2665_v35  ;;  %v1516_v46 = vmul.f32 %v3589_v1, %v939_v38  ;;  %3242 = vst [vmem:[#allocation7 + $0xa38] sm:$0xff] %v2666_v40  ;;  %v1517_v48 = vmul.f32 %v3589_v1, %v940_v41  ;;  %v1518_v49 = vmul.f32 %v3589_v1, %v941_v42  ;;  %v944_v51 = vmax.f32 %v368_v39, 0.0  ;;  %v378_v39 = vld [vmem:[#allocation4 + $0xac8] sm:$0xff]  ;;  %v379_v40 = vld [vmem:[#allocation4 + $0xad0] sm:$0xff] }
 0x15b   :  { %v1519_v50 = vmul.f32 %v3589_v1, %v942_v43  ;;  %v2090_v52 = vmul.f32 %v1514_v44, %v937_v36  ;;  %v2091_v53 = vmul.f32 %v1515_v45, %v938_v37  ;;  %v1520_v55 = vmul.f32 %v3589_v1, %v943_v47  ;;  %v380_v45 = vld [vmem:[#allocation4 + $0xad8] sm:$0xff] }
 0x15c   :  { %v2092_v54 = vmul.f32 %v1516_v46, %v939_v38  ;;  %v2093_v56 = vmul.f32 %v1517_v48, %v940_v41  ;;  %v2094_v57 = vmul.f32 %v1518_v49, %v941_v42  ;;  %v1521_v59 = vmul.f32 %v3589_v1, %v944_v51  ;;  %v377_v38 = vld [vmem:[#allocation4 + $0xac0] sm:$0xff] }
 0x15d   :  { %v2095_v58 = vmul.f32 %v1519_v50, %v942_v43  ;;  %v2667_v63 = vadd.f32 %v3594_v10, %v2090_v52  ;;  %v2668_v0 = vadd.f32 %v3594_v10, %v2091_v53  ;;  %v2096_v3 = vmul.f32 %v1520_v55, %v943_v47  ;;  %v381_v46 = vld [vmem:[#allocation4 + $0xae0] sm:$0xff]  ;;  %v382_v47 = vld [vmem:[#allocation4 + $0xae8] sm:$0xff]  ;;  %v383_v52 = vld [vmem:[#allocation4 + $0xaf0] sm:$0xff] }
 0x15e   :  { %v2669_v2 = vadd.f32 %v3594_v10, %v2092_v54  ;;  %v2670_v7 = vadd.f32 %v3594_v10, %v2093_v56  ;;  %v2671_v8 = vadd.f32 %v3594_v10, %v2094_v57  ;;  %v2097_v11 = vmul.f32 %v1521_v59, %v944_v51  ;;  %v384_v57 = vld [vmem:[#allocation4 + $0xaf8] sm:$0xff] }
 0x15f   :  { %v2672_v9 = vadd.f32 %v3594_v10, %v2095_v58  ;;  %3243 = vst [vmem:[#allocation7 + $0xa40] sm:$0xff] %v2667_v63  ;;  %3244 = vst [vmem:[#allocation7 + $0xa48] sm:$0xff] %v2668_v0  ;;  %v2673_v13 = vadd.f32 %v3594_v10, %v2096_v3  ;;  %v945_v14 = vmax.f32 %v369_v60, 0.0  ;;  %v946_v15 = vmax.f32 %v370_v61, 0.0 }
 0x160   :  { %3245 = vst [vmem:[#allocation7 + $0xa50] sm:$0xff] %v2669_v2  ;;  %v947_v16 = vmax.f32 %v371_v62, 0.0  ;;  %3246 = vst [vmem:[#allocation7 + $0xa58] sm:$0xff] %v2670_v7  ;;  %v2674_v18 = vadd.f32 %v3594_v10, %v2097_v11  ;;  %v948_v19 = vmax.f32 %v372_v4, 0.0  ;;  %v949_v20 = vmax.f32 %v373_v5, 0.0 }
 0x161   :  { %3247 = vst [vmem:[#allocation7 + $0xa60] sm:$0xff] %v2671_v8  ;;  %3248 = vst [vmem:[#allocation7 + $0xa68] sm:$0xff] %v2672_v9  ;;  %v950_v21 = vmax.f32 %v374_v6, 0.0  ;;  %v1522_v22 = vmul.f32 %v3589_v1, %v945_v14  ;;  %v1523_v23 = vmul.f32 %v3589_v1, %v946_v15  ;;  %v951_v25 = vmax.f32 %v375_v12, 0.0 }
 0x162   :  { %3249 = vst [vmem:[#allocation7 + $0xa70] sm:$0xff] %v2673_v13  ;;  %v1524_v24 = vmul.f32 %v3589_v1, %v947_v16  ;;  %3250 = vst [vmem:[#allocation7 + $0xa78] sm:$0xff] %v2674_v18  ;;  %v1525_v26 = vmul.f32 %v3589_v1, %v948_v19  ;;  %v1526_v27 = vmul.f32 %v3589_v1, %v949_v20  ;;  %v952_v29 = vmax.f32 %v376_v17, 0.0  ;;  %v386_v17 = vld [vmem:[#allocation4 + $0xb08] sm:$0xff]  ;;  %v387_v18 = vld [vmem:[#allocation4 + $0xb10] sm:$0xff] }
 0x163   :  { %v1527_v28 = vmul.f32 %v3589_v1, %v950_v21  ;;  %v2098_v30 = vmul.f32 %v1522_v22, %v945_v14  ;;  %v2099_v31 = vmul.f32 %v1523_v23, %v946_v15  ;;  %v1528_v33 = vmul.f32 %v3589_v1, %v951_v25  ;;  %v388_v23 = vld [vmem:[#allocation4 + $0xb18] sm:$0xff] }
 0x164   :  { %v2100_v32 = vmul.f32 %v1524_v24, %v947_v16  ;;  %v2101_v34 = vmul.f32 %v1525_v26, %v948_v19  ;;  %v2102_v35 = vmul.f32 %v1526_v27, %v949_v20  ;;  %v1529_v37 = vmul.f32 %v3589_v1, %v952_v29  ;;  %v385_v16 = vld [vmem:[#allocation4 + $0xb00] sm:$0xff] }
 0x165   :  { %v2103_v36 = vmul.f32 %v1527_v28, %v950_v21  ;;  %v2675_v41 = vadd.f32 %v3594_v10, %v2098_v30  ;;  %v2676_v42 = vadd.f32 %v3594_v10, %v2099_v31  ;;  %v2104_v44 = vmul.f32 %v1528_v33, %v951_v25  ;;  %v389_v24 = vld [vmem:[#allocation4 + $0xb20] sm:$0xff]  ;;  %v390_v25 = vld [vmem:[#allocation4 + $0xb28] sm:$0xff]  ;;  %v391_v30 = vld [vmem:[#allocation4 + $0xb30] sm:$0xff] }
 0x166   :  { %v2677_v43 = vadd.f32 %v3594_v10, %v2100_v32  ;;  %v2678_v48 = vadd.f32 %v3594_v10, %v2101_v34  ;;  %v2679_v49 = vadd.f32 %v3594_v10, %v2102_v35  ;;  %v2105_v51 = vmul.f32 %v1529_v37, %v952_v29  ;;  %v392_v35 = vld [vmem:[#allocation4 + $0xb38] sm:$0xff] }
 0x167   :  { %v2680_v50 = vadd.f32 %v3594_v10, %v2103_v36  ;;  %3251 = vst [vmem:[#allocation7 + $0xa80] sm:$0xff] %v2675_v41  ;;  %3252 = vst [vmem:[#allocation7 + $0xa88] sm:$0xff] %v2676_v42  ;;  %v2681_v53 = vadd.f32 %v3594_v10, %v2104_v44  ;;  %v953_v54 = vmax.f32 %v377_v38, 0.0  ;;  %v954_v55 = vmax.f32 %v378_v39, 0.0 }
 0x168   :  { %3253 = vst [vmem:[#allocation7 + $0xa90] sm:$0xff] %v2677_v43  ;;  %v955_v56 = vmax.f32 %v379_v40, 0.0  ;;  %3254 = vst [vmem:[#allocation7 + $0xa98] sm:$0xff] %v2678_v48  ;;  %v2682_v58 = vadd.f32 %v3594_v10, %v2105_v51  ;;  %v956_v59 = vmax.f32 %v380_v45, 0.0  ;;  %v957_v60 = vmax.f32 %v381_v46, 0.0 }
 0x169   :  { %3255 = vst [vmem:[#allocation7 + $0xaa0] sm:$0xff] %v2679_v49  ;;  %3256 = vst [vmem:[#allocation7 + $0xaa8] sm:$0xff] %v2680_v50  ;;  %v958_v61 = vmax.f32 %v382_v47, 0.0  ;;  %v1530_v62 = vmul.f32 %v3589_v1, %v953_v54  ;;  %v1531_v63 = vmul.f32 %v3589_v1, %v954_v55  ;;  %v959_v2 = vmax.f32 %v383_v52, 0.0 }
 0x16a   :  { %3257 = vst [vmem:[#allocation7 + $0xab0] sm:$0xff] %v2681_v53  ;;  %v1532_v0 = vmul.f32 %v3589_v1, %v955_v56  ;;  %3258 = vst [vmem:[#allocation7 + $0xab8] sm:$0xff] %v2682_v58  ;;  %v1533_v3 = vmul.f32 %v3589_v1, %v956_v59  ;;  %v1534_v4 = vmul.f32 %v3589_v1, %v957_v60  ;;  %v960_v6 = vmax.f32 %v384_v57, 0.0  ;;  %v394_v57 = vld [vmem:[#allocation4 + $0xb48] sm:$0xff]  ;;  %v395_v58 = vld [vmem:[#allocation4 + $0xb50] sm:$0xff] }
 0x16b   :  { %v1535_v5 = vmul.f32 %v3589_v1, %v958_v61  ;;  %v2106_v7 = vmul.f32 %v1530_v62, %v953_v54  ;;  %v2107_v8 = vmul.f32 %v1531_v63, %v954_v55  ;;  %v1536_v11 = vmul.f32 %v3589_v1, %v959_v2  ;;  %v396_v63 = vld [vmem:[#allocation4 + $0xb58] sm:$0xff] }
 0x16c   :  { %v2108_v9 = vmul.f32 %v1532_v0, %v955_v56  ;;  %v2109_v12 = vmul.f32 %v1533_v3, %v956_v59  ;;  %v2110_v13 = vmul.f32 %v1534_v4, %v957_v60  ;;  %v1537_v15 = vmul.f32 %v3589_v1, %v960_v6  ;;  %v393_v56 = vld [vmem:[#allocation4 + $0xb40] sm:$0xff] }
 0x16d   :  { %v2111_v14 = vmul.f32 %v1535_v5, %v958_v61  ;;  %v2683_v19 = vadd.f32 %v3594_v10, %v2106_v7  ;;  %v2684_v20 = vadd.f32 %v3594_v10, %v2107_v8  ;;  %v2112_v22 = vmul.f32 %v1536_v11, %v959_v2  ;;  %v397_v0 = vld [vmem:[#allocation4 + $0xb60] sm:$0xff]  ;;  %v398_v2 = vld [vmem:[#allocation4 + $0xb68] sm:$0xff]  ;;  %v399_v7 = vld [vmem:[#allocation4 + $0xb70] sm:$0xff] }
 0x16e   :  { %v2685_v21 = vadd.f32 %v3594_v10, %v2108_v9  ;;  %v2686_v26 = vadd.f32 %v3594_v10, %v2109_v12  ;;  %v2687_v27 = vadd.f32 %v3594_v10, %v2110_v13  ;;  %v2113_v29 = vmul.f32 %v1537_v15, %v960_v6  ;;  %v400_v13 = vld [vmem:[#allocation4 + $0xb78] sm:$0xff] }
 0x16f   :  { %v2688_v28 = vadd.f32 %v3594_v10, %v2111_v14  ;;  %3259 = vst [vmem:[#allocation7 + $0xac0] sm:$0xff] %v2683_v19  ;;  %3260 = vst [vmem:[#allocation7 + $0xac8] sm:$0xff] %v2684_v20  ;;  %v2689_v31 = vadd.f32 %v3594_v10, %v2112_v22  ;;  %v961_v32 = vmax.f32 %v385_v16, 0.0  ;;  %v962_v33 = vmax.f32 %v386_v17, 0.0 }
 0x170   :  { %3261 = vst [vmem:[#allocation7 + $0xad0] sm:$0xff] %v2685_v21  ;;  %v963_v34 = vmax.f32 %v387_v18, 0.0  ;;  %3262 = vst [vmem:[#allocation7 + $0xad8] sm:$0xff] %v2686_v26  ;;  %v2690_v36 = vadd.f32 %v3594_v10, %v2113_v29  ;;  %v964_v37 = vmax.f32 %v388_v23, 0.0  ;;  %v965_v38 = vmax.f32 %v389_v24, 0.0 }
 0x171   :  { %3263 = vst [vmem:[#allocation7 + $0xae0] sm:$0xff] %v2687_v27  ;;  %3264 = vst [vmem:[#allocation7 + $0xae8] sm:$0xff] %v2688_v28  ;;  %v966_v39 = vmax.f32 %v390_v25, 0.0  ;;  %v1538_v40 = vmul.f32 %v3589_v1, %v961_v32  ;;  %v1539_v41 = vmul.f32 %v3589_v1, %v962_v33  ;;  %v967_v43 = vmax.f32 %v391_v30, 0.0 }
 0x172   :  { %3265 = vst [vmem:[#allocation7 + $0xaf0] sm:$0xff] %v2689_v31  ;;  %v1540_v42 = vmul.f32 %v3589_v1, %v963_v34  ;;  %3266 = vst [vmem:[#allocation7 + $0xaf8] sm:$0xff] %v2690_v36  ;;  %v1541_v44 = vmul.f32 %v3589_v1, %v964_v37  ;;  %v1542_v45 = vmul.f32 %v3589_v1, %v965_v38  ;;  %v968_v47 = vmax.f32 %v392_v35, 0.0  ;;  %v402_v35 = vld [vmem:[#allocation4 + $0xb88] sm:$0xff]  ;;  %v403_v36 = vld [vmem:[#allocation4 + $0xb90] sm:$0xff] }
 0x173   :  { %v1543_v46 = vmul.f32 %v3589_v1, %v966_v39  ;;  %v2114_v48 = vmul.f32 %v1538_v40, %v961_v32  ;;  %v2115_v49 = vmul.f32 %v1539_v41, %v962_v33  ;;  %v1544_v51 = vmul.f32 %v3589_v1, %v967_v43  ;;  %v404_v41 = vld [vmem:[#allocation4 + $0xb98] sm:$0xff] }
 0x174   :  { %v2116_v50 = vmul.f32 %v1540_v42, %v963_v34  ;;  %v2117_v52 = vmul.f32 %v1541_v44, %v964_v37  ;;  %v2118_v53 = vmul.f32 %v1542_v45, %v965_v38  ;;  %v1545_v55 = vmul.f32 %v3589_v1, %v968_v47  ;;  %v401_v34 = vld [vmem:[#allocation4 + $0xb80] sm:$0xff] }
 0x175   :  { %v2119_v54 = vmul.f32 %v1543_v46, %v966_v39  ;;  %v2691_v59 = vadd.f32 %v3594_v10, %v2114_v48  ;;  %v2692_v60 = vadd.f32 %v3594_v10, %v2115_v49  ;;  %v2120_v62 = vmul.f32 %v1544_v51, %v967_v43  ;;  %v405_v42 = vld [vmem:[#allocation4 + $0xba0] sm:$0xff]  ;;  %v406_v43 = vld [vmem:[#allocation4 + $0xba8] sm:$0xff]  ;;  %v407_v48 = vld [vmem:[#allocation4 + $0xbb0] sm:$0xff] }
 0x176   :  { %v2693_v61 = vadd.f32 %v3594_v10, %v2116_v50  ;;  %v2694_v3 = vadd.f32 %v3594_v10, %v2117_v52  ;;  %v2695_v4 = vadd.f32 %v3594_v10, %v2118_v53  ;;  %v2121_v6 = vmul.f32 %v1545_v55, %v968_v47  ;;  %v408_v53 = vld [vmem:[#allocation4 + $0xbb8] sm:$0xff] }
 0x177   :  { %v2696_v5 = vadd.f32 %v3594_v10, %v2119_v54  ;;  %3267 = vst [vmem:[#allocation7 + $0xb00] sm:$0xff] %v2691_v59  ;;  %3268 = vst [vmem:[#allocation7 + $0xb08] sm:$0xff] %v2692_v60  ;;  %v2697_v8 = vadd.f32 %v3594_v10, %v2120_v62  ;;  %v969_v9 = vmax.f32 %v393_v56, 0.0  ;;  %v970_v11 = vmax.f32 %v394_v57, 0.0 }
 0x178   :  { %3269 = vst [vmem:[#allocation7 + $0xb10] sm:$0xff] %v2693_v61  ;;  %v971_v12 = vmax.f32 %v395_v58, 0.0  ;;  %3270 = vst [vmem:[#allocation7 + $0xb18] sm:$0xff] %v2694_v3  ;;  %v2698_v14 = vadd.f32 %v3594_v10, %v2121_v6  ;;  %v972_v15 = vmax.f32 %v396_v63, 0.0  ;;  %v973_v16 = vmax.f32 %v397_v0, 0.0 }
 0x179   :  { %3271 = vst [vmem:[#allocation7 + $0xb20] sm:$0xff] %v2695_v4  ;;  %3272 = vst [vmem:[#allocation7 + $0xb28] sm:$0xff] %v2696_v5  ;;  %v974_v17 = vmax.f32 %v398_v2, 0.0  ;;  %v1546_v18 = vmul.f32 %v3589_v1, %v969_v9  ;;  %v1547_v19 = vmul.f32 %v3589_v1, %v970_v11  ;;  %v975_v21 = vmax.f32 %v399_v7, 0.0 }
 0x17a   :  { %3273 = vst [vmem:[#allocation7 + $0xb30] sm:$0xff] %v2697_v8  ;;  %v1548_v20 = vmul.f32 %v3589_v1, %v971_v12  ;;  %3274 = vst [vmem:[#allocation7 + $0xb38] sm:$0xff] %v2698_v14  ;;  %v1549_v22 = vmul.f32 %v3589_v1, %v972_v15  ;;  %v1550_v23 = vmul.f32 %v3589_v1, %v973_v16  ;;  %v976_v25 = vmax.f32 %v400_v13, 0.0  ;;  %v410_v13 = vld [vmem:[#allocation4 + $0xbc8] sm:$0xff]  ;;  %v411_v14 = vld [vmem:[#allocation4 + $0xbd0] sm:$0xff] }
 0x17b   :  { %v1551_v24 = vmul.f32 %v3589_v1, %v974_v17  ;;  %v2122_v26 = vmul.f32 %v1546_v18, %v969_v9  ;;  %v2123_v27 = vmul.f32 %v1547_v19, %v970_v11  ;;  %v1552_v29 = vmul.f32 %v3589_v1, %v975_v21  ;;  %v412_v19 = vld [vmem:[#allocation4 + $0xbd8] sm:$0xff] }
 0x17c   :  { %v2124_v28 = vmul.f32 %v1548_v20, %v971_v12  ;;  %v2125_v30 = vmul.f32 %v1549_v22, %v972_v15  ;;  %v2126_v31 = vmul.f32 %v1550_v23, %v973_v16  ;;  %v1553_v33 = vmul.f32 %v3589_v1, %v976_v25  ;;  %v409_v12 = vld [vmem:[#allocation4 + $0xbc0] sm:$0xff] }
 0x17d   :  { %v2127_v32 = vmul.f32 %v1551_v24, %v974_v17  ;;  %v2699_v37 = vadd.f32 %v3594_v10, %v2122_v26  ;;  %v2700_v38 = vadd.f32 %v3594_v10, %v2123_v27  ;;  %v2128_v40 = vmul.f32 %v1552_v29, %v975_v21  ;;  %v413_v20 = vld [vmem:[#allocation4 + $0xbe0] sm:$0xff]  ;;  %v414_v21 = vld [vmem:[#allocation4 + $0xbe8] sm:$0xff]  ;;  %v415_v26 = vld [vmem:[#allocation4 + $0xbf0] sm:$0xff] }
 0x17e   :  { %v2701_v39 = vadd.f32 %v3594_v10, %v2124_v28  ;;  %v2702_v44 = vadd.f32 %v3594_v10, %v2125_v30  ;;  %v2703_v45 = vadd.f32 %v3594_v10, %v2126_v31  ;;  %v2129_v47 = vmul.f32 %v1553_v33, %v976_v25  ;;  %v416_v31 = vld [vmem:[#allocation4 + $0xbf8] sm:$0xff] }
 0x17f   :  { %v2704_v46 = vadd.f32 %v3594_v10, %v2127_v32  ;;  %3275 = vst [vmem:[#allocation7 + $0xb40] sm:$0xff] %v2699_v37  ;;  %3276 = vst [vmem:[#allocation7 + $0xb48] sm:$0xff] %v2700_v38  ;;  %v2705_v49 = vadd.f32 %v3594_v10, %v2128_v40  ;;  %v977_v50 = vmax.f32 %v401_v34, 0.0  ;;  %v978_v51 = vmax.f32 %v402_v35, 0.0 }
 0x180   :  { %3277 = vst [vmem:[#allocation7 + $0xb50] sm:$0xff] %v2701_v39  ;;  %v979_v52 = vmax.f32 %v403_v36, 0.0  ;;  %3278 = vst [vmem:[#allocation7 + $0xb58] sm:$0xff] %v2702_v44  ;;  %v2706_v54 = vadd.f32 %v3594_v10, %v2129_v47  ;;  %v980_v55 = vmax.f32 %v404_v41, 0.0  ;;  %v981_v56 = vmax.f32 %v405_v42, 0.0 }
 0x181   :  { %3279 = vst [vmem:[#allocation7 + $0xb60] sm:$0xff] %v2703_v45  ;;  %3280 = vst [vmem:[#allocation7 + $0xb68] sm:$0xff] %v2704_v46  ;;  %v982_v57 = vmax.f32 %v406_v43, 0.0  ;;  %v1554_v58 = vmul.f32 %v3589_v1, %v977_v50  ;;  %v1555_v59 = vmul.f32 %v3589_v1, %v978_v51  ;;  %v983_v61 = vmax.f32 %v407_v48, 0.0 }
 0x182   :  { %3281 = vst [vmem:[#allocation7 + $0xb70] sm:$0xff] %v2705_v49  ;;  %v1556_v60 = vmul.f32 %v3589_v1, %v979_v52  ;;  %3282 = vst [vmem:[#allocation7 + $0xb78] sm:$0xff] %v2706_v54  ;;  %v1557_v62 = vmul.f32 %v3589_v1, %v980_v55  ;;  %v1558_v63 = vmul.f32 %v3589_v1, %v981_v56  ;;  %v984_v2 = vmax.f32 %v408_v53, 0.0  ;;  %v418_v53 = vld [vmem:[#allocation4 + $0xc08] sm:$0xff]  ;;  %v419_v54 = vld [vmem:[#allocation4 + $0xc10] sm:$0xff] }
 0x183   :  { %v1559_v0 = vmul.f32 %v3589_v1, %v982_v57  ;;  %v2130_v3 = vmul.f32 %v1554_v58, %v977_v50  ;;  %v2131_v4 = vmul.f32 %v1555_v59, %v978_v51  ;;  %v1560_v6 = vmul.f32 %v3589_v1, %v983_v61  ;;  %v420_v59 = vld [vmem:[#allocation4 + $0xc18] sm:$0xff] }
 0x184   :  { %v2132_v5 = vmul.f32 %v1556_v60, %v979_v52  ;;  %v2133_v7 = vmul.f32 %v1557_v62, %v980_v55  ;;  %v2134_v8 = vmul.f32 %v1558_v63, %v981_v56  ;;  %v1561_v11 = vmul.f32 %v3589_v1, %v984_v2  ;;  %v417_v52 = vld [vmem:[#allocation4 + $0xc00] sm:$0xff] }
 0x185   :  { %v2135_v9 = vmul.f32 %v1559_v0, %v982_v57  ;;  %v2707_v15 = vadd.f32 %v3594_v10, %v2130_v3  ;;  %v2708_v16 = vadd.f32 %v3594_v10, %v2131_v4  ;;  %v2136_v18 = vmul.f32 %v1560_v6, %v983_v61  ;;  %v421_v60 = vld [vmem:[#allocation4 + $0xc20] sm:$0xff]  ;;  %v422_v61 = vld [vmem:[#allocation4 + $0xc28] sm:$0xff]  ;;  %v423_v3 = vld [vmem:[#allocation4 + $0xc30] sm:$0xff] }
 0x186   :  { %v2709_v17 = vadd.f32 %v3594_v10, %v2132_v5  ;;  %v2710_v22 = vadd.f32 %v3594_v10, %v2133_v7  ;;  %v2711_v23 = vadd.f32 %v3594_v10, %v2134_v8  ;;  %v2137_v25 = vmul.f32 %v1561_v11, %v984_v2  ;;  %v424_v8 = vld [vmem:[#allocation4 + $0xc38] sm:$0xff] }
 0x187   :  { %v2712_v24 = vadd.f32 %v3594_v10, %v2135_v9  ;;  %3283 = vst [vmem:[#allocation7 + $0xb80] sm:$0xff] %v2707_v15  ;;  %3284 = vst [vmem:[#allocation7 + $0xb88] sm:$0xff] %v2708_v16  ;;  %v2713_v27 = vadd.f32 %v3594_v10, %v2136_v18  ;;  %v985_v28 = vmax.f32 %v409_v12, 0.0  ;;  %v986_v29 = vmax.f32 %v410_v13, 0.0 }
 0x188   :  { %3285 = vst [vmem:[#allocation7 + $0xb90] sm:$0xff] %v2709_v17  ;;  %v987_v30 = vmax.f32 %v411_v14, 0.0  ;;  %3286 = vst [vmem:[#allocation7 + $0xb98] sm:$0xff] %v2710_v22  ;;  %v2714_v32 = vadd.f32 %v3594_v10, %v2137_v25  ;;  %v988_v33 = vmax.f32 %v412_v19, 0.0  ;;  %v989_v34 = vmax.f32 %v413_v20, 0.0 }
 0x189   :  { %3287 = vst [vmem:[#allocation7 + $0xba0] sm:$0xff] %v2711_v23  ;;  %3288 = vst [vmem:[#allocation7 + $0xba8] sm:$0xff] %v2712_v24  ;;  %v990_v35 = vmax.f32 %v414_v21, 0.0  ;;  %v1562_v36 = vmul.f32 %v3589_v1, %v985_v28  ;;  %v1563_v37 = vmul.f32 %v3589_v1, %v986_v29  ;;  %v991_v39 = vmax.f32 %v415_v26, 0.0 }
 0x18a   :  { %3289 = vst [vmem:[#allocation7 + $0xbb0] sm:$0xff] %v2713_v27  ;;  %v1564_v38 = vmul.f32 %v3589_v1, %v987_v30  ;;  %3290 = vst [vmem:[#allocation7 + $0xbb8] sm:$0xff] %v2714_v32  ;;  %v1565_v40 = vmul.f32 %v3589_v1, %v988_v33  ;;  %v1566_v41 = vmul.f32 %v3589_v1, %v989_v34  ;;  %v992_v43 = vmax.f32 %v416_v31, 0.0  ;;  %v426_v31 = vld [vmem:[#allocation4 + $0xc48] sm:$0xff]  ;;  %v427_v32 = vld [vmem:[#allocation4 + $0xc50] sm:$0xff] }
 0x18b   :  { %v1567_v42 = vmul.f32 %v3589_v1, %v990_v35  ;;  %v2138_v44 = vmul.f32 %v1562_v36, %v985_v28  ;;  %v2139_v45 = vmul.f32 %v1563_v37, %v986_v29  ;;  %v1568_v47 = vmul.f32 %v3589_v1, %v991_v39  ;;  %v428_v37 = vld [vmem:[#allocation4 + $0xc58] sm:$0xff] }
 0x18c   :  { %v2140_v46 = vmul.f32 %v1564_v38, %v987_v30  ;;  %v2141_v48 = vmul.f32 %v1565_v40, %v988_v33  ;;  %v2142_v49 = vmul.f32 %v1566_v41, %v989_v34  ;;  %v1569_v51 = vmul.f32 %v3589_v1, %v992_v43  ;;  %v425_v30 = vld [vmem:[#allocation4 + $0xc40] sm:$0xff] }
 0x18d   :  { %v2143_v50 = vmul.f32 %v1567_v42, %v990_v35  ;;  %v2715_v55 = vadd.f32 %v3594_v10, %v2138_v44  ;;  %v2716_v56 = vadd.f32 %v3594_v10, %v2139_v45  ;;  %v2144_v58 = vmul.f32 %v1568_v47, %v991_v39  ;;  %v429_v38 = vld [vmem:[#allocation4 + $0xc60] sm:$0xff]  ;;  %v430_v39 = vld [vmem:[#allocation4 + $0xc68] sm:$0xff]  ;;  %v431_v44 = vld [vmem:[#allocation4 + $0xc70] sm:$0xff] }
 0x18e   :  { %v2717_v57 = vadd.f32 %v3594_v10, %v2140_v46  ;;  %v2718_v62 = vadd.f32 %v3594_v10, %v2141_v48  ;;  %v2719_v63 = vadd.f32 %v3594_v10, %v2142_v49  ;;  %v2145_v2 = vmul.f32 %v1569_v51, %v992_v43  ;;  %v432_v49 = vld [vmem:[#allocation4 + $0xc78] sm:$0xff] }
 0x18f   :  { %v2720_v0 = vadd.f32 %v3594_v10, %v2143_v50  ;;  %3291 = vst [vmem:[#allocation7 + $0xbc0] sm:$0xff] %v2715_v55  ;;  %3292 = vst [vmem:[#allocation7 + $0xbc8] sm:$0xff] %v2716_v56  ;;  %v2721_v4 = vadd.f32 %v3594_v10, %v2144_v58  ;;  %v993_v5 = vmax.f32 %v417_v52, 0.0  ;;  %v994_v6 = vmax.f32 %v418_v53, 0.0 }
 0x190   :  { %3293 = vst [vmem:[#allocation7 + $0xbd0] sm:$0xff] %v2717_v57  ;;  %v995_v7 = vmax.f32 %v419_v54, 0.0  ;;  %3294 = vst [vmem:[#allocation7 + $0xbd8] sm:$0xff] %v2718_v62  ;;  %v2722_v9 = vadd.f32 %v3594_v10, %v2145_v2  ;;  %v996_v11 = vmax.f32 %v420_v59, 0.0  ;;  %v997_v12 = vmax.f32 %v421_v60, 0.0 }
 0x191   :  { %3295 = vst [vmem:[#allocation7 + $0xbe0] sm:$0xff] %v2719_v63  ;;  %3296 = vst [vmem:[#allocation7 + $0xbe8] sm:$0xff] %v2720_v0  ;;  %v998_v13 = vmax.f32 %v422_v61, 0.0  ;;  %v1570_v14 = vmul.f32 %v3589_v1, %v993_v5  ;;  %v1571_v15 = vmul.f32 %v3589_v1, %v994_v6  ;;  %v999_v17 = vmax.f32 %v423_v3, 0.0 }
 0x192   :  { %3297 = vst [vmem:[#allocation7 + $0xbf0] sm:$0xff] %v2721_v4  ;;  %v1572_v16 = vmul.f32 %v3589_v1, %v995_v7  ;;  %3298 = vst [vmem:[#allocation7 + $0xbf8] sm:$0xff] %v2722_v9  ;;  %v1573_v18 = vmul.f32 %v3589_v1, %v996_v11  ;;  %v1574_v19 = vmul.f32 %v3589_v1, %v997_v12  ;;  %v1000_v21 = vmax.f32 %v424_v8, 0.0  ;;  %v434_v8 = vld [vmem:[#allocation4 + $0xc88] sm:$0xff]  ;;  %v435_v9 = vld [vmem:[#allocation4 + $0xc90] sm:$0xff] }
 0x193   :  { %v1575_v20 = vmul.f32 %v3589_v1, %v998_v13  ;;  %v2146_v22 = vmul.f32 %v1570_v14, %v993_v5  ;;  %v2147_v23 = vmul.f32 %v1571_v15, %v994_v6  ;;  %v1576_v25 = vmul.f32 %v3589_v1, %v999_v17  ;;  %v436_v15 = vld [vmem:[#allocation4 + $0xc98] sm:$0xff] }
 0x194   :  { %v2148_v24 = vmul.f32 %v1572_v16, %v995_v7  ;;  %v2149_v26 = vmul.f32 %v1573_v18, %v996_v11  ;;  %v2150_v27 = vmul.f32 %v1574_v19, %v997_v12  ;;  %v1577_v29 = vmul.f32 %v3589_v1, %v1000_v21  ;;  %v433_v7 = vld [vmem:[#allocation4 + $0xc80] sm:$0xff] }
 0x195   :  { %v2151_v28 = vmul.f32 %v1575_v20, %v998_v13  ;;  %v2723_v33 = vadd.f32 %v3594_v10, %v2146_v22  ;;  %v2724_v34 = vadd.f32 %v3594_v10, %v2147_v23  ;;  %v2152_v36 = vmul.f32 %v1576_v25, %v999_v17  ;;  %v437_v16 = vld [vmem:[#allocation4 + $0xca0] sm:$0xff]  ;;  %v438_v17 = vld [vmem:[#allocation4 + $0xca8] sm:$0xff]  ;;  %v439_v22 = vld [vmem:[#allocation4 + $0xcb0] sm:$0xff] }
 0x196   :  { %v2725_v35 = vadd.f32 %v3594_v10, %v2148_v24  ;;  %v2726_v40 = vadd.f32 %v3594_v10, %v2149_v26  ;;  %v2727_v41 = vadd.f32 %v3594_v10, %v2150_v27  ;;  %v2153_v43 = vmul.f32 %v1577_v29, %v1000_v21  ;;  %v440_v27 = vld [vmem:[#allocation4 + $0xcb8] sm:$0xff] }
 0x197   :  { %v2728_v42 = vadd.f32 %v3594_v10, %v2151_v28  ;;  %3299 = vst [vmem:[#allocation7 + $0xc00] sm:$0xff] %v2723_v33  ;;  %3300 = vst [vmem:[#allocation7 + $0xc08] sm:$0xff] %v2724_v34  ;;  %v2729_v45 = vadd.f32 %v3594_v10, %v2152_v36  ;;  %v1001_v46 = vmax.f32 %v425_v30, 0.0  ;;  %v1002_v47 = vmax.f32 %v426_v31, 0.0 }
 0x198   :  { %3301 = vst [vmem:[#allocation7 + $0xc10] sm:$0xff] %v2725_v35  ;;  %v1003_v48 = vmax.f32 %v427_v32, 0.0  ;;  %3302 = vst [vmem:[#allocation7 + $0xc18] sm:$0xff] %v2726_v40  ;;  %v2730_v50 = vadd.f32 %v3594_v10, %v2153_v43  ;;  %v1004_v51 = vmax.f32 %v428_v37, 0.0  ;;  %v1005_v52 = vmax.f32 %v429_v38, 0.0 }
 0x199   :  { %3303 = vst [vmem:[#allocation7 + $0xc20] sm:$0xff] %v2727_v41  ;;  %3304 = vst [vmem:[#allocation7 + $0xc28] sm:$0xff] %v2728_v42  ;;  %v1006_v53 = vmax.f32 %v430_v39, 0.0  ;;  %v1578_v54 = vmul.f32 %v3589_v1, %v1001_v46  ;;  %v1579_v55 = vmul.f32 %v3589_v1, %v1002_v47  ;;  %v1007_v57 = vmax.f32 %v431_v44, 0.0 }
 0x19a   :  { %3305 = vst [vmem:[#allocation7 + $0xc30] sm:$0xff] %v2729_v45  ;;  %v1580_v56 = vmul.f32 %v3589_v1, %v1003_v48  ;;  %3306 = vst [vmem:[#allocation7 + $0xc38] sm:$0xff] %v2730_v50  ;;  %v1581_v58 = vmul.f32 %v3589_v1, %v1004_v51  ;;  %v1582_v59 = vmul.f32 %v3589_v1, %v1005_v52  ;;  %v1008_v61 = vmax.f32 %v432_v49, 0.0  ;;  %v442_v49 = vld [vmem:[#allocation4 + $0xcc8] sm:$0xff]  ;;  %v443_v50 = vld [vmem:[#allocation4 + $0xcd0] sm:$0xff] }
 0x19b   :  { %v1583_v60 = vmul.f32 %v3589_v1, %v1006_v53  ;;  %v2154_v62 = vmul.f32 %v1578_v54, %v1001_v46  ;;  %v2155_v63 = vmul.f32 %v1579_v55, %v1002_v47  ;;  %v1584_v2 = vmul.f32 %v3589_v1, %v1007_v57  ;;  %v444_v55 = vld [vmem:[#allocation4 + $0xcd8] sm:$0xff] }
 0x19c   :  { %v2156_v0 = vmul.f32 %v1580_v56, %v1003_v48  ;;  %v2157_v3 = vmul.f32 %v1581_v58, %v1004_v51  ;;  %v2158_v4 = vmul.f32 %v1582_v59, %v1005_v52  ;;  %v1585_v6 = vmul.f32 %v3589_v1, %v1008_v61  ;;  %v441_v48 = vld [vmem:[#allocation4 + $0xcc0] sm:$0xff] }
 0x19d   :  { %v2159_v5 = vmul.f32 %v1583_v60, %v1006_v53  ;;  %v2731_v11 = vadd.f32 %v3594_v10, %v2154_v62  ;;  %v2732_v12 = vadd.f32 %v3594_v10, %v2155_v63  ;;  %v2160_v14 = vmul.f32 %v1584_v2, %v1007_v57  ;;  %v445_v56 = vld [vmem:[#allocation4 + $0xce0] sm:$0xff]  ;;  %v446_v57 = vld [vmem:[#allocation4 + $0xce8] sm:$0xff]  ;;  %v447_v62 = vld [vmem:[#allocation4 + $0xcf0] sm:$0xff] }
 0x19e   :  { %v2733_v13 = vadd.f32 %v3594_v10, %v2156_v0  ;;  %v2734_v18 = vadd.f32 %v3594_v10, %v2157_v3  ;;  %v2735_v19 = vadd.f32 %v3594_v10, %v2158_v4  ;;  %v2161_v21 = vmul.f32 %v1585_v6, %v1008_v61  ;;  %v448_v4 = vld [vmem:[#allocation4 + $0xcf8] sm:$0xff] }
 0x19f   :  { %v2736_v20 = vadd.f32 %v3594_v10, %v2159_v5  ;;  %3307 = vst [vmem:[#allocation7 + $0xc40] sm:$0xff] %v2731_v11  ;;  %3308 = vst [vmem:[#allocation7 + $0xc48] sm:$0xff] %v2732_v12  ;;  %v2737_v23 = vadd.f32 %v3594_v10, %v2160_v14  ;;  %v1009_v24 = vmax.f32 %v433_v7, 0.0  ;;  %v1010_v25 = vmax.f32 %v434_v8, 0.0 }
 0x1a0   :  { %3309 = vst [vmem:[#allocation7 + $0xc50] sm:$0xff] %v2733_v13  ;;  %v1011_v26 = vmax.f32 %v435_v9, 0.0  ;;  %3310 = vst [vmem:[#allocation7 + $0xc58] sm:$0xff] %v2734_v18  ;;  %v2738_v28 = vadd.f32 %v3594_v10, %v2161_v21  ;;  %v1012_v29 = vmax.f32 %v436_v15, 0.0  ;;  %v1013_v30 = vmax.f32 %v437_v16, 0.0 }
 0x1a1   :  { %3311 = vst [vmem:[#allocation7 + $0xc60] sm:$0xff] %v2735_v19  ;;  %3312 = vst [vmem:[#allocation7 + $0xc68] sm:$0xff] %v2736_v20  ;;  %v1014_v31 = vmax.f32 %v438_v17, 0.0  ;;  %v1586_v32 = vmul.f32 %v3589_v1, %v1009_v24  ;;  %v1587_v33 = vmul.f32 %v3589_v1, %v1010_v25  ;;  %v1015_v35 = vmax.f32 %v439_v22, 0.0 }
 0x1a2   :  { %3313 = vst [vmem:[#allocation7 + $0xc70] sm:$0xff] %v2737_v23  ;;  %v1588_v34 = vmul.f32 %v3589_v1, %v1011_v26  ;;  %3314 = vst [vmem:[#allocation7 + $0xc78] sm:$0xff] %v2738_v28  ;;  %v1589_v36 = vmul.f32 %v3589_v1, %v1012_v29  ;;  %v1590_v37 = vmul.f32 %v3589_v1, %v1013_v30  ;;  %v1016_v39 = vmax.f32 %v440_v27, 0.0  ;;  %v450_v27 = vld [vmem:[#allocation4 + $0xd08] sm:$0xff]  ;;  %v451_v28 = vld [vmem:[#allocation4 + $0xd10] sm:$0xff] }
 0x1a3   :  { %v1591_v38 = vmul.f32 %v3589_v1, %v1014_v31  ;;  %v2162_v40 = vmul.f32 %v1586_v32, %v1009_v24  ;;  %v2163_v41 = vmul.f32 %v1587_v33, %v1010_v25  ;;  %v1592_v43 = vmul.f32 %v3589_v1, %v1015_v35  ;;  %v452_v33 = vld [vmem:[#allocation4 + $0xd18] sm:$0xff] }
 0x1a4   :  { %v2164_v42 = vmul.f32 %v1588_v34, %v1011_v26  ;;  %v2165_v44 = vmul.f32 %v1589_v36, %v1012_v29  ;;  %v2166_v45 = vmul.f32 %v1590_v37, %v1013_v30  ;;  %v1593_v47 = vmul.f32 %v3589_v1, %v1016_v39  ;;  %v449_v26 = vld [vmem:[#allocation4 + $0xd00] sm:$0xff] }
 0x1a5   :  { %v2167_v46 = vmul.f32 %v1591_v38, %v1014_v31  ;;  %v2739_v51 = vadd.f32 %v3594_v10, %v2162_v40  ;;  %v2740_v52 = vadd.f32 %v3594_v10, %v2163_v41  ;;  %v2168_v54 = vmul.f32 %v1592_v43, %v1015_v35  ;;  %v453_v34 = vld [vmem:[#allocation4 + $0xd20] sm:$0xff]  ;;  %v454_v35 = vld [vmem:[#allocation4 + $0xd28] sm:$0xff]  ;;  %v455_v40 = vld [vmem:[#allocation4 + $0xd30] sm:$0xff] }
 0x1a6   :  { %v2741_v53 = vadd.f32 %v3594_v10, %v2164_v42  ;;  %v2742_v58 = vadd.f32 %v3594_v10, %v2165_v44  ;;  %v2743_v59 = vadd.f32 %v3594_v10, %v2166_v45  ;;  %v2169_v61 = vmul.f32 %v1593_v47, %v1016_v39  ;;  %v456_v45 = vld [vmem:[#allocation4 + $0xd38] sm:$0xff] }
 0x1a7   :  { %v2744_v60 = vadd.f32 %v3594_v10, %v2167_v46  ;;  %3315 = vst [vmem:[#allocation7 + $0xc80] sm:$0xff] %v2739_v51  ;;  %3316 = vst [vmem:[#allocation7 + $0xc88] sm:$0xff] %v2740_v52  ;;  %v2745_v63 = vadd.f32 %v3594_v10, %v2168_v54  ;;  %v1017_v0 = vmax.f32 %v441_v48, 0.0  ;;  %v1018_v2 = vmax.f32 %v442_v49, 0.0 }
 0x1a8   :  { %3317 = vst [vmem:[#allocation7 + $0xc90] sm:$0xff] %v2741_v53  ;;  %v1019_v3 = vmax.f32 %v443_v50, 0.0  ;;  %3318 = vst [vmem:[#allocation7 + $0xc98] sm:$0xff] %v2742_v58  ;;  %v2746_v5 = vadd.f32 %v3594_v10, %v2169_v61  ;;  %v1020_v6 = vmax.f32 %v444_v55, 0.0  ;;  %v1021_v7 = vmax.f32 %v445_v56, 0.0 }
 0x1a9   :  { %3319 = vst [vmem:[#allocation7 + $0xca0] sm:$0xff] %v2743_v59  ;;  %3320 = vst [vmem:[#allocation7 + $0xca8] sm:$0xff] %v2744_v60  ;;  %v1022_v8 = vmax.f32 %v446_v57, 0.0  ;;  %v1594_v9 = vmul.f32 %v3589_v1, %v1017_v0  ;;  %v1595_v11 = vmul.f32 %v3589_v1, %v1018_v2  ;;  %v1023_v13 = vmax.f32 %v447_v62, 0.0 }
 0x1aa   :  { %3321 = vst [vmem:[#allocation7 + $0xcb0] sm:$0xff] %v2745_v63  ;;  %v1596_v12 = vmul.f32 %v3589_v1, %v1019_v3  ;;  %3322 = vst [vmem:[#allocation7 + $0xcb8] sm:$0xff] %v2746_v5  ;;  %v1597_v14 = vmul.f32 %v3589_v1, %v1020_v6  ;;  %v1598_v15 = vmul.f32 %v3589_v1, %v1021_v7  ;;  %v1024_v17 = vmax.f32 %v448_v4, 0.0  ;;  %v458_v4 = vld [vmem:[#allocation4 + $0xd48] sm:$0xff]  ;;  %v459_v5 = vld [vmem:[#allocation4 + $0xd50] sm:$0xff] }
 0x1ab   :  { %v1599_v16 = vmul.f32 %v3589_v1, %v1022_v8  ;;  %v2170_v18 = vmul.f32 %v1594_v9, %v1017_v0  ;;  %v2171_v19 = vmul.f32 %v1595_v11, %v1018_v2  ;;  %v1600_v21 = vmul.f32 %v3589_v1, %v1023_v13  ;;  %v460_v11 = vld [vmem:[#allocation4 + $0xd58] sm:$0xff] }
 0x1ac   :  { %v2172_v20 = vmul.f32 %v1596_v12, %v1019_v3  ;;  %v2173_v22 = vmul.f32 %v1597_v14, %v1020_v6  ;;  %v2174_v23 = vmul.f32 %v1598_v15, %v1021_v7  ;;  %v1601_v25 = vmul.f32 %v3589_v1, %v1024_v17  ;;  %v457_v3 = vld [vmem:[#allocation4 + $0xd40] sm:$0xff] }
 0x1ad   :  { %v2175_v24 = vmul.f32 %v1599_v16, %v1022_v8  ;;  %v2747_v29 = vadd.f32 %v3594_v10, %v2170_v18  ;;  %v2748_v30 = vadd.f32 %v3594_v10, %v2171_v19  ;;  %v2176_v32 = vmul.f32 %v1600_v21, %v1023_v13  ;;  %v461_v12 = vld [vmem:[#allocation4 + $0xd60] sm:$0xff]  ;;  %v462_v13 = vld [vmem:[#allocation4 + $0xd68] sm:$0xff]  ;;  %v463_v18 = vld [vmem:[#allocation4 + $0xd70] sm:$0xff] }
 0x1ae   :  { %v2749_v31 = vadd.f32 %v3594_v10, %v2172_v20  ;;  %v2750_v36 = vadd.f32 %v3594_v10, %v2173_v22  ;;  %v2751_v37 = vadd.f32 %v3594_v10, %v2174_v23  ;;  %v2177_v39 = vmul.f32 %v1601_v25, %v1024_v17  ;;  %v464_v23 = vld [vmem:[#allocation4 + $0xd78] sm:$0xff] }
 0x1af   :  { %v2752_v38 = vadd.f32 %v3594_v10, %v2175_v24  ;;  %3323 = vst [vmem:[#allocation7 + $0xcc0] sm:$0xff] %v2747_v29  ;;  %3324 = vst [vmem:[#allocation7 + $0xcc8] sm:$0xff] %v2748_v30  ;;  %v2753_v41 = vadd.f32 %v3594_v10, %v2176_v32  ;;  %v1025_v42 = vmax.f32 %v449_v26, 0.0  ;;  %v1026_v43 = vmax.f32 %v450_v27, 0.0 }
 0x1b0   :  { %3325 = vst [vmem:[#allocation7 + $0xcd0] sm:$0xff] %v2749_v31  ;;  %v1027_v44 = vmax.f32 %v451_v28, 0.0  ;;  %3326 = vst [vmem:[#allocation7 + $0xcd8] sm:$0xff] %v2750_v36  ;;  %v2754_v46 = vadd.f32 %v3594_v10, %v2177_v39  ;;  %v1028_v47 = vmax.f32 %v452_v33, 0.0  ;;  %v1029_v48 = vmax.f32 %v453_v34, 0.0 }
 0x1b1   :  { %3327 = vst [vmem:[#allocation7 + $0xce0] sm:$0xff] %v2751_v37  ;;  %3328 = vst [vmem:[#allocation7 + $0xce8] sm:$0xff] %v2752_v38  ;;  %v1030_v49 = vmax.f32 %v454_v35, 0.0  ;;  %v1602_v50 = vmul.f32 %v3589_v1, %v1025_v42  ;;  %v1603_v51 = vmul.f32 %v3589_v1, %v1026_v43  ;;  %v1031_v53 = vmax.f32 %v455_v40, 0.0 }
 0x1b2   :  { %3329 = vst [vmem:[#allocation7 + $0xcf0] sm:$0xff] %v2753_v41  ;;  %v1604_v52 = vmul.f32 %v3589_v1, %v1027_v44  ;;  %3330 = vst [vmem:[#allocation7 + $0xcf8] sm:$0xff] %v2754_v46  ;;  %v1605_v54 = vmul.f32 %v3589_v1, %v1028_v47  ;;  %v1606_v55 = vmul.f32 %v3589_v1, %v1029_v48  ;;  %v1032_v57 = vmax.f32 %v456_v45, 0.0  ;;  %v466_v45 = vld [vmem:[#allocation4 + $0xd88] sm:$0xff]  ;;  %v467_v46 = vld [vmem:[#allocation4 + $0xd90] sm:$0xff] }
 0x1b3   :  { %v1607_v56 = vmul.f32 %v3589_v1, %v1030_v49  ;;  %v2178_v58 = vmul.f32 %v1602_v50, %v1025_v42  ;;  %v2179_v59 = vmul.f32 %v1603_v51, %v1026_v43  ;;  %v1608_v61 = vmul.f32 %v3589_v1, %v1031_v53  ;;  %v468_v51 = vld [vmem:[#allocation4 + $0xd98] sm:$0xff] }
 0x1b4   :  { %v2180_v60 = vmul.f32 %v1604_v52, %v1027_v44  ;;  %v2181_v62 = vmul.f32 %v1605_v54, %v1028_v47  ;;  %v2182_v63 = vmul.f32 %v1606_v55, %v1029_v48  ;;  %v1609_v2 = vmul.f32 %v3589_v1, %v1032_v57  ;;  %v465_v44 = vld [vmem:[#allocation4 + $0xd80] sm:$0xff] }
 0x1b5   :  { %v2183_v0 = vmul.f32 %v1607_v56, %v1030_v49  ;;  %v2755_v6 = vadd.f32 %v3594_v10, %v2178_v58  ;;  %v2756_v7 = vadd.f32 %v3594_v10, %v2179_v59  ;;  %v2184_v9 = vmul.f32 %v1608_v61, %v1031_v53  ;;  %v469_v52 = vld [vmem:[#allocation4 + $0xda0] sm:$0xff]  ;;  %v470_v53 = vld [vmem:[#allocation4 + $0xda8] sm:$0xff]  ;;  %v471_v58 = vld [vmem:[#allocation4 + $0xdb0] sm:$0xff] }
 0x1b6   :  { %v2757_v8 = vadd.f32 %v3594_v10, %v2180_v60  ;;  %v2758_v14 = vadd.f32 %v3594_v10, %v2181_v62  ;;  %v2759_v15 = vadd.f32 %v3594_v10, %v2182_v63  ;;  %v2185_v17 = vmul.f32 %v1609_v2, %v1032_v57  ;;  %v472_v63 = vld [vmem:[#allocation4 + $0xdb8] sm:$0xff] }
 0x1b7   :  { %v2760_v16 = vadd.f32 %v3594_v10, %v2183_v0  ;;  %3331 = vst [vmem:[#allocation7 + $0xd00] sm:$0xff] %v2755_v6  ;;  %3332 = vst [vmem:[#allocation7 + $0xd08] sm:$0xff] %v2756_v7  ;;  %v2761_v19 = vadd.f32 %v3594_v10, %v2184_v9  ;;  %v1033_v20 = vmax.f32 %v457_v3, 0.0  ;;  %v1034_v21 = vmax.f32 %v458_v4, 0.0 }
 0x1b8   :  { %3333 = vst [vmem:[#allocation7 + $0xd10] sm:$0xff] %v2757_v8  ;;  %v1035_v22 = vmax.f32 %v459_v5, 0.0  ;;  %3334 = vst [vmem:[#allocation7 + $0xd18] sm:$0xff] %v2758_v14  ;;  %v2762_v24 = vadd.f32 %v3594_v10, %v2185_v17  ;;  %v1036_v25 = vmax.f32 %v460_v11, 0.0  ;;  %v1037_v26 = vmax.f32 %v461_v12, 0.0 }
 0x1b9   :  { %3335 = vst [vmem:[#allocation7 + $0xd20] sm:$0xff] %v2759_v15  ;;  %3336 = vst [vmem:[#allocation7 + $0xd28] sm:$0xff] %v2760_v16  ;;  %v1038_v27 = vmax.f32 %v462_v13, 0.0  ;;  %v1610_v28 = vmul.f32 %v3589_v1, %v1033_v20  ;;  %v1611_v29 = vmul.f32 %v3589_v1, %v1034_v21  ;;  %v1039_v31 = vmax.f32 %v463_v18, 0.0 }
 0x1ba   :  { %3337 = vst [vmem:[#allocation7 + $0xd30] sm:$0xff] %v2761_v19  ;;  %v1612_v30 = vmul.f32 %v3589_v1, %v1035_v22  ;;  %3338 = vst [vmem:[#allocation7 + $0xd38] sm:$0xff] %v2762_v24  ;;  %v1613_v32 = vmul.f32 %v3589_v1, %v1036_v25  ;;  %v1614_v33 = vmul.f32 %v3589_v1, %v1037_v26  ;;  %v1040_v35 = vmax.f32 %v464_v23, 0.0  ;;  %v474_v23 = vld [vmem:[#allocation4 + $0xdc8] sm:$0xff]  ;;  %v475_v24 = vld [vmem:[#allocation4 + $0xdd0] sm:$0xff] }
 0x1bb   :  { %v1615_v34 = vmul.f32 %v3589_v1, %v1038_v27  ;;  %v2186_v36 = vmul.f32 %v1610_v28, %v1033_v20  ;;  %v2187_v37 = vmul.f32 %v1611_v29, %v1034_v21  ;;  %v1616_v39 = vmul.f32 %v3589_v1, %v1039_v31  ;;  %v476_v29 = vld [vmem:[#allocation4 + $0xdd8] sm:$0xff] }
 0x1bc   :  { %v2188_v38 = vmul.f32 %v1612_v30, %v1035_v22  ;;  %v2189_v40 = vmul.f32 %v1613_v32, %v1036_v25  ;;  %v2190_v41 = vmul.f32 %v1614_v33, %v1037_v26  ;;  %v1617_v43 = vmul.f32 %v3589_v1, %v1040_v35  ;;  %v473_v22 = vld [vmem:[#allocation4 + $0xdc0] sm:$0xff] }
 0x1bd   :  { %v2191_v42 = vmul.f32 %v1615_v34, %v1038_v27  ;;  %v2763_v47 = vadd.f32 %v3594_v10, %v2186_v36  ;;  %v2764_v48 = vadd.f32 %v3594_v10, %v2187_v37  ;;  %v2192_v50 = vmul.f32 %v1616_v39, %v1039_v31  ;;  %v477_v30 = vld [vmem:[#allocation4 + $0xde0] sm:$0xff]  ;;  %v478_v31 = vld [vmem:[#allocation4 + $0xde8] sm:$0xff]  ;;  %v479_v36 = vld [vmem:[#allocation4 + $0xdf0] sm:$0xff] }
 0x1be   :  { %v2765_v49 = vadd.f32 %v3594_v10, %v2188_v38  ;;  %v2766_v54 = vadd.f32 %v3594_v10, %v2189_v40  ;;  %v2767_v55 = vadd.f32 %v3594_v10, %v2190_v41  ;;  %v2193_v57 = vmul.f32 %v1617_v43, %v1040_v35  ;;  %v480_v41 = vld [vmem:[#allocation4 + $0xdf8] sm:$0xff] }
 0x1bf   :  { %v2768_v56 = vadd.f32 %v3594_v10, %v2191_v42  ;;  %3339 = vst [vmem:[#allocation7 + $0xd40] sm:$0xff] %v2763_v47  ;;  %3340 = vst [vmem:[#allocation7 + $0xd48] sm:$0xff] %v2764_v48  ;;  %v2769_v59 = vadd.f32 %v3594_v10, %v2192_v50  ;;  %v1041_v60 = vmax.f32 %v465_v44, 0.0  ;;  %v1042_v61 = vmax.f32 %v466_v45, 0.0 }
 0x1c0   :  { %3341 = vst [vmem:[#allocation7 + $0xd50] sm:$0xff] %v2765_v49  ;;  %v1043_v62 = vmax.f32 %v467_v46, 0.0  ;;  %3342 = vst [vmem:[#allocation7 + $0xd58] sm:$0xff] %v2766_v54  ;;  %v2770_v0 = vadd.f32 %v3594_v10, %v2193_v57  ;;  %v1044_v2 = vmax.f32 %v468_v51, 0.0  ;;  %v1045_v3 = vmax.f32 %v469_v52, 0.0 }
 0x1c1   :  { %3343 = vst [vmem:[#allocation7 + $0xd60] sm:$0xff] %v2767_v55  ;;  %3344 = vst [vmem:[#allocation7 + $0xd68] sm:$0xff] %v2768_v56  ;;  %v1046_v4 = vmax.f32 %v470_v53, 0.0  ;;  %v1618_v5 = vmul.f32 %v3589_v1, %v1041_v60  ;;  %v1619_v6 = vmul.f32 %v3589_v1, %v1042_v61  ;;  %v1047_v8 = vmax.f32 %v471_v58, 0.0 }
 0x1c2   :  { %3345 = vst [vmem:[#allocation7 + $0xd70] sm:$0xff] %v2769_v59  ;;  %v1620_v7 = vmul.f32 %v3589_v1, %v1043_v62  ;;  %3346 = vst [vmem:[#allocation7 + $0xd78] sm:$0xff] %v2770_v0  ;;  %v1621_v9 = vmul.f32 %v3589_v1, %v1044_v2  ;;  %v1622_v11 = vmul.f32 %v3589_v1, %v1045_v3  ;;  %v1048_v13 = vmax.f32 %v472_v63, 0.0  ;;  %v482_v63 = vld [vmem:[#allocation4 + $0xe08] sm:$0xff]  ;;  %v483_v0 = vld [vmem:[#allocation4 + $0xe10] sm:$0xff] }
 0x1c3   :  { %v1623_v12 = vmul.f32 %v3589_v1, %v1046_v4  ;;  %v2194_v14 = vmul.f32 %v1618_v5, %v1041_v60  ;;  %v2195_v15 = vmul.f32 %v1619_v6, %v1042_v61  ;;  %v1624_v17 = vmul.f32 %v3589_v1, %v1047_v8  ;;  %v484_v6 = vld [vmem:[#allocation4 + $0xe18] sm:$0xff] }
 0x1c4   :  { %v2196_v16 = vmul.f32 %v1620_v7, %v1043_v62  ;;  %v2197_v18 = vmul.f32 %v1621_v9, %v1044_v2  ;;  %v2198_v19 = vmul.f32 %v1622_v11, %v1045_v3  ;;  %v1625_v21 = vmul.f32 %v3589_v1, %v1048_v13  ;;  %v481_v62 = vld [vmem:[#allocation4 + $0xe00] sm:$0xff] }
 0x1c5   :  { %v2199_v20 = vmul.f32 %v1623_v12, %v1046_v4  ;;  %v2771_v25 = vadd.f32 %v3594_v10, %v2194_v14  ;;  %v2772_v26 = vadd.f32 %v3594_v10, %v2195_v15  ;;  %v2200_v28 = vmul.f32 %v1624_v17, %v1047_v8  ;;  %v485_v7 = vld [vmem:[#allocation4 + $0xe20] sm:$0xff]  ;;  %v486_v8 = vld [vmem:[#allocation4 + $0xe28] sm:$0xff]  ;;  %v487_v14 = vld [vmem:[#allocation4 + $0xe30] sm:$0xff] }
 0x1c6   :  { %v2773_v27 = vadd.f32 %v3594_v10, %v2196_v16  ;;  %v2774_v32 = vadd.f32 %v3594_v10, %v2197_v18  ;;  %v2775_v33 = vadd.f32 %v3594_v10, %v2198_v19  ;;  %v2201_v35 = vmul.f32 %v1625_v21, %v1048_v13  ;;  %v488_v19 = vld [vmem:[#allocation4 + $0xe38] sm:$0xff] }
 0x1c7   :  { %v2776_v34 = vadd.f32 %v3594_v10, %v2199_v20  ;;  %3347 = vst [vmem:[#allocation7 + $0xd80] sm:$0xff] %v2771_v25  ;;  %3348 = vst [vmem:[#allocation7 + $0xd88] sm:$0xff] %v2772_v26  ;;  %v2777_v37 = vadd.f32 %v3594_v10, %v2200_v28  ;;  %v1049_v38 = vmax.f32 %v473_v22, 0.0  ;;  %v1050_v39 = vmax.f32 %v474_v23, 0.0 }
 0x1c8   :  { %3349 = vst [vmem:[#allocation7 + $0xd90] sm:$0xff] %v2773_v27  ;;  %v1051_v40 = vmax.f32 %v475_v24, 0.0  ;;  %3350 = vst [vmem:[#allocation7 + $0xd98] sm:$0xff] %v2774_v32  ;;  %v2778_v42 = vadd.f32 %v3594_v10, %v2201_v35  ;;  %v1052_v43 = vmax.f32 %v476_v29, 0.0  ;;  %v1053_v44 = vmax.f32 %v477_v30, 0.0 }
 0x1c9   :  { %3351 = vst [vmem:[#allocation7 + $0xda0] sm:$0xff] %v2775_v33  ;;  %3352 = vst [vmem:[#allocation7 + $0xda8] sm:$0xff] %v2776_v34  ;;  %v1054_v45 = vmax.f32 %v478_v31, 0.0  ;;  %v1626_v46 = vmul.f32 %v3589_v1, %v1049_v38  ;;  %v1627_v47 = vmul.f32 %v3589_v1, %v1050_v39  ;;  %v1055_v49 = vmax.f32 %v479_v36, 0.0 }
 0x1ca   :  { %3353 = vst [vmem:[#allocation7 + $0xdb0] sm:$0xff] %v2777_v37  ;;  %v1628_v48 = vmul.f32 %v3589_v1, %v1051_v40  ;;  %3354 = vst [vmem:[#allocation7 + $0xdb8] sm:$0xff] %v2778_v42  ;;  %v1629_v50 = vmul.f32 %v3589_v1, %v1052_v43  ;;  %v1630_v51 = vmul.f32 %v3589_v1, %v1053_v44  ;;  %v1056_v53 = vmax.f32 %v480_v41, 0.0  ;;  %v490_v41 = vld [vmem:[#allocation4 + $0xe48] sm:$0xff]  ;;  %v491_v42 = vld [vmem:[#allocation4 + $0xe50] sm:$0xff] }
 0x1cb   :  { %v1631_v52 = vmul.f32 %v3589_v1, %v1054_v45  ;;  %v2202_v54 = vmul.f32 %v1626_v46, %v1049_v38  ;;  %v2203_v55 = vmul.f32 %v1627_v47, %v1050_v39  ;;  %v1632_v57 = vmul.f32 %v3589_v1, %v1055_v49  ;;  %v492_v47 = vld [vmem:[#allocation4 + $0xe58] sm:$0xff] }
 0x1cc   :  { %v2204_v56 = vmul.f32 %v1628_v48, %v1051_v40  ;;  %v2205_v58 = vmul.f32 %v1629_v50, %v1052_v43  ;;  %v2206_v59 = vmul.f32 %v1630_v51, %v1053_v44  ;;  %v1633_v61 = vmul.f32 %v3589_v1, %v1056_v53  ;;  %v489_v40 = vld [vmem:[#allocation4 + $0xe40] sm:$0xff] }
 0x1cd   :  { %v2207_v60 = vmul.f32 %v1631_v52, %v1054_v45  ;;  %v2779_v2 = vadd.f32 %v3594_v10, %v2202_v54  ;;  %v2780_v3 = vadd.f32 %v3594_v10, %v2203_v55  ;;  %v2208_v5 = vmul.f32 %v1632_v57, %v1055_v49  ;;  %v493_v48 = vld [vmem:[#allocation4 + $0xe60] sm:$0xff]  ;;  %v494_v49 = vld [vmem:[#allocation4 + $0xe68] sm:$0xff]  ;;  %v495_v54 = vld [vmem:[#allocation4 + $0xe70] sm:$0xff] }
 0x1ce   :  { %v2781_v4 = vadd.f32 %v3594_v10, %v2204_v56  ;;  %v2782_v9 = vadd.f32 %v3594_v10, %v2205_v58  ;;  %v2783_v11 = vadd.f32 %v3594_v10, %v2206_v59  ;;  %v2209_v13 = vmul.f32 %v1633_v61, %v1056_v53  ;;  %v496_v59 = vld [vmem:[#allocation4 + $0xe78] sm:$0xff] }
 0x1cf   :  { %v2784_v12 = vadd.f32 %v3594_v10, %v2207_v60  ;;  %3355 = vst [vmem:[#allocation7 + $0xdc0] sm:$0xff] %v2779_v2  ;;  %3356 = vst [vmem:[#allocation7 + $0xdc8] sm:$0xff] %v2780_v3  ;;  %v2785_v15 = vadd.f32 %v3594_v10, %v2208_v5  ;;  %v1057_v16 = vmax.f32 %v481_v62, 0.0  ;;  %v1058_v17 = vmax.f32 %v482_v63, 0.0 }
 0x1d0   :  { %3357 = vst [vmem:[#allocation7 + $0xdd0] sm:$0xff] %v2781_v4  ;;  %v1059_v18 = vmax.f32 %v483_v0, 0.0  ;;  %3358 = vst [vmem:[#allocation7 + $0xdd8] sm:$0xff] %v2782_v9  ;;  %v2786_v20 = vadd.f32 %v3594_v10, %v2209_v13  ;;  %v1060_v21 = vmax.f32 %v484_v6, 0.0  ;;  %v1061_v22 = vmax.f32 %v485_v7, 0.0 }
 0x1d1   :  { %3359 = vst [vmem:[#allocation7 + $0xde0] sm:$0xff] %v2783_v11  ;;  %3360 = vst [vmem:[#allocation7 + $0xde8] sm:$0xff] %v2784_v12  ;;  %v1062_v23 = vmax.f32 %v486_v8, 0.0  ;;  %v1634_v24 = vmul.f32 %v3589_v1, %v1057_v16  ;;  %v1635_v25 = vmul.f32 %v3589_v1, %v1058_v17  ;;  %v1063_v27 = vmax.f32 %v487_v14, 0.0 }
 0x1d2   :  { %3361 = vst [vmem:[#allocation7 + $0xdf0] sm:$0xff] %v2785_v15  ;;  %v1636_v26 = vmul.f32 %v3589_v1, %v1059_v18  ;;  %3362 = vst [vmem:[#allocation7 + $0xdf8] sm:$0xff] %v2786_v20  ;;  %v1637_v28 = vmul.f32 %v3589_v1, %v1060_v21  ;;  %v1638_v29 = vmul.f32 %v3589_v1, %v1061_v22  ;;  %v1064_v31 = vmax.f32 %v488_v19, 0.0  ;;  %v498_v19 = vld [vmem:[#allocation4 + $0xe88] sm:$0xff]  ;;  %v499_v20 = vld [vmem:[#allocation4 + $0xe90] sm:$0xff] }
 0x1d3   :  { %v1639_v30 = vmul.f32 %v3589_v1, %v1062_v23  ;;  %v2210_v32 = vmul.f32 %v1634_v24, %v1057_v16  ;;  %v2211_v33 = vmul.f32 %v1635_v25, %v1058_v17  ;;  %v1640_v35 = vmul.f32 %v3589_v1, %v1063_v27  ;;  %v500_v25 = vld [vmem:[#allocation4 + $0xe98] sm:$0xff] }
 0x1d4   :  { %v2212_v34 = vmul.f32 %v1636_v26, %v1059_v18  ;;  %v2213_v36 = vmul.f32 %v1637_v28, %v1060_v21  ;;  %v2214_v37 = vmul.f32 %v1638_v29, %v1061_v22  ;;  %v1641_v39 = vmul.f32 %v3589_v1, %v1064_v31  ;;  %v497_v18 = vld [vmem:[#allocation4 + $0xe80] sm:$0xff] }
 0x1d5   :  { %v2215_v38 = vmul.f32 %v1639_v30, %v1062_v23  ;;  %v2787_v43 = vadd.f32 %v3594_v10, %v2210_v32  ;;  %v2788_v44 = vadd.f32 %v3594_v10, %v2211_v33  ;;  %v2216_v46 = vmul.f32 %v1640_v35, %v1063_v27  ;;  %v501_v26 = vld [vmem:[#allocation4 + $0xea0] sm:$0xff]  ;;  %v502_v27 = vld [vmem:[#allocation4 + $0xea8] sm:$0xff]  ;;  %v503_v32 = vld [vmem:[#allocation4 + $0xeb0] sm:$0xff] }
 0x1d6   :  { %v2789_v45 = vadd.f32 %v3594_v10, %v2212_v34  ;;  %v2790_v50 = vadd.f32 %v3594_v10, %v2213_v36  ;;  %v2791_v51 = vadd.f32 %v3594_v10, %v2214_v37  ;;  %v2217_v53 = vmul.f32 %v1641_v39, %v1064_v31  ;;  %v504_v37 = vld [vmem:[#allocation4 + $0xeb8] sm:$0xff] }
 0x1d7   :  { %v2792_v52 = vadd.f32 %v3594_v10, %v2215_v38  ;;  %3363 = vst [vmem:[#allocation7 + $0xe00] sm:$0xff] %v2787_v43  ;;  %3364 = vst [vmem:[#allocation7 + $0xe08] sm:$0xff] %v2788_v44  ;;  %v2793_v55 = vadd.f32 %v3594_v10, %v2216_v46  ;;  %v1065_v56 = vmax.f32 %v489_v40, 0.0  ;;  %v1066_v57 = vmax.f32 %v490_v41, 0.0 }
 0x1d8   :  { %3365 = vst [vmem:[#allocation7 + $0xe10] sm:$0xff] %v2789_v45  ;;  %v1067_v58 = vmax.f32 %v491_v42, 0.0  ;;  %3366 = vst [vmem:[#allocation7 + $0xe18] sm:$0xff] %v2790_v50  ;;  %v2794_v60 = vadd.f32 %v3594_v10, %v2217_v53  ;;  %v1068_v61 = vmax.f32 %v492_v47, 0.0  ;;  %v1069_v62 = vmax.f32 %v493_v48, 0.0 }
 0x1d9   :  { %3367 = vst [vmem:[#allocation7 + $0xe20] sm:$0xff] %v2791_v51  ;;  %3368 = vst [vmem:[#allocation7 + $0xe28] sm:$0xff] %v2792_v52  ;;  %v1070_v63 = vmax.f32 %v494_v49, 0.0  ;;  %v1642_v0 = vmul.f32 %v3589_v1, %v1065_v56  ;;  %v1643_v2 = vmul.f32 %v3589_v1, %v1066_v57  ;;  %v1071_v4 = vmax.f32 %v495_v54, 0.0 }
 0x1da   :  { %3369 = vst [vmem:[#allocation7 + $0xe30] sm:$0xff] %v2793_v55  ;;  %v1644_v3 = vmul.f32 %v3589_v1, %v1067_v58  ;;  %3370 = vst [vmem:[#allocation7 + $0xe38] sm:$0xff] %v2794_v60  ;;  %v1645_v5 = vmul.f32 %v3589_v1, %v1068_v61  ;;  %v1646_v6 = vmul.f32 %v3589_v1, %v1069_v62  ;;  %v1072_v8 = vmax.f32 %v496_v59, 0.0  ;;  %v506_v59 = vld [vmem:[#allocation4 + $0xec8] sm:$0xff]  ;;  %v507_v60 = vld [vmem:[#allocation4 + $0xed0] sm:$0xff] }
 0x1db   :  { %v1647_v7 = vmul.f32 %v3589_v1, %v1070_v63  ;;  %v2218_v9 = vmul.f32 %v1642_v0, %v1065_v56  ;;  %v2219_v11 = vmul.f32 %v1643_v2, %v1066_v57  ;;  %v1648_v13 = vmul.f32 %v3589_v1, %v1071_v4  ;;  %v508_v2 = vld [vmem:[#allocation4 + $0xed8] sm:$0xff] }
 0x1dc   :  { %v2220_v12 = vmul.f32 %v1644_v3, %v1067_v58  ;;  %v2221_v14 = vmul.f32 %v1645_v5, %v1068_v61  ;;  %v2222_v15 = vmul.f32 %v1646_v6, %v1069_v62  ;;  %v1649_v17 = vmul.f32 %v3589_v1, %v1072_v8  ;;  %v505_v58 = vld [vmem:[#allocation4 + $0xec0] sm:$0xff] }
 0x1dd   :  { %v2223_v16 = vmul.f32 %v1647_v7, %v1070_v63  ;;  %v2795_v21 = vadd.f32 %v3594_v10, %v2218_v9  ;;  %v2796_v22 = vadd.f32 %v3594_v10, %v2219_v11  ;;  %v2224_v24 = vmul.f32 %v1648_v13, %v1071_v4  ;;  %v509_v3 = vld [vmem:[#allocation4 + $0xee0] sm:$0xff]  ;;  %v510_v4 = vld [vmem:[#allocation4 + $0xee8] sm:$0xff]  ;;  %v511_v9 = vld [vmem:[#allocation4 + $0xef0] sm:$0xff] }
 0x1de   :  { %v2797_v23 = vadd.f32 %v3594_v10, %v2220_v12  ;;  %v2798_v28 = vadd.f32 %v3594_v10, %v2221_v14  ;;  %v2799_v29 = vadd.f32 %v3594_v10, %v2222_v15  ;;  %v2225_v31 = vmul.f32 %v1649_v17, %v1072_v8  ;;  %v512_v15 = vld [vmem:[#allocation4 + $0xef8] sm:$0xff] }
 0x1df   :  { %v2800_v30 = vadd.f32 %v3594_v10, %v2223_v16  ;;  %3371 = vst [vmem:[#allocation7 + $0xe40] sm:$0xff] %v2795_v21  ;;  %3372 = vst [vmem:[#allocation7 + $0xe48] sm:$0xff] %v2796_v22  ;;  %v2801_v33 = vadd.f32 %v3594_v10, %v2224_v24  ;;  %v1073_v34 = vmax.f32 %v497_v18, 0.0  ;;  %v1074_v35 = vmax.f32 %v498_v19, 0.0 }
 0x1e0   :  { %3373 = vst [vmem:[#allocation7 + $0xe50] sm:$0xff] %v2797_v23  ;;  %v1075_v36 = vmax.f32 %v499_v20, 0.0  ;;  %3374 = vst [vmem:[#allocation7 + $0xe58] sm:$0xff] %v2798_v28  ;;  %v2802_v38 = vadd.f32 %v3594_v10, %v2225_v31  ;;  %v1076_v39 = vmax.f32 %v500_v25, 0.0  ;;  %v1077_v40 = vmax.f32 %v501_v26, 0.0 }
 0x1e1   :  { %3375 = vst [vmem:[#allocation7 + $0xe60] sm:$0xff] %v2799_v29  ;;  %3376 = vst [vmem:[#allocation7 + $0xe68] sm:$0xff] %v2800_v30  ;;  %v1078_v41 = vmax.f32 %v502_v27, 0.0  ;;  %v1650_v42 = vmul.f32 %v3589_v1, %v1073_v34  ;;  %v1651_v43 = vmul.f32 %v3589_v1, %v1074_v35  ;;  %v1079_v45 = vmax.f32 %v503_v32, 0.0 }
 0x1e2   :  { %3377 = vst [vmem:[#allocation7 + $0xe70] sm:$0xff] %v2801_v33  ;;  %v1652_v44 = vmul.f32 %v3589_v1, %v1075_v36  ;;  %3378 = vst [vmem:[#allocation7 + $0xe78] sm:$0xff] %v2802_v38  ;;  %v1653_v46 = vmul.f32 %v3589_v1, %v1076_v39  ;;  %v1654_v47 = vmul.f32 %v3589_v1, %v1077_v40  ;;  %v1080_v49 = vmax.f32 %v504_v37, 0.0  ;;  %v514_v37 = vld [vmem:[#allocation4 + $0xf08] sm:$0xff]  ;;  %v515_v38 = vld [vmem:[#allocation4 + $0xf10] sm:$0xff] }
 0x1e3   :  { %v1655_v48 = vmul.f32 %v3589_v1, %v1078_v41  ;;  %v2226_v50 = vmul.f32 %v1650_v42, %v1073_v34  ;;  %v2227_v51 = vmul.f32 %v1651_v43, %v1074_v35  ;;  %v1656_v53 = vmul.f32 %v3589_v1, %v1079_v45  ;;  %v516_v43 = vld [vmem:[#allocation4 + $0xf18] sm:$0xff] }
 0x1e4   :  { %v2228_v52 = vmul.f32 %v1652_v44, %v1075_v36  ;;  %v2229_v54 = vmul.f32 %v1653_v46, %v1076_v39  ;;  %v2230_v55 = vmul.f32 %v1654_v47, %v1077_v40  ;;  %v1657_v57 = vmul.f32 %v3589_v1, %v1080_v49  ;;  %v513_v36 = vld [vmem:[#allocation4 + $0xf00] sm:$0xff] }
 0x1e5   :  { %v2231_v56 = vmul.f32 %v1655_v48, %v1078_v41  ;;  %v2803_v61 = vadd.f32 %v3594_v10, %v2226_v50  ;;  %v2804_v62 = vadd.f32 %v3594_v10, %v2227_v51  ;;  %v2232_v0 = vmul.f32 %v1656_v53, %v1079_v45  ;;  %v517_v44 = vld [vmem:[#allocation4 + $0xf20] sm:$0xff]  ;;  %v518_v45 = vld [vmem:[#allocation4 + $0xf28] sm:$0xff]  ;;  %v519_v50 = vld [vmem:[#allocation4 + $0xf30] sm:$0xff] }
 0x1e6   :  { %v2805_v63 = vadd.f32 %v3594_v10, %v2228_v52  ;;  %v2806_v5 = vadd.f32 %v3594_v10, %v2229_v54  ;;  %v2807_v6 = vadd.f32 %v3594_v10, %v2230_v55  ;;  %v2233_v8 = vmul.f32 %v1657_v57, %v1080_v49  ;;  %v520_v55 = vld [vmem:[#allocation4 + $0xf38] sm:$0xff] }
 0x1e7   :  { %v2808_v7 = vadd.f32 %v3594_v10, %v2231_v56  ;;  %3379 = vst [vmem:[#allocation7 + $0xe80] sm:$0xff] %v2803_v61  ;;  %3380 = vst [vmem:[#allocation7 + $0xe88] sm:$0xff] %v2804_v62  ;;  %v2809_v11 = vadd.f32 %v3594_v10, %v2232_v0  ;;  %v1081_v12 = vmax.f32 %v505_v58, 0.0  ;;  %v1082_v13 = vmax.f32 %v506_v59, 0.0 }
 0x1e8   :  { %3381 = vst [vmem:[#allocation7 + $0xe90] sm:$0xff] %v2805_v63  ;;  %v1083_v14 = vmax.f32 %v507_v60, 0.0  ;;  %3382 = vst [vmem:[#allocation7 + $0xe98] sm:$0xff] %v2806_v5  ;;  %v2810_v16 = vadd.f32 %v3594_v10, %v2233_v8  ;;  %v1084_v17 = vmax.f32 %v508_v2, 0.0  ;;  %v1085_v18 = vmax.f32 %v509_v3, 0.0 }
 0x1e9   :  { %3383 = vst [vmem:[#allocation7 + $0xea0] sm:$0xff] %v2807_v6  ;;  %3384 = vst [vmem:[#allocation7 + $0xea8] sm:$0xff] %v2808_v7  ;;  %v1086_v19 = vmax.f32 %v510_v4, 0.0  ;;  %v1658_v20 = vmul.f32 %v3589_v1, %v1081_v12  ;;  %v1659_v21 = vmul.f32 %v3589_v1, %v1082_v13  ;;  %v1087_v23 = vmax.f32 %v511_v9, 0.0 }
 0x1ea   :  { %3385 = vst [vmem:[#allocation7 + $0xeb0] sm:$0xff] %v2809_v11  ;;  %v1660_v22 = vmul.f32 %v3589_v1, %v1083_v14  ;;  %3386 = vst [vmem:[#allocation7 + $0xeb8] sm:$0xff] %v2810_v16  ;;  %v1661_v24 = vmul.f32 %v3589_v1, %v1084_v17  ;;  %v1662_v25 = vmul.f32 %v3589_v1, %v1085_v18  ;;  %v1088_v27 = vmax.f32 %v512_v15, 0.0  ;;  %v522_v15 = vld [vmem:[#allocation4 + $0xf48] sm:$0xff]  ;;  %v523_v16 = vld [vmem:[#allocation4 + $0xf50] sm:$0xff] }
 0x1eb   :  { %v1663_v26 = vmul.f32 %v3589_v1, %v1086_v19  ;;  %v2234_v28 = vmul.f32 %v1658_v20, %v1081_v12  ;;  %v2235_v29 = vmul.f32 %v1659_v21, %v1082_v13  ;;  %v1664_v31 = vmul.f32 %v3589_v1, %v1087_v23  ;;  %v524_v21 = vld [vmem:[#allocation4 + $0xf58] sm:$0xff] }
 0x1ec   :  { %v2236_v30 = vmul.f32 %v1660_v22, %v1083_v14  ;;  %v2237_v32 = vmul.f32 %v1661_v24, %v1084_v17  ;;  %v2238_v33 = vmul.f32 %v1662_v25, %v1085_v18  ;;  %v1665_v35 = vmul.f32 %v3589_v1, %v1088_v27  ;;  %v521_v14 = vld [vmem:[#allocation4 + $0xf40] sm:$0xff] }
 0x1ed   :  { %v2239_v34 = vmul.f32 %v1663_v26, %v1086_v19  ;;  %v2811_v39 = vadd.f32 %v3594_v10, %v2234_v28  ;;  %v2812_v40 = vadd.f32 %v3594_v10, %v2235_v29  ;;  %v2240_v42 = vmul.f32 %v1664_v31, %v1087_v23  ;;  %v525_v22 = vld [vmem:[#allocation4 + $0xf60] sm:$0xff]  ;;  %v526_v23 = vld [vmem:[#allocation4 + $0xf68] sm:$0xff]  ;;  %v527_v28 = vld [vmem:[#allocation4 + $0xf70] sm:$0xff] }
 0x1ee   :  { %v2813_v41 = vadd.f32 %v3594_v10, %v2236_v30  ;;  %v2814_v46 = vadd.f32 %v3594_v10, %v2237_v32  ;;  %v2815_v47 = vadd.f32 %v3594_v10, %v2238_v33  ;;  %v2241_v49 = vmul.f32 %v1665_v35, %v1088_v27  ;;  %v528_v33 = vld [vmem:[#allocation4 + $0xf78] sm:$0xff] }
 0x1ef   :  { %v2816_v48 = vadd.f32 %v3594_v10, %v2239_v34  ;;  %3387 = vst [vmem:[#allocation7 + $0xec0] sm:$0xff] %v2811_v39  ;;  %3388 = vst [vmem:[#allocation7 + $0xec8] sm:$0xff] %v2812_v40  ;;  %v2817_v51 = vadd.f32 %v3594_v10, %v2240_v42  ;;  %v1089_v52 = vmax.f32 %v513_v36, 0.0  ;;  %v1090_v53 = vmax.f32 %v514_v37, 0.0 }
 0x1f0   :  { %3389 = vst [vmem:[#allocation7 + $0xed0] sm:$0xff] %v2813_v41  ;;  %v1091_v54 = vmax.f32 %v515_v38, 0.0  ;;  %3390 = vst [vmem:[#allocation7 + $0xed8] sm:$0xff] %v2814_v46  ;;  %v2818_v56 = vadd.f32 %v3594_v10, %v2241_v49  ;;  %v1092_v57 = vmax.f32 %v516_v43, 0.0  ;;  %v1093_v58 = vmax.f32 %v517_v44, 0.0 }
 0x1f1   :  { %3391 = vst [vmem:[#allocation7 + $0xee0] sm:$0xff] %v2815_v47  ;;  %3392 = vst [vmem:[#allocation7 + $0xee8] sm:$0xff] %v2816_v48  ;;  %v1094_v59 = vmax.f32 %v518_v45, 0.0  ;;  %v1666_v60 = vmul.f32 %v3589_v1, %v1089_v52  ;;  %v1667_v61 = vmul.f32 %v3589_v1, %v1090_v53  ;;  %v1095_v63 = vmax.f32 %v519_v50, 0.0 }
 0x1f2   :  { %3393 = vst [vmem:[#allocation7 + $0xef0] sm:$0xff] %v2817_v51  ;;  %v1668_v62 = vmul.f32 %v3589_v1, %v1091_v54  ;;  %3394 = vst [vmem:[#allocation7 + $0xef8] sm:$0xff] %v2818_v56  ;;  %v1669_v0 = vmul.f32 %v3589_v1, %v1092_v57  ;;  %v1670_v2 = vmul.f32 %v3589_v1, %v1093_v58  ;;  %v1096_v4 = vmax.f32 %v520_v55, 0.0  ;;  %v530_v55 = vld [vmem:[#allocation4 + $0xf88] sm:$0xff]  ;;  %v531_v56 = vld [vmem:[#allocation4 + $0xf90] sm:$0xff] }
 0x1f3   :  { %v1671_v3 = vmul.f32 %v3589_v1, %v1094_v59  ;;  %v2242_v5 = vmul.f32 %v1666_v60, %v1089_v52  ;;  %v2243_v6 = vmul.f32 %v1667_v61, %v1090_v53  ;;  %v1672_v8 = vmul.f32 %v3589_v1, %v1095_v63  ;;  %v532_v61 = vld [vmem:[#allocation4 + $0xf98] sm:$0xff] }
 0x1f4   :  { %v2244_v7 = vmul.f32 %v1668_v62, %v1091_v54  ;;  %v2245_v9 = vmul.f32 %v1669_v0, %v1092_v57  ;;  %v2246_v11 = vmul.f32 %v1670_v2, %v1093_v58  ;;  %v1673_v13 = vmul.f32 %v3589_v1, %v1096_v4  ;;  %v529_v54 = vld [vmem:[#allocation4 + $0xf80] sm:$0xff] }
 0x1f5   :  { %v2247_v12 = vmul.f32 %v1671_v3, %v1094_v59  ;;  %v2819_v17 = vadd.f32 %v3594_v10, %v2242_v5  ;;  %v2820_v18 = vadd.f32 %v3594_v10, %v2243_v6  ;;  %v2248_v20 = vmul.f32 %v1672_v8, %v1095_v63  ;;  %v533_v62 = vld [vmem:[#allocation4 + $0xfa0] sm:$0xff]  ;;  %v534_v63 = vld [vmem:[#allocation4 + $0xfa8] sm:$0xff]  ;;  %v535_v5 = vld [vmem:[#allocation4 + $0xfb0] sm:$0xff] }
 0x1f6   :  { %v2821_v19 = vadd.f32 %v3594_v10, %v2244_v7  ;;  %v2822_v24 = vadd.f32 %v3594_v10, %v2245_v9  ;;  %v2823_v25 = vadd.f32 %v3594_v10, %v2246_v11  ;;  %v2249_v27 = vmul.f32 %v1673_v13, %v1096_v4  ;;  %v536_v11 = vld [vmem:[#allocation4 + $0xfb8] sm:$0xff] }
 0x1f7   :  { %v2824_v26 = vadd.f32 %v3594_v10, %v2247_v12  ;;  %3395 = vst [vmem:[#allocation7 + $0xf00] sm:$0xff] %v2819_v17  ;;  %3396 = vst [vmem:[#allocation7 + $0xf08] sm:$0xff] %v2820_v18  ;;  %v2825_v29 = vadd.f32 %v3594_v10, %v2248_v20  ;;  %v1097_v30 = vmax.f32 %v521_v14, 0.0  ;;  %v1098_v31 = vmax.f32 %v522_v15, 0.0 }
 0x1f8   :  { %3397 = vst [vmem:[#allocation7 + $0xf10] sm:$0xff] %v2821_v19  ;;  %v1099_v32 = vmax.f32 %v523_v16, 0.0  ;;  %3398 = vst [vmem:[#allocation7 + $0xf18] sm:$0xff] %v2822_v24  ;;  %v2826_v34 = vadd.f32 %v3594_v10, %v2249_v27  ;;  %v1100_v35 = vmax.f32 %v524_v21, 0.0  ;;  %v1101_v36 = vmax.f32 %v525_v22, 0.0 }
 0x1f9   :  { %3399 = vst [vmem:[#allocation7 + $0xf20] sm:$0xff] %v2823_v25  ;;  %3400 = vst [vmem:[#allocation7 + $0xf28] sm:$0xff] %v2824_v26  ;;  %v1102_v37 = vmax.f32 %v526_v23, 0.0  ;;  %v1674_v38 = vmul.f32 %v3589_v1, %v1097_v30  ;;  %v1675_v39 = vmul.f32 %v3589_v1, %v1098_v31  ;;  %v1103_v41 = vmax.f32 %v527_v28, 0.0 }
 0x1fa   :  { %3401 = vst [vmem:[#allocation7 + $0xf30] sm:$0xff] %v2825_v29  ;;  %v1676_v40 = vmul.f32 %v3589_v1, %v1099_v32  ;;  %3402 = vst [vmem:[#allocation7 + $0xf38] sm:$0xff] %v2826_v34  ;;  %v1677_v42 = vmul.f32 %v3589_v1, %v1100_v35  ;;  %v1678_v43 = vmul.f32 %v3589_v1, %v1101_v36  ;;  %v1104_v45 = vmax.f32 %v528_v33, 0.0  ;;  %v538_v33 = vld [vmem:[#allocation4 + $0xfc8] sm:$0xff]  ;;  %v539_v34 = vld [vmem:[#allocation4 + $0xfd0] sm:$0xff] }
 0x1fb   :  { %v1679_v44 = vmul.f32 %v3589_v1, %v1102_v37  ;;  %v2250_v46 = vmul.f32 %v1674_v38, %v1097_v30  ;;  %v2251_v47 = vmul.f32 %v1675_v39, %v1098_v31  ;;  %v1680_v49 = vmul.f32 %v3589_v1, %v1103_v41  ;;  %v540_v39 = vld [vmem:[#allocation4 + $0xfd8] sm:$0xff] }
 0x1fc   :  { %v2252_v48 = vmul.f32 %v1676_v40, %v1099_v32  ;;  %v2253_v50 = vmul.f32 %v1677_v42, %v1100_v35  ;;  %v2254_v51 = vmul.f32 %v1678_v43, %v1101_v36  ;;  %v1681_v53 = vmul.f32 %v3589_v1, %v1104_v45  ;;  %v537_v32 = vld [vmem:[#allocation4 + $0xfc0] sm:$0xff] }
 0x1fd   :  { %v2255_v52 = vmul.f32 %v1679_v44, %v1102_v37  ;;  %v2827_v57 = vadd.f32 %v3594_v10, %v2250_v46  ;;  %v2828_v58 = vadd.f32 %v3594_v10, %v2251_v47  ;;  %v2256_v60 = vmul.f32 %v1680_v49, %v1103_v41  ;;  %v541_v40 = vld [vmem:[#allocation4 + $0xfe0] sm:$0xff]  ;;  %v542_v41 = vld [vmem:[#allocation4 + $0xfe8] sm:$0xff]  ;;  %v543_v46 = vld [vmem:[#allocation4 + $0xff0] sm:$0xff] }
 0x1fe   :  { %v2829_v59 = vadd.f32 %v3594_v10, %v2252_v48  ;;  %v2830_v0 = vadd.f32 %v3594_v10, %v2253_v50  ;;  %v2831_v2 = vadd.f32 %v3594_v10, %v2254_v51  ;;  %v2257_v4 = vmul.f32 %v1681_v53, %v1104_v45  ;;  %v544_v51 = vld [vmem:[#allocation4 + $0xff8] sm:$0xff] }
 0x1ff   :  { %v2832_v3 = vadd.f32 %v3594_v10, %v2255_v52  ;;  %3403 = vst [vmem:[#allocation7 + $0xf40] sm:$0xff] %v2827_v57  ;;  %3404 = vst [vmem:[#allocation7 + $0xf48] sm:$0xff] %v2828_v58  ;;  %v2833_v6 = vadd.f32 %v3594_v10, %v2256_v60  ;;  %v1105_v7 = vmax.f32 %v529_v54, 0.0  ;;  %v1106_v8 = vmax.f32 %v530_v55, 0.0 }
 0x200   :  { %3405 = vst [vmem:[#allocation7 + $0xf50] sm:$0xff] %v2829_v59  ;;  %v1107_v9 = vmax.f32 %v531_v56, 0.0  ;;  %3406 = vst [vmem:[#allocation7 + $0xf58] sm:$0xff] %v2830_v0  ;;  %v2834_v12 = vadd.f32 %v3594_v10, %v2257_v4  ;;  %v1108_v13 = vmax.f32 %v532_v61, 0.0  ;;  %v1109_v14 = vmax.f32 %v533_v62, 0.0 }
 0x201   :  { %3407 = vst [vmem:[#allocation7 + $0xf60] sm:$0xff] %v2831_v2  ;;  %3408 = vst [vmem:[#allocation7 + $0xf68] sm:$0xff] %v2832_v3  ;;  %v1110_v15 = vmax.f32 %v534_v63, 0.0  ;;  %v1682_v16 = vmul.f32 %v3589_v1, %v1105_v7  ;;  %v1683_v17 = vmul.f32 %v3589_v1, %v1106_v8  ;;  %v1111_v19 = vmax.f32 %v535_v5, 0.0 }
 0x202   :  { %3409 = vst [vmem:[#allocation7 + $0xf70] sm:$0xff] %v2833_v6  ;;  %v1684_v18 = vmul.f32 %v3589_v1, %v1107_v9  ;;  %3410 = vst [vmem:[#allocation7 + $0xf78] sm:$0xff] %v2834_v12  ;;  %v1685_v20 = vmul.f32 %v3589_v1, %v1108_v13  ;;  %v1686_v21 = vmul.f32 %v3589_v1, %v1109_v14  ;;  %v1112_v23 = vmax.f32 %v536_v11, 0.0  ;;  %v546_v11 = vld [vmem:[#allocation4 + $0x1008] sm:$0xff]  ;;  %v547_v12 = vld [vmem:[#allocation4 + $0x1010] sm:$0xff] }
 0x203   :  { %v1687_v22 = vmul.f32 %v3589_v1, %v1110_v15  ;;  %v2258_v24 = vmul.f32 %v1682_v16, %v1105_v7  ;;  %v2259_v25 = vmul.f32 %v1683_v17, %v1106_v8  ;;  %v1688_v27 = vmul.f32 %v3589_v1, %v1111_v19  ;;  %v548_v17 = vld [vmem:[#allocation4 + $0x1018] sm:$0xff] }
 0x204   :  { %v2260_v26 = vmul.f32 %v1684_v18, %v1107_v9  ;;  %v2261_v28 = vmul.f32 %v1685_v20, %v1108_v13  ;;  %v2262_v29 = vmul.f32 %v1686_v21, %v1109_v14  ;;  %v1689_v31 = vmul.f32 %v3589_v1, %v1112_v23  ;;  %v545_v9 = vld [vmem:[#allocation4 + $0x1000] sm:$0xff] }
 0x205   :  { %v2263_v30 = vmul.f32 %v1687_v22, %v1110_v15  ;;  %v2835_v35 = vadd.f32 %v3594_v10, %v2258_v24  ;;  %v2836_v36 = vadd.f32 %v3594_v10, %v2259_v25  ;;  %v2264_v38 = vmul.f32 %v1688_v27, %v1111_v19  ;;  %v549_v18 = vld [vmem:[#allocation4 + $0x1020] sm:$0xff]  ;;  %v550_v19 = vld [vmem:[#allocation4 + $0x1028] sm:$0xff]  ;;  %v551_v24 = vld [vmem:[#allocation4 + $0x1030] sm:$0xff] }
 0x206   :  { %v2837_v37 = vadd.f32 %v3594_v10, %v2260_v26  ;;  %v2838_v42 = vadd.f32 %v3594_v10, %v2261_v28  ;;  %v2839_v43 = vadd.f32 %v3594_v10, %v2262_v29  ;;  %v2265_v45 = vmul.f32 %v1689_v31, %v1112_v23  ;;  %v552_v29 = vld [vmem:[#allocation4 + $0x1038] sm:$0xff] }
 0x207   :  { %v2840_v44 = vadd.f32 %v3594_v10, %v2263_v30  ;;  %3411 = vst [vmem:[#allocation7 + $0xf80] sm:$0xff] %v2835_v35  ;;  %3412 = vst [vmem:[#allocation7 + $0xf88] sm:$0xff] %v2836_v36  ;;  %v2841_v47 = vadd.f32 %v3594_v10, %v2264_v38  ;;  %v1113_v48 = vmax.f32 %v537_v32, 0.0  ;;  %v1114_v49 = vmax.f32 %v538_v33, 0.0 }
 0x208   :  { %3413 = vst [vmem:[#allocation7 + $0xf90] sm:$0xff] %v2837_v37  ;;  %v1115_v50 = vmax.f32 %v539_v34, 0.0  ;;  %3414 = vst [vmem:[#allocation7 + $0xf98] sm:$0xff] %v2838_v42  ;;  %v2842_v52 = vadd.f32 %v3594_v10, %v2265_v45  ;;  %v1116_v53 = vmax.f32 %v540_v39, 0.0  ;;  %v1117_v54 = vmax.f32 %v541_v40, 0.0 }
 0x209   :  { %3415 = vst [vmem:[#allocation7 + $0xfa0] sm:$0xff] %v2839_v43  ;;  %3416 = vst [vmem:[#allocation7 + $0xfa8] sm:$0xff] %v2840_v44  ;;  %v1118_v55 = vmax.f32 %v542_v41, 0.0  ;;  %v1690_v56 = vmul.f32 %v3589_v1, %v1113_v48  ;;  %v1691_v57 = vmul.f32 %v3589_v1, %v1114_v49  ;;  %v1119_v59 = vmax.f32 %v543_v46, 0.0 }
 0x20a   :  { %3417 = vst [vmem:[#allocation7 + $0xfb0] sm:$0xff] %v2841_v47  ;;  %v1692_v58 = vmul.f32 %v3589_v1, %v1115_v50  ;;  %3418 = vst [vmem:[#allocation7 + $0xfb8] sm:$0xff] %v2842_v52  ;;  %v1693_v60 = vmul.f32 %v3589_v1, %v1116_v53  ;;  %v1694_v61 = vmul.f32 %v3589_v1, %v1117_v54  ;;  %v1120_v63 = vmax.f32 %v544_v51, 0.0  ;;  %v554_v51 = vld [vmem:[#allocation4 + $0x1048] sm:$0xff]  ;;  %v555_v52 = vld [vmem:[#allocation4 + $0x1050] sm:$0xff] }
 0x20b   :  { %v1695_v62 = vmul.f32 %v3589_v1, %v1118_v55  ;;  %v2266_v0 = vmul.f32 %v1690_v56, %v1113_v48  ;;  %v2267_v2 = vmul.f32 %v1691_v57, %v1114_v49  ;;  %v1696_v4 = vmul.f32 %v3589_v1, %v1119_v59  ;;  %v556_v57 = vld [vmem:[#allocation4 + $0x1058] sm:$0xff] }
 0x20c   :  { %v2268_v3 = vmul.f32 %v1692_v58, %v1115_v50  ;;  %v2269_v5 = vmul.f32 %v1693_v60, %v1116_v53  ;;  %v2270_v6 = vmul.f32 %v1694_v61, %v1117_v54  ;;  %v1697_v8 = vmul.f32 %v3589_v1, %v1120_v63  ;;  %v553_v50 = vld [vmem:[#allocation4 + $0x1040] sm:$0xff] }
 0x20d   :  { %v2271_v7 = vmul.f32 %v1695_v62, %v1118_v55  ;;  %v2843_v13 = vadd.f32 %v3594_v10, %v2266_v0  ;;  %v2844_v14 = vadd.f32 %v3594_v10, %v2267_v2  ;;  %v2272_v16 = vmul.f32 %v1696_v4, %v1119_v59  ;;  %v557_v58 = vld [vmem:[#allocation4 + $0x1060] sm:$0xff]  ;;  %v558_v59 = vld [vmem:[#allocation4 + $0x1068] sm:$0xff]  ;;  %v559_v0 = vld [vmem:[#allocation4 + $0x1070] sm:$0xff] }
 0x20e   :  { %v2845_v15 = vadd.f32 %v3594_v10, %v2268_v3  ;;  %v2846_v20 = vadd.f32 %v3594_v10, %v2269_v5  ;;  %v2847_v21 = vadd.f32 %v3594_v10, %v2270_v6  ;;  %v2273_v23 = vmul.f32 %v1697_v8, %v1120_v63  ;;  %v560_v6 = vld [vmem:[#allocation4 + $0x1078] sm:$0xff] }
 0x20f   :  { %v2848_v22 = vadd.f32 %v3594_v10, %v2271_v7  ;;  %3419 = vst [vmem:[#allocation7 + $0xfc0] sm:$0xff] %v2843_v13  ;;  %3420 = vst [vmem:[#allocation7 + $0xfc8] sm:$0xff] %v2844_v14  ;;  %v2849_v25 = vadd.f32 %v3594_v10, %v2272_v16  ;;  %v1121_v26 = vmax.f32 %v545_v9, 0.0  ;;  %v1122_v27 = vmax.f32 %v546_v11, 0.0 }
 0x210   :  { %3421 = vst [vmem:[#allocation7 + $0xfd0] sm:$0xff] %v2845_v15  ;;  %v1123_v28 = vmax.f32 %v547_v12, 0.0  ;;  %3422 = vst [vmem:[#allocation7 + $0xfd8] sm:$0xff] %v2846_v20  ;;  %v2850_v30 = vadd.f32 %v3594_v10, %v2273_v23  ;;  %v1124_v31 = vmax.f32 %v548_v17, 0.0  ;;  %v1125_v32 = vmax.f32 %v549_v18, 0.0 }
 0x211   :  { %3423 = vst [vmem:[#allocation7 + $0xfe0] sm:$0xff] %v2847_v21  ;;  %3424 = vst [vmem:[#allocation7 + $0xfe8] sm:$0xff] %v2848_v22  ;;  %v1126_v33 = vmax.f32 %v550_v19, 0.0  ;;  %v1698_v34 = vmul.f32 %v3589_v1, %v1121_v26  ;;  %v1699_v35 = vmul.f32 %v3589_v1, %v1122_v27  ;;  %v1127_v37 = vmax.f32 %v551_v24, 0.0 }
 0x212   :  { %3425 = vst [vmem:[#allocation7 + $0xff0] sm:$0xff] %v2849_v25  ;;  %v1700_v36 = vmul.f32 %v3589_v1, %v1123_v28  ;;  %3426 = vst [vmem:[#allocation7 + $0xff8] sm:$0xff] %v2850_v30  ;;  %v1701_v38 = vmul.f32 %v3589_v1, %v1124_v31  ;;  %v1702_v39 = vmul.f32 %v3589_v1, %v1125_v32  ;;  %v1128_v41 = vmax.f32 %v552_v29, 0.0  ;;  %v562_v29 = vld [vmem:[#allocation4 + $0x1088] sm:$0xff]  ;;  %v563_v30 = vld [vmem:[#allocation4 + $0x1090] sm:$0xff] }
 0x213   :  { %v1703_v40 = vmul.f32 %v3589_v1, %v1126_v33  ;;  %v2274_v42 = vmul.f32 %v1698_v34, %v1121_v26  ;;  %v2275_v43 = vmul.f32 %v1699_v35, %v1122_v27  ;;  %v1704_v45 = vmul.f32 %v3589_v1, %v1127_v37  ;;  %v564_v35 = vld [vmem:[#allocation4 + $0x1098] sm:$0xff] }
 0x214   :  { %v2276_v44 = vmul.f32 %v1700_v36, %v1123_v28  ;;  %v2277_v46 = vmul.f32 %v1701_v38, %v1124_v31  ;;  %v2278_v47 = vmul.f32 %v1702_v39, %v1125_v32  ;;  %v1705_v49 = vmul.f32 %v3589_v1, %v1128_v41  ;;  %v561_v28 = vld [vmem:[#allocation4 + $0x1080] sm:$0xff] }
 0x215   :  { %v2279_v48 = vmul.f32 %v1703_v40, %v1126_v33  ;;  %v2851_v53 = vadd.f32 %v3594_v10, %v2274_v42  ;;  %v2852_v54 = vadd.f32 %v3594_v10, %v2275_v43  ;;  %v2280_v56 = vmul.f32 %v1704_v45, %v1127_v37  ;;  %v565_v36 = vld [vmem:[#allocation4 + $0x10a0] sm:$0xff]  ;;  %v566_v37 = vld [vmem:[#allocation4 + $0x10a8] sm:$0xff]  ;;  %v567_v42 = vld [vmem:[#allocation4 + $0x10b0] sm:$0xff] }
 0x216   :  { %v2853_v55 = vadd.f32 %v3594_v10, %v2276_v44  ;;  %v2854_v60 = vadd.f32 %v3594_v10, %v2277_v46  ;;  %v2855_v61 = vadd.f32 %v3594_v10, %v2278_v47  ;;  %v2281_v63 = vmul.f32 %v1705_v49, %v1128_v41  ;;  %v568_v47 = vld [vmem:[#allocation4 + $0x10b8] sm:$0xff] }
 0x217   :  { %v2856_v62 = vadd.f32 %v3594_v10, %v2279_v48  ;;  %3427 = vst [vmem:[#allocation7 + $0x1000] sm:$0xff] %v2851_v53  ;;  %3428 = vst [vmem:[#allocation7 + $0x1008] sm:$0xff] %v2852_v54  ;;  %v2857_v2 = vadd.f32 %v3594_v10, %v2280_v56  ;;  %v1129_v3 = vmax.f32 %v553_v50, 0.0  ;;  %v1130_v4 = vmax.f32 %v554_v51, 0.0 }
 0x218   :  { %3429 = vst [vmem:[#allocation7 + $0x1010] sm:$0xff] %v2853_v55  ;;  %v1131_v5 = vmax.f32 %v555_v52, 0.0  ;;  %3430 = vst [vmem:[#allocation7 + $0x1018] sm:$0xff] %v2854_v60  ;;  %v2858_v7 = vadd.f32 %v3594_v10, %v2281_v63  ;;  %v1132_v8 = vmax.f32 %v556_v57, 0.0  ;;  %v1133_v9 = vmax.f32 %v557_v58, 0.0 }
 0x219   :  { %3431 = vst [vmem:[#allocation7 + $0x1020] sm:$0xff] %v2855_v61  ;;  %3432 = vst [vmem:[#allocation7 + $0x1028] sm:$0xff] %v2856_v62  ;;  %v1134_v11 = vmax.f32 %v558_v59, 0.0  ;;  %v1706_v12 = vmul.f32 %v3589_v1, %v1129_v3  ;;  %v1707_v13 = vmul.f32 %v3589_v1, %v1130_v4  ;;  %v1135_v15 = vmax.f32 %v559_v0, 0.0 }
 0x21a   :  { %3433 = vst [vmem:[#allocation7 + $0x1030] sm:$0xff] %v2857_v2  ;;  %v1708_v14 = vmul.f32 %v3589_v1, %v1131_v5  ;;  %3434 = vst [vmem:[#allocation7 + $0x1038] sm:$0xff] %v2858_v7  ;;  %v1709_v16 = vmul.f32 %v3589_v1, %v1132_v8  ;;  %v1710_v17 = vmul.f32 %v3589_v1, %v1133_v9  ;;  %v1136_v19 = vmax.f32 %v560_v6, 0.0  ;;  %v570_v6 = vld [vmem:[#allocation4 + $0x10c8] sm:$0xff]  ;;  %v571_v7 = vld [vmem:[#allocation4 + $0x10d0] sm:$0xff] }
 0x21b   :  { %v1711_v18 = vmul.f32 %v3589_v1, %v1134_v11  ;;  %v2282_v20 = vmul.f32 %v1706_v12, %v1129_v3  ;;  %v2283_v21 = vmul.f32 %v1707_v13, %v1130_v4  ;;  %v1712_v23 = vmul.f32 %v3589_v1, %v1135_v15  ;;  %v572_v13 = vld [vmem:[#allocation4 + $0x10d8] sm:$0xff] }
 0x21c   :  { %v2284_v22 = vmul.f32 %v1708_v14, %v1131_v5  ;;  %v2285_v24 = vmul.f32 %v1709_v16, %v1132_v8  ;;  %v2286_v25 = vmul.f32 %v1710_v17, %v1133_v9  ;;  %v1713_v27 = vmul.f32 %v3589_v1, %v1136_v19  ;;  %v569_v5 = vld [vmem:[#allocation4 + $0x10c0] sm:$0xff] }
 0x21d   :  { %v2287_v26 = vmul.f32 %v1711_v18, %v1134_v11  ;;  %v2859_v31 = vadd.f32 %v3594_v10, %v2282_v20  ;;  %v2860_v32 = vadd.f32 %v3594_v10, %v2283_v21  ;;  %v2288_v34 = vmul.f32 %v1712_v23, %v1135_v15  ;;  %v573_v14 = vld [vmem:[#allocation4 + $0x10e0] sm:$0xff]  ;;  %v574_v15 = vld [vmem:[#allocation4 + $0x10e8] sm:$0xff]  ;;  %v575_v20 = vld [vmem:[#allocation4 + $0x10f0] sm:$0xff] }
 0x21e   :  { %v2861_v33 = vadd.f32 %v3594_v10, %v2284_v22  ;;  %v2862_v38 = vadd.f32 %v3594_v10, %v2285_v24  ;;  %v2863_v39 = vadd.f32 %v3594_v10, %v2286_v25  ;;  %v2289_v41 = vmul.f32 %v1713_v27, %v1136_v19  ;;  %v576_v25 = vld [vmem:[#allocation4 + $0x10f8] sm:$0xff] }
 0x21f   :  { %v2864_v40 = vadd.f32 %v3594_v10, %v2287_v26  ;;  %3435 = vst [vmem:[#allocation7 + $0x1040] sm:$0xff] %v2859_v31  ;;  %3436 = vst [vmem:[#allocation7 + $0x1048] sm:$0xff] %v2860_v32  ;;  %v2865_v43 = vadd.f32 %v3594_v10, %v2288_v34  ;;  %v1137_v44 = vmax.f32 %v561_v28, 0.0  ;;  %v1138_v45 = vmax.f32 %v562_v29, 0.0 }
 0x220   :  { %3437 = vst [vmem:[#allocation7 + $0x1050] sm:$0xff] %v2861_v33  ;;  %v1139_v46 = vmax.f32 %v563_v30, 0.0  ;;  %3438 = vst [vmem:[#allocation7 + $0x1058] sm:$0xff] %v2862_v38  ;;  %v2866_v48 = vadd.f32 %v3594_v10, %v2289_v41  ;;  %v1140_v49 = vmax.f32 %v564_v35, 0.0  ;;  %v1141_v50 = vmax.f32 %v565_v36, 0.0 }
 0x221   :  { %3439 = vst [vmem:[#allocation7 + $0x1060] sm:$0xff] %v2863_v39  ;;  %3440 = vst [vmem:[#allocation7 + $0x1068] sm:$0xff] %v2864_v40  ;;  %v1142_v51 = vmax.f32 %v566_v37, 0.0  ;;  %v1714_v52 = vmul.f32 %v3589_v1, %v1137_v44  ;;  %v1715_v53 = vmul.f32 %v3589_v1, %v1138_v45  ;;  %v1143_v55 = vmax.f32 %v567_v42, 0.0 }
 0x222   :  { %3441 = vst [vmem:[#allocation7 + $0x1070] sm:$0xff] %v2865_v43  ;;  %v1716_v54 = vmul.f32 %v3589_v1, %v1139_v46  ;;  %3442 = vst [vmem:[#allocation7 + $0x1078] sm:$0xff] %v2866_v48  ;;  %v1717_v56 = vmul.f32 %v3589_v1, %v1140_v49  ;;  %v1718_v57 = vmul.f32 %v3589_v1, %v1141_v50  ;;  %v1144_v59 = vmax.f32 %v568_v47, 0.0  ;;  %v578_v47 = vld [vmem:[#allocation4 + $0x1108] sm:$0xff]  ;;  %v579_v48 = vld [vmem:[#allocation4 + $0x1110] sm:$0xff] }
 0x223   :  { %v1719_v58 = vmul.f32 %v3589_v1, %v1142_v51  ;;  %v2290_v60 = vmul.f32 %v1714_v52, %v1137_v44  ;;  %v2291_v61 = vmul.f32 %v1715_v53, %v1138_v45  ;;  %v1720_v63 = vmul.f32 %v3589_v1, %v1143_v55  ;;  %v580_v53 = vld [vmem:[#allocation4 + $0x1118] sm:$0xff] }
 0x224   :  { %v2292_v62 = vmul.f32 %v1716_v54, %v1139_v46  ;;  %v2293_v0 = vmul.f32 %v1717_v56, %v1140_v49  ;;  %v2294_v2 = vmul.f32 %v1718_v57, %v1141_v50  ;;  %v1721_v4 = vmul.f32 %v3589_v1, %v1144_v59  ;;  %v577_v46 = vld [vmem:[#allocation4 + $0x1100] sm:$0xff] }
 0x225   :  { %v2295_v3 = vmul.f32 %v1719_v58, %v1142_v51  ;;  %v2867_v8 = vadd.f32 %v3594_v10, %v2290_v60  ;;  %v2868_v9 = vadd.f32 %v3594_v10, %v2291_v61  ;;  %v2296_v12 = vmul.f32 %v1720_v63, %v1143_v55  ;;  %v581_v54 = vld [vmem:[#allocation4 + $0x1120] sm:$0xff]  ;;  %v582_v55 = vld [vmem:[#allocation4 + $0x1128] sm:$0xff]  ;;  %v583_v60 = vld [vmem:[#allocation4 + $0x1130] sm:$0xff] }
 0x226   :  { %v2869_v11 = vadd.f32 %v3594_v10, %v2292_v62  ;;  %v2870_v16 = vadd.f32 %v3594_v10, %v2293_v0  ;;  %v2871_v17 = vadd.f32 %v3594_v10, %v2294_v2  ;;  %v2297_v19 = vmul.f32 %v1721_v4, %v1144_v59  ;;  %v584_v2 = vld [vmem:[#allocation4 + $0x1138] sm:$0xff] }
 0x227   :  { %v2872_v18 = vadd.f32 %v3594_v10, %v2295_v3  ;;  %3443 = vst [vmem:[#allocation7 + $0x1080] sm:$0xff] %v2867_v8  ;;  %3444 = vst [vmem:[#allocation7 + $0x1088] sm:$0xff] %v2868_v9  ;;  %v2873_v21 = vadd.f32 %v3594_v10, %v2296_v12  ;;  %v1145_v22 = vmax.f32 %v569_v5, 0.0  ;;  %v1146_v23 = vmax.f32 %v570_v6, 0.0 }
 0x228   :  { %3445 = vst [vmem:[#allocation7 + $0x1090] sm:$0xff] %v2869_v11  ;;  %v1147_v24 = vmax.f32 %v571_v7, 0.0  ;;  %3446 = vst [vmem:[#allocation7 + $0x1098] sm:$0xff] %v2870_v16  ;;  %v2874_v26 = vadd.f32 %v3594_v10, %v2297_v19  ;;  %v1148_v27 = vmax.f32 %v572_v13, 0.0  ;;  %v1149_v28 = vmax.f32 %v573_v14, 0.0 }
 0x229   :  { %3447 = vst [vmem:[#allocation7 + $0x10a0] sm:$0xff] %v2871_v17  ;;  %3448 = vst [vmem:[#allocation7 + $0x10a8] sm:$0xff] %v2872_v18  ;;  %v1150_v29 = vmax.f32 %v574_v15, 0.0  ;;  %v1722_v30 = vmul.f32 %v3589_v1, %v1145_v22  ;;  %v1723_v31 = vmul.f32 %v3589_v1, %v1146_v23  ;;  %v1151_v33 = vmax.f32 %v575_v20, 0.0 }
 0x22a   :  { %3449 = vst [vmem:[#allocation7 + $0x10b0] sm:$0xff] %v2873_v21  ;;  %v1724_v32 = vmul.f32 %v3589_v1, %v1147_v24  ;;  %3450 = vst [vmem:[#allocation7 + $0x10b8] sm:$0xff] %v2874_v26  ;;  %v1725_v34 = vmul.f32 %v3589_v1, %v1148_v27  ;;  %v1726_v35 = vmul.f32 %v3589_v1, %v1149_v28  ;;  %v1152_v37 = vmax.f32 %v576_v25, 0.0  ;;  %v586_v25 = vld [vmem:[#allocation4 + $0x1148] sm:$0xff]  ;;  %v587_v26 = vld [vmem:[#allocation4 + $0x1150] sm:$0xff] }
 0x22b   :  { %v1727_v36 = vmul.f32 %v3589_v1, %v1150_v29  ;;  %v2298_v38 = vmul.f32 %v1722_v30, %v1145_v22  ;;  %v2299_v39 = vmul.f32 %v1723_v31, %v1146_v23  ;;  %v1728_v41 = vmul.f32 %v3589_v1, %v1151_v33  ;;  %v588_v31 = vld [vmem:[#allocation4 + $0x1158] sm:$0xff] }
 0x22c   :  { %v2300_v40 = vmul.f32 %v1724_v32, %v1147_v24  ;;  %v2301_v42 = vmul.f32 %v1725_v34, %v1148_v27  ;;  %v2302_v43 = vmul.f32 %v1726_v35, %v1149_v28  ;;  %v1729_v45 = vmul.f32 %v3589_v1, %v1152_v37  ;;  %v585_v24 = vld [vmem:[#allocation4 + $0x1140] sm:$0xff] }
 0x22d   :  { %v2303_v44 = vmul.f32 %v1727_v36, %v1150_v29  ;;  %v2875_v49 = vadd.f32 %v3594_v10, %v2298_v38  ;;  %v2876_v50 = vadd.f32 %v3594_v10, %v2299_v39  ;;  %v2304_v52 = vmul.f32 %v1728_v41, %v1151_v33  ;;  %v589_v32 = vld [vmem:[#allocation4 + $0x1160] sm:$0xff]  ;;  %v590_v33 = vld [vmem:[#allocation4 + $0x1168] sm:$0xff]  ;;  %v591_v38 = vld [vmem:[#allocation4 + $0x1170] sm:$0xff] }
 0x22e   :  { %v2877_v51 = vadd.f32 %v3594_v10, %v2300_v40  ;;  %v2878_v56 = vadd.f32 %v3594_v10, %v2301_v42  ;;  %v2879_v57 = vadd.f32 %v3594_v10, %v2302_v43  ;;  %v2305_v59 = vmul.f32 %v1729_v45, %v1152_v37  ;;  %v592_v43 = vld [vmem:[#allocation4 + $0x1178] sm:$0xff] }
 0x22f   :  { %v2880_v58 = vadd.f32 %v3594_v10, %v2303_v44  ;;  %3451 = vst [vmem:[#allocation7 + $0x10c0] sm:$0xff] %v2875_v49  ;;  %3452 = vst [vmem:[#allocation7 + $0x10c8] sm:$0xff] %v2876_v50  ;;  %v2881_v61 = vadd.f32 %v3594_v10, %v2304_v52  ;;  %v1153_v62 = vmax.f32 %v577_v46, 0.0  ;;  %v1154_v63 = vmax.f32 %v578_v47, 0.0 }
 0x230   :  { %3453 = vst [vmem:[#allocation7 + $0x10d0] sm:$0xff] %v2877_v51  ;;  %v1155_v0 = vmax.f32 %v579_v48, 0.0  ;;  %3454 = vst [vmem:[#allocation7 + $0x10d8] sm:$0xff] %v2878_v56  ;;  %v2882_v3 = vadd.f32 %v3594_v10, %v2305_v59  ;;  %v1156_v4 = vmax.f32 %v580_v53, 0.0  ;;  %v1157_v5 = vmax.f32 %v581_v54, 0.0 }
 0x231   :  { %3455 = vst [vmem:[#allocation7 + $0x10e0] sm:$0xff] %v2879_v57  ;;  %3456 = vst [vmem:[#allocation7 + $0x10e8] sm:$0xff] %v2880_v58  ;;  %v1158_v6 = vmax.f32 %v582_v55, 0.0  ;;  %v1730_v7 = vmul.f32 %v3589_v1, %v1153_v62  ;;  %v1731_v8 = vmul.f32 %v3589_v1, %v1154_v63  ;;  %v1159_v11 = vmax.f32 %v583_v60, 0.0 }
 0x232   :  { %3457 = vst [vmem:[#allocation7 + $0x10f0] sm:$0xff] %v2881_v61  ;;  %v1732_v9 = vmul.f32 %v3589_v1, %v1155_v0  ;;  %3458 = vst [vmem:[#allocation7 + $0x10f8] sm:$0xff] %v2882_v3  ;;  %v1733_v12 = vmul.f32 %v3589_v1, %v1156_v4  ;;  %v1734_v13 = vmul.f32 %v3589_v1, %v1157_v5  ;;  %v1160_v15 = vmax.f32 %v584_v2, 0.0  ;;  %v594_v2 = vld [vmem:[#allocation4 + $0x1188] sm:$0xff]  ;;  %v595_v3 = vld [vmem:[#allocation4 + $0x1190] sm:$0xff] }
 0x233   :  { %v1735_v14 = vmul.f32 %v3589_v1, %v1158_v6  ;;  %v2306_v16 = vmul.f32 %v1730_v7, %v1153_v62  ;;  %v2307_v17 = vmul.f32 %v1731_v8, %v1154_v63  ;;  %v1736_v19 = vmul.f32 %v3589_v1, %v1159_v11  ;;  %v596_v8 = vld [vmem:[#allocation4 + $0x1198] sm:$0xff] }
 0x234   :  { %v2308_v18 = vmul.f32 %v1732_v9, %v1155_v0  ;;  %v2309_v20 = vmul.f32 %v1733_v12, %v1156_v4  ;;  %v2310_v21 = vmul.f32 %v1734_v13, %v1157_v5  ;;  %v1737_v23 = vmul.f32 %v3589_v1, %v1160_v15  ;;  %v593_v0 = vld [vmem:[#allocation4 + $0x1180] sm:$0xff] }
 0x235   :  { %v2311_v22 = vmul.f32 %v1735_v14, %v1158_v6  ;;  %v2883_v27 = vadd.f32 %v3594_v10, %v2306_v16  ;;  %v2884_v28 = vadd.f32 %v3594_v10, %v2307_v17  ;;  %v2312_v30 = vmul.f32 %v1736_v19, %v1159_v11  ;;  %v597_v9 = vld [vmem:[#allocation4 + $0x11a0] sm:$0xff]  ;;  %v598_v11 = vld [vmem:[#allocation4 + $0x11a8] sm:$0xff]  ;;  %v599_v16 = vld [vmem:[#allocation4 + $0x11b0] sm:$0xff] }
 0x236   :  { %v2885_v29 = vadd.f32 %v3594_v10, %v2308_v18  ;;  %v2886_v34 = vadd.f32 %v3594_v10, %v2309_v20  ;;  %v2887_v35 = vadd.f32 %v3594_v10, %v2310_v21  ;;  %v2313_v37 = vmul.f32 %v1737_v23, %v1160_v15  ;;  %v600_v21 = vld [vmem:[#allocation4 + $0x11b8] sm:$0xff] }
 0x237   :  { %v2888_v36 = vadd.f32 %v3594_v10, %v2311_v22  ;;  %3459 = vst [vmem:[#allocation7 + $0x1100] sm:$0xff] %v2883_v27  ;;  %3460 = vst [vmem:[#allocation7 + $0x1108] sm:$0xff] %v2884_v28  ;;  %v2889_v39 = vadd.f32 %v3594_v10, %v2312_v30  ;;  %v1161_v40 = vmax.f32 %v585_v24, 0.0  ;;  %v1162_v41 = vmax.f32 %v586_v25, 0.0 }
 0x238   :  { %3461 = vst [vmem:[#allocation7 + $0x1110] sm:$0xff] %v2885_v29  ;;  %v1163_v42 = vmax.f32 %v587_v26, 0.0  ;;  %3462 = vst [vmem:[#allocation7 + $0x1118] sm:$0xff] %v2886_v34  ;;  %v2890_v44 = vadd.f32 %v3594_v10, %v2313_v37  ;;  %v1164_v45 = vmax.f32 %v588_v31, 0.0  ;;  %v1165_v46 = vmax.f32 %v589_v32, 0.0 }
 0x239   :  { %3463 = vst [vmem:[#allocation7 + $0x1120] sm:$0xff] %v2887_v35  ;;  %3464 = vst [vmem:[#allocation7 + $0x1128] sm:$0xff] %v2888_v36  ;;  %v1166_v47 = vmax.f32 %v590_v33, 0.0  ;;  %v1738_v48 = vmul.f32 %v3589_v1, %v1161_v40  ;;  %v1739_v49 = vmul.f32 %v3589_v1, %v1162_v41  ;;  %v1167_v51 = vmax.f32 %v591_v38, 0.0 }
 0x23a   :  { %3465 = vst [vmem:[#allocation7 + $0x1130] sm:$0xff] %v2889_v39  ;;  %v1740_v50 = vmul.f32 %v3589_v1, %v1163_v42  ;;  %3466 = vst [vmem:[#allocation7 + $0x1138] sm:$0xff] %v2890_v44  ;;  %v1741_v52 = vmul.f32 %v3589_v1, %v1164_v45  ;;  %v1742_v53 = vmul.f32 %v3589_v1, %v1165_v46  ;;  %v1168_v55 = vmax.f32 %v592_v43, 0.0  ;;  %v602_v43 = vld [vmem:[#allocation4 + $0x11c8] sm:$0xff]  ;;  %v603_v44 = vld [vmem:[#allocation4 + $0x11d0] sm:$0xff] }
 0x23b   :  { %v1743_v54 = vmul.f32 %v3589_v1, %v1166_v47  ;;  %v2314_v56 = vmul.f32 %v1738_v48, %v1161_v40  ;;  %v2315_v57 = vmul.f32 %v1739_v49, %v1162_v41  ;;  %v1744_v59 = vmul.f32 %v3589_v1, %v1167_v51  ;;  %v604_v49 = vld [vmem:[#allocation4 + $0x11d8] sm:$0xff] }
 0x23c   :  { %v2316_v58 = vmul.f32 %v1740_v50, %v1163_v42  ;;  %v2317_v60 = vmul.f32 %v1741_v52, %v1164_v45  ;;  %v2318_v61 = vmul.f32 %v1742_v53, %v1165_v46  ;;  %v1745_v63 = vmul.f32 %v3589_v1, %v1168_v55  ;;  %v601_v42 = vld [vmem:[#allocation4 + $0x11c0] sm:$0xff] }
 0x23d   :  { %v2319_v62 = vmul.f32 %v1743_v54, %v1166_v47  ;;  %v2891_v4 = vadd.f32 %v3594_v10, %v2314_v56  ;;  %v2892_v5 = vadd.f32 %v3594_v10, %v2315_v57  ;;  %v2320_v7 = vmul.f32 %v1744_v59, %v1167_v51  ;;  %v605_v50 = vld [vmem:[#allocation4 + $0x11e0] sm:$0xff]  ;;  %v606_v51 = vld [vmem:[#allocation4 + $0x11e8] sm:$0xff]  ;;  %v607_v56 = vld [vmem:[#allocation4 + $0x11f0] sm:$0xff] }
 0x23e   :  { %v2893_v6 = vadd.f32 %v3594_v10, %v2316_v58  ;;  %v2894_v12 = vadd.f32 %v3594_v10, %v2317_v60  ;;  %v2895_v13 = vadd.f32 %v3594_v10, %v2318_v61  ;;  %v2321_v15 = vmul.f32 %v1745_v63, %v1168_v55  ;;  %v608_v61 = vld [vmem:[#allocation4 + $0x11f8] sm:$0xff] }
 0x23f   :  { %v2896_v14 = vadd.f32 %v3594_v10, %v2319_v62  ;;  %3467 = vst [vmem:[#allocation7 + $0x1140] sm:$0xff] %v2891_v4  ;;  %3468 = vst [vmem:[#allocation7 + $0x1148] sm:$0xff] %v2892_v5  ;;  %v2897_v17 = vadd.f32 %v3594_v10, %v2320_v7  ;;  %v1169_v18 = vmax.f32 %v593_v0, 0.0  ;;  %v1170_v19 = vmax.f32 %v594_v2, 0.0 }
 0x240   :  { %3469 = vst [vmem:[#allocation7 + $0x1150] sm:$0xff] %v2893_v6  ;;  %v1171_v20 = vmax.f32 %v595_v3, 0.0  ;;  %3470 = vst [vmem:[#allocation7 + $0x1158] sm:$0xff] %v2894_v12  ;;  %v2898_v22 = vadd.f32 %v3594_v10, %v2321_v15  ;;  %v1172_v23 = vmax.f32 %v596_v8, 0.0  ;;  %v1173_v24 = vmax.f32 %v597_v9, 0.0 }
 0x241   :  { %3471 = vst [vmem:[#allocation7 + $0x1160] sm:$0xff] %v2895_v13  ;;  %3472 = vst [vmem:[#allocation7 + $0x1168] sm:$0xff] %v2896_v14  ;;  %v1174_v25 = vmax.f32 %v598_v11, 0.0  ;;  %v1746_v26 = vmul.f32 %v3589_v1, %v1169_v18  ;;  %v1747_v27 = vmul.f32 %v3589_v1, %v1170_v19  ;;  %v1175_v29 = vmax.f32 %v599_v16, 0.0 }
 0x242   :  { %3473 = vst [vmem:[#allocation7 + $0x1170] sm:$0xff] %v2897_v17  ;;  %v1748_v28 = vmul.f32 %v3589_v1, %v1171_v20  ;;  %3474 = vst [vmem:[#allocation7 + $0x1178] sm:$0xff] %v2898_v22  ;;  %v1749_v30 = vmul.f32 %v3589_v1, %v1172_v23  ;;  %v1750_v31 = vmul.f32 %v3589_v1, %v1173_v24  ;;  %v1176_v33 = vmax.f32 %v600_v21, 0.0 }
 0x243   :  { %v1751_v32 = vmul.f32 %v3589_v1, %v1174_v25  ;;  %v2322_v34 = vmul.f32 %v1746_v26, %v1169_v18  ;;  %v2323_v35 = vmul.f32 %v1747_v27, %v1170_v19  ;;  %v1752_v37 = vmul.f32 %v3589_v1, %v1175_v29 }
 0x244   :  { %v2324_v36 = vmul.f32 %v1748_v28, %v1171_v20  ;;  %v2325_v38 = vmul.f32 %v1749_v30, %v1172_v23  ;;  %v2326_v39 = vmul.f32 %v1750_v31, %v1173_v24  ;;  %v1753_v41 = vmul.f32 %v3589_v1, %v1176_v33 }
 0x245   :  { %v2327_v40 = vmul.f32 %v1751_v32, %v1174_v25  ;;  %v2899_v45 = vadd.f32 %v3594_v10, %v2322_v34  ;;  %v2900_v46 = vadd.f32 %v3594_v10, %v2323_v35  ;;  %v2328_v48 = vmul.f32 %v1752_v37, %v1175_v29 }
 0x246   :  { %v2901_v47 = vadd.f32 %v3594_v10, %v2324_v36  ;;  %v2902_v52 = vadd.f32 %v3594_v10, %v2325_v38  ;;  %v2903_v53 = vadd.f32 %v3594_v10, %v2326_v39  ;;  %v2329_v55 = vmul.f32 %v1753_v41, %v1176_v33 }
 0x247   :  { %v2904_v54 = vadd.f32 %v3594_v10, %v2327_v40  ;;  %3475 = vst [vmem:[#allocation7 + $0x1180] sm:$0xff] %v2899_v45  ;;  %3476 = vst [vmem:[#allocation7 + $0x1188] sm:$0xff] %v2900_v46  ;;  %v2905_v57 = vadd.f32 %v3594_v10, %v2328_v48  ;;  %v1177_v58 = vmax.f32 %v601_v42, 0.0  ;;  %v1178_v59 = vmax.f32 %v602_v43, 0.0 }
 0x248   :  { %3477 = vst [vmem:[#allocation7 + $0x1190] sm:$0xff] %v2901_v47  ;;  %v1179_v60 = vmax.f32 %v603_v44, 0.0  ;;  %3478 = vst [vmem:[#allocation7 + $0x1198] sm:$0xff] %v2902_v52  ;;  %v2906_v62 = vadd.f32 %v3594_v10, %v2329_v55  ;;  %v1180_v63 = vmax.f32 %v604_v49, 0.0  ;;  %v1181_v0 = vmax.f32 %v605_v50, 0.0 }
 0x249   :  { %3479 = vst [vmem:[#allocation7 + $0x11a0] sm:$0xff] %v2903_v53  ;;  %3480 = vst [vmem:[#allocation7 + $0x11a8] sm:$0xff] %v2904_v54  ;;  %v1182_v2 = vmax.f32 %v606_v51, 0.0  ;;  %v1754_v3 = vmul.f32 %v3589_v1, %v1177_v58  ;;  %v1755_v4 = vmul.f32 %v3589_v1, %v1178_v59  ;;  %v1183_v6 = vmax.f32 %v607_v56, 0.0 }
 0x24a   :  { %3481 = vst [vmem:[#allocation7 + $0x11b0] sm:$0xff] %v2905_v57  ;;  %v1756_v5 = vmul.f32 %v3589_v1, %v1179_v60  ;;  %3482 = vst [vmem:[#allocation7 + $0x11b8] sm:$0xff] %v2906_v62  ;;  %v1757_v7 = vmul.f32 %v3589_v1, %v1180_v63  ;;  %v1758_v8 = vmul.f32 %v3589_v1, %v1181_v0  ;;  %v1184_v11 = vmax.f32 %v608_v61, 0.0 }
 0x24b   :  { %v1759_v9 = vmul.f32 %v3589_v1, %v1182_v2  ;;  %v2330_v12 = vmul.f32 %v1754_v3, %v1177_v58  ;;  %v2331_v13 = vmul.f32 %v1755_v4, %v1178_v59  ;;  %v1760_v15 = vmul.f32 %v3589_v1, %v1183_v6 }
 0x24c   :  { %v2332_v14 = vmul.f32 %v1756_v5, %v1179_v60  ;;  %v2333_v16 = vmul.f32 %v1757_v7, %v1180_v63  ;;  %v2334_v17 = vmul.f32 %v1758_v8, %v1181_v0  ;;  %v1761_v19 = vmul.f32 %v3589_v1, %v1184_v11 }
 0x24d   :  { %v2335_v18 = vmul.f32 %v1759_v9, %v1182_v2  ;;  %v2907_v20 = vadd.f32 %v3594_v10, %v2330_v12  ;;  %v2908_v21 = vadd.f32 %v3594_v10, %v2331_v13  ;;  %v2336_v23 = vmul.f32 %v1760_v15, %v1183_v6 }
 0x24e   :  { %v2909_v22 = vadd.f32 %v3594_v10, %v2332_v14  ;;  %v2910_v24 = vadd.f32 %v3594_v10, %v2333_v16  ;;  %v2911_v25 = vadd.f32 %v3594_v10, %v2334_v17  ;;  %v2337_v27 = vmul.f32 %v1761_v19, %v1184_v11 }
 0x24f   :  { %v2912_v26 = vadd.f32 %v3594_v10, %v2335_v18  ;;  %3483 = vst [vmem:[#allocation7 + $0x11c0] sm:$0xff] %v2907_v20  ;;  %3484 = vst [vmem:[#allocation7 + $0x11c8] sm:$0xff] %v2908_v21  ;;  %v2913_v1 = vadd.f32 %v3594_v10, %v2336_v23 }
 0x250   :  { %3485 = vst [vmem:[#allocation7 + $0x11d0] sm:$0xff] %v2909_v22  ;;  %3486 = vst [vmem:[#allocation7 + $0x11d8] sm:$0xff] %v2910_v24  ;;  %v2914_v28 = vadd.f32 %v3594_v10, %v2337_v27 }
 0x251   :  { %3487 = vst [vmem:[#allocation7 + $0x11e0] sm:$0xff] %v2911_v25  ;;  %3488 = vst [vmem:[#allocation7 + $0x11e8] sm:$0xff] %v2912_v26 }
 0x252   :  { %3489 = vst [vmem:[#allocation7 + $0x11f0] sm:$0xff] %v2913_v1  ;;  %3490 = vst [vmem:[#allocation7 + $0x11f8] sm:$0xff] %v2914_v28 }
 0x253   :  { %3543 = shalt.err (!%p3540_p9)
}
 0x254   :  { %3502 = dma.vmem_to_hbm [thread:$0]  %s3497_s1, 73728, %s4757_s3, [#allocation6], %s3557_s15, %s3557_s15, %s3558_s16  }
 0x255   :  { %3554 = dma.done.wait [#allocation6], 73728  }
 0x256   :  { %3555 = vsyncadd [#allocation6], 4294893568 }
 0x257   :  { %3506 = vsyncpa [#allocation5], 1 }
 0x258   :  { %3507 = vsyncpa [#allocation6], 1 }

</bundles_post_ra>
